<compile_context>
chip_gen: v5e
topology: v5e:2x2
jax: 0.10.0
libtpu: 0.0.40
codegen_flags: <defaults>
</compile_context>

<pallas_src>
import jax
import jax.numpy as jnp
from jax.experimental import pallas as pl
from jax.experimental.pallas import tpu as pltpu

HIGHEST = jax.lax.Precision.HIGHEST  # used only by the pure-JAX reference


# ------------------------------ fused Pallas kernel --------------------------

def _fused_kernel(xr_ref, w1_ref, b1_ref, w2_ref, b2_ref,
                  fc1w_ref, fc1b_ref, fc2w_ref, fc2b_ref, o_ref,
                  p1_s, act1_s, p2_s, flat_s):
    """Whole HalfConvNet forward for ONE sample (grid axis = batch).

    xr_ref : (4, 2, 7, 7)  parity-split input: xr[m, q, u, v] = x[4u+m, 2v+q]
    w1_ref : (96, 60)      block-diagonal conv1 weight (K padded 90 -> 96)
    b1_ref : (1, 60)       conv1 bias tiled over the 6 pooled output columns
    w2_ref : (256, 20)     conv2 im2col weight (K padded 250 -> 256)
    b2_ref : (1, 20)
    fc1w_ref: (80, 50)     fc1 weight, rows permuted to (h*20 + c) order
    fc1b_ref: (1, 50)
    fc2w_ref: (50, 10)     fc2 weight transposed
    fc2b_ref: (1, 10)
    o_ref  : (1, 10)       logits for this sample
    p1_s   : (64, 96)      conv1 patch matrix scratch (8 row-blocks of 6 rows)
    act1_s : (2, 8, 60)    conv1 pooled activation, row-parity split
    p2_s   : (32, 256)     conv2 patch matrix scratch (4 row-blocks of 4 rows)
    flat_s : (1, 80)       flattened conv features
    """
    f32 = jnp.float32

    # Zero the padded patch buffers so the pad rows/cols contribute exact zeros
    # to the matmuls (the padded weight rows are zero too).
    p1_s[...] = jnp.zeros(p1_s.shape, f32)
    p2_s[...] = jnp.zeros(p2_s.shape, f32)

    # -------- stage 1: conv1 (5x3) + 2x2 max-pool + ReLU ---------------------
    # P1 row = (rho, dh, dw)-block * 8 + u   (u < 6; rows 6..7 of each block pad)
    # P1 col = (a*3 + b) * 6 + J             (cols 90..95 pad)
    # rho = output-row parity, (dh, dw) = pool-window offset, u/J = pooled
    # output row/col.  One matmul against the block-diagonal conv1 weight then
    # yields every conv value needed by the pool, grouped for contiguous maxes.
    loaded = {}

    def xpatch(s, t):
        # x[4u + s, 2J + t] over u, J in [0, 6) as a contiguous (6, 6) slice.
        key = (s % 4, t % 2, s // 4, t // 2)
        if key not in loaded:
            m, q, s1, t1 = key
            loaded[key] = xr_ref[m, q, s1:s1 + 6, t1:t1 + 6]
        return loaded[key]

    for rho in range(2):
        for dh in range(2):
            for dw in range(2):
                r0 = (rho * 4 + dh * 2 + dw) * 8
                for a in range(5):
                    for b in range(3):
                        c0 = (a * 3 + b) * 6
                        p1_s[r0:r0 + 6, c0:c0 + 6] = xpatch(2 * rho + dh + a,
                                                            dw + b)

    c1 = jnp.dot(p1_s[...], w1_ref[...], preferred_element_type=f32)  # (64, 60)
    for rho in range(2):
        o = rho * 32
        m1 = jnp.maximum(jnp.maximum(c1[o:o + 6], c1[o + 8:o + 14]),
                         jnp.maximum(c1[o + 16:o + 22], c1[o + 24:o + 30]))
        # act1_s[rho, u, J*10 + c] == relu(maxpool(conv1(x) + b1))[c, 2u+rho, J]
        # (bias after max is valid: bias is constant per channel over the window)
        act1_s[rho, 0:6, :] = jnp.maximum(m1 + b1_ref[...], 0.0)

    # -------- stage 2: conv2 (5x5) + Dropout2d + 2x2 max-pool + ReLU ---------
    # TODO(synk): nn.Dropout2d train-mode channel masking not implemented;
    # inference semantics (identity) are used here.
    # P2 row = (dh, dw)-block * 8 + i        (i < 4; rows 4..7 of each block pad)
    # P2 col = a*50 + b*10 + ci              (cols 250..255 pad)
    for dh in range(2):
        for dw in range(2):
            r0 = (dh * 2 + dw) * 8
            for a in range(5):
                par, k = (dh + a) % 2, (dh + a) // 2
                p2_s[r0:r0 + 4, a * 50:a * 50 + 50] = (
                    act1_s[par, k:k + 4, dw * 10:dw * 10 + 50])

    c2 = jnp.dot(p2_s[...], w2_ref[...], preferred_element_type=f32)  # (32, 20)
    m2 = jnp.maximum(jnp.maximum(c2[0:4], c2[8:12]),
                     jnp.maximum(c2[16:20], c2[24:28]))
    act2 = jnp.maximum(m2 + b2_ref[...], 0.0)      # (4, 20): [h, c] of (20, 4, 1)

    # -------- stage 3: flatten + fc1 + ReLU + dropout + fc2 ------------------
    # PyTorch's x.view(-1, 80) order (c*4 + h) is absorbed into the fc1 weight
    # permutation; the kernel flattens as (h*20 + c).
    for hrow in range(4):
        flat_s[0:1, hrow * 20:hrow * 20 + 20] = act2[hrow:hrow + 1, :]
    hid = jnp.maximum(
        jnp.dot(flat_s[...], fc1w_ref[...], preferred_element_type=f32)
        + fc1b_ref[...], 0.0)                                         # (1, 50)
    # TODO(synk): F.dropout(training=True) masking not implemented (inference
    # identity is used).
    o_ref[...] = (jnp.dot(hid, fc2w_ref[...], preferred_element_type=f32)
                  + fc2b_ref[...])                                    # (1, 10)


# ------------------------------ JAX wrapper -----------------------------------

def _prep_params(params):
    """Reshape/permute the PyTorch-layout parameters into kernel layouts."""
    w1, b1 = params["w1"], params["b1"]              # (10,1,5,3), (10,)
    w2, b2 = params["w2"], params["b2"]              # (20,10,5,5), (20,)
    fc1_w, fc1_b = params["fc1_w"], params["fc1_b"]  # (50,80), (50,)
    fc2_w, fc2_b = params["fc2_w"], params["fc2_b"]  # (10,50), (10,)

    # conv1 -> block-diagonal matmul weight:
    #   W1p[(a*3+b)*6 + J, J'*10 + c] = w1[c,0,a,b] * (J == J'); K pad 90 -> 96.
    w1f = w1.reshape(10, 15).T                       # (15, 10): [a*3+b, c]
    w1p = (jnp.eye(6, dtype=jnp.float32)[None, :, :, None]
           * w1f[:, None, None, :]).reshape(90, 60)
    w1p = jnp.pad(w1p, ((0, 6), (0, 0)))             # (96, 60)
    b1t = jnp.tile(b1, 6).reshape(1, 60)             # [J*10 + c] -> b1[c]

    # conv2 -> im2col weight: W2p[a*50 + b*10 + ci, co]; K pad 250 -> 256.
    w2p = jnp.pad(w2.transpose(2, 3, 1, 0).reshape(250, 20), ((0, 6), (0, 0)))
    b2r = b2.reshape(1, 20)

    # fc1 columns are in PyTorch flatten order (c*4 + h); permute rows so the
    # kernel's (h*20 + c) flatten multiplies directly (no in-kernel transpose).
    fc1wp = fc1_w.reshape(50, 20, 4).transpose(2, 1, 0).reshape(80, 50)
    fc1br = fc1_b.reshape(1, 50)
    fc2wt = fc2_w.T                                  # (50, 10)
    fc2br = fc2_b.reshape(1, 10)
    return w1p, b1t, w2p, b2r, fc1wp, fc1br, fc2wt, fc2br


@jax.jit
def half_conv_net(x, params):
    """x: (N, 1, 28, 14) NCHW float32 -> logits (N, 10)."""
    n = x.shape[0]
    # Parity-split the raw input (one reshape + one transpose, no data blowup):
    #   xr[n, m, q, u, v] = x[n, 0, 4u + m, 2v + q]
    # This turns every stride-2 spatial access inside the kernel into a
    # contiguous static slice.
    xr = x.reshape(n, 7, 4, 7, 2).transpose(0, 2, 4, 1, 3)   # (N, 4, 2, 7, 7)
    w1p, b1t, w2p, b2r, fc1wp, fc1br, fc2wt, fc2br = _prep_params(params)

    const2 = lambda i: (0, 0)
    out = pl.pallas_call(
        _fused_kernel,
        out_shape=jax.ShapeDtypeStruct((n, 1, 10), jnp.float32),
        grid=(n,),
        in_specs=[
            pl.BlockSpec((None, 4, 2, 7, 7), lambda i: (i, 0, 0, 0, 0)),  # xr
            pl.BlockSpec((96, 60), const2),    # conv1 block-diagonal weight
            pl.BlockSpec((1, 60), const2),     # conv1 bias (tiled)
            pl.BlockSpec((256, 20), const2),   # conv2 im2col weight
            pl.BlockSpec((1, 20), const2),     # conv2 bias
            pl.BlockSpec((80, 50), const2),    # fc1 weight (row-permuted)
            pl.BlockSpec((1, 50), const2),     # fc1 bias
            pl.BlockSpec((50, 10), const2),    # fc2 weight (transposed)
            pl.BlockSpec((1, 10), const2),     # fc2 bias
        ],
        out_specs=pl.BlockSpec((None, 1, 10), lambda i: (i, 0, 0)),
        scratch_shapes=[
            pltpu.VMEM((64, 96), jnp.float32),    # conv1 patch matrix
            pltpu.VMEM((2, 8, 60), jnp.float32),  # conv1 pooled activation
            pltpu.VMEM((32, 256), jnp.float32),   # conv2 patch matrix
            pltpu.VMEM((1, 80), jnp.float32),     # flattened features
        ],
        compiler_params=pltpu.CompilerParams(
            dimension_semantics=("parallel",)),
    )(xr, w1p, b1t, w2p, b2r, fc1wp, fc1br, fc2wt, fc2br)
    return out.reshape(n, 10)


# ------------------------------ parameters -----------------------------------

def init_params(key):
    ks = jax.random.split(key, 8)

    def u(k, shape, fan_in):
        bound = float(fan_in) ** -0.5
        return jax.random.uniform(k, shape, jnp.float32, -bound, bound)

    return {
        "w1": u(ks[0], (10, 1, 5, 3), 15),      # Conv2d(1, 10, (5, 3))
        "b1": u(ks[1], (10,), 15),
        "w2": u(ks[2], (20, 10, 5, 5), 250),    # Conv2d(10, 20, 5)
        "b2": u(ks[3], (20,), 250),
        "fc1_w": u(ks[4], (50, 80), 80),        # Linear(80, 50)
        "fc1_b": u(ks[5], (50,), 80),
        "fc2_w": u(ks[6], (10, 50), 50),        # Linear(50, 10)
        "fc2_b": u(ks[7], (10,), 50),
    }


# ------------------------------ pure-JAX reference ----------------------------

def reference_forward(x, params):
    dn = ("NCHW", "OIHW", "NCHW")
    y = jax.lax.conv_general_dilated(x, params["w1"], (1, 1), "VALID",
                                     dimension_numbers=dn, precision=HIGHEST)
    y = y + params["b1"][None, :, None, None]
    y = jax.lax.reduce_window(y, -jnp.inf, jax.lax.max,
                              (1, 1, 2, 2), (1, 1, 2, 2), "VALID")
    y = jnp.maximum(y, 0.0)
    y = jax.lax.conv_general_dilated(y, params["w2"], (1, 1), "VALID",
                                     dimension_numbers=dn, precision=HIGHEST)
    y = y + params["b2"][None, :, None, None]
    y = jax.lax.reduce_window(y, -jnp.inf, jax.lax.max,
                              (1, 1, 2, 2), (1, 1, 2, 2), "VALID")
    y = jnp.maximum(y, 0.0)
    y = y.reshape(x.shape[0], -1)
    y = jnp.maximum(
        jnp.dot(y, params["fc1_w"].T, precision=HIGHEST) + params["fc1_b"], 0.0)
    return jnp.dot(y, params["fc2_w"].T, precision=HIGHEST) + params["fc2_b"]


# ------------------------------ main ------------------------------------------

if __name__ == "__main__":
    key = jax.random.PRNGKey(0)
    kx, kp = jax.random.split(key)
    x = jax.random.normal(kx, (2, 1, 28, 14), jnp.float32)   # NCHW, half-MNIST
    params = init_params(kp)

    out = jax.block_until_ready(half_conv_net(x, params))
    assert out.shape == (2, 10) and out.dtype == jnp.float32

    ref = jax.block_until_ready(reference_forward(x, params))
    # Kernel uses default MXU precision (bf16 inputs, f32 accumulation); the
    # reference uses f32 HIGHEST, so allow a small tolerance.
    if not bool(jnp.allclose(out, ref, atol=1e-2, rtol=1e-2)):
        raise AssertionError(f"mismatch vs reference: max err "
                             f"{float(jnp.max(jnp.abs(out - ref)))}")
    print("KERNEL_OK")
</pallas_src>

<mosaic_0001>
module attributes {stable_mosaic.version = 11 : i64} {
  func.func @_fused_kernel(%arg0: i32, %arg1: memref<1x4x2x7x7xf32, #tpu.memory_space<vmem>>, %arg2: memref<96x60xf32, #tpu.memory_space<vmem>>, %arg3: memref<1x60xf32, #tpu.memory_space<vmem>>, %arg4: memref<256x20xf32, #tpu.memory_space<vmem>>, %arg5: memref<1x20xf32, #tpu.memory_space<vmem>>, %arg6: memref<80x50xf32, #tpu.memory_space<vmem>>, %arg7: memref<1x50xf32, #tpu.memory_space<vmem>>, %arg8: memref<50x10xf32, #tpu.memory_space<vmem>>, %arg9: memref<1x10xf32, #tpu.memory_space<vmem>>, %arg10: memref<1x1x10xf32, #tpu.memory_space<vmem>>, %arg11: memref<64x96xf32, #tpu.memory_space<vmem>>, %arg12: memref<2x8x60xf32, #tpu.memory_space<vmem>>, %arg13: memref<32x256xf32, #tpu.memory_space<vmem>>, %arg14: memref<1x80xf32, #tpu.memory_space<vmem>>) attributes {dimension_semantics = [#tpu.dimension_semantics<parallel>], iteration_bounds = array<i64: 2>, scalar_prefetch = 0 : i64, scratch_operands = 4 : i64, tpu.core_type = #tpu.core_type<tc>, window_params = [{transform_indices = @transform_0, window_bounds = array<i64: 1, 4, 2, 7, 7>}, {pipeline_mode = #tpu.pipeline_mode<synchronous>, transform_indices = @transform_1, window_bounds = array<i64: 96, 60>}, {pipeline_mode = #tpu.pipeline_mode<synchronous>, transform_indices = @transform_2, window_bounds = array<i64: 1, 60>}, {pipeline_mode = #tpu.pipeline_mode<synchronous>, transform_indices = @transform_3, window_bounds = array<i64: 256, 20>}, {pipeline_mode = #tpu.pipeline_mode<synchronous>, transform_indices = @transform_4, window_bounds = array<i64: 1, 20>}, {pipeline_mode = #tpu.pipeline_mode<synchronous>, transform_indices = @transform_5, window_bounds = array<i64: 80, 50>}, {pipeline_mode = #tpu.pipeline_mode<synchronous>, transform_indices = @transform_6, window_bounds = array<i64: 1, 50>}, {pipeline_mode = #tpu.pipeline_mode<synchronous>, transform_indices = @transform_7, window_bounds = array<i64: 50, 10>}, {pipeline_mode = #tpu.pipeline_mode<synchronous>, transform_indices = @transform_8, window_bounds = array<i64: 1, 10>}, {transform_indices = @transform_9, window_bounds = array<i64: 1, 1, 10>}]} {
    %cst = arith.constant 0.000000e+00 : f32
    %0 = vector.broadcast %cst : f32 to vector<64x96xf32>
    %c0 = arith.constant 0 : index
    %c0_0 = arith.constant 0 : index
    %1 = vector.load %arg11[%c0, %c0_0] : memref<64x96xf32, #tpu.memory_space<vmem>>, vector<64x96xf32>
    tpu.vector_store %arg11[%c0, %c0_0], %0 {strides = array<i32>} : memref<64x96xf32, #tpu.memory_space<vmem>>, vector<64x96xf32>,
    %cst_1 = arith.constant 0.000000e+00 : f32
    %2 = vector.broadcast %cst_1 : f32 to vector<32x256xf32>
    %c0_2 = arith.constant 0 : index
    %c0_3 = arith.constant 0 : index
    %3 = vector.load %arg13[%c0_2, %c0_3] : memref<32x256xf32, #tpu.memory_space<vmem>>, vector<32x256xf32>
    tpu.vector_store %arg13[%c0_2, %c0_3], %2 {strides = array<i32>} : memref<32x256xf32, #tpu.memory_space<vmem>>, vector<32x256xf32>,
    %c0_4 = arith.constant 0 : index
    %c0_5 = arith.constant 0 : index
    %c0_6 = arith.constant 0 : index
    %c0_7 = arith.constant 0 : index
    %c0_8 = arith.constant 0 : index
    %4 = vector.load %arg1[%c0_4, %c0_5, %c0_6, %c0_7, %c0_8] : memref<1x4x2x7x7xf32, #tpu.memory_space<vmem>>, vector<1x1x1x6x6xf32>
    %5 = vector.shape_cast %4 : vector<1x1x1x6x6xf32> to vector<6x6xf32>
    %c0_9 = arith.constant 0 : index
    %c0_10 = arith.constant 0 : index
    %6 = vector.load %arg11[%c0_9, %c0_10] : memref<64x96xf32, #tpu.memory_space<vmem>>, vector<6x6xf32>
    tpu.vector_store %arg11[%c0_9, %c0_10], %5 {strides = array<i32>} : memref<64x96xf32, #tpu.memory_space<vmem>>, vector<6x6xf32>,
    %c0_11 = arith.constant 0 : index
    %c0_12 = arith.constant 0 : index
    %c1 = arith.constant 1 : index
    %c0_13 = arith.constant 0 : index
    %c0_14 = arith.constant 0 : index
    %7 = vector.load %arg1[%c0_11, %c0_12, %c1, %c0_13, %c0_14] : memref<1x4x2x7x7xf32, #tpu.memory_space<vmem>>, vector<1x1x1x6x6xf32>
    %8 = vector.shape_cast %7 : vector<1x1x1x6x6xf32> to vector<6x6xf32>
    %c0_15 = arith.constant 0 : index
    %c6 = arith.constant 6 : index
    %9 = vector.load %arg11[%c0_15, %c6] : memref<64x96xf32, #tpu.memory_space<vmem>>, vector<6x6xf32>
    tpu.vector_store %arg11[%c0_15, %c6], %8 {strides = array<i32>} : memref<64x96xf32, #tpu.memory_space<vmem>>, vector<6x6xf32>,
    %c0_16 = arith.constant 0 : index
    %c0_17 = arith.constant 0 : index
    %c0_18 = arith.constant 0 : index
    %c0_19 = arith.constant 0 : index
    %c1_20 = arith.constant 1 : index
    %10 = vector.load %arg1[%c0_16, %c0_17, %c0_18, %c0_19, %c1_20] : memref<1x4x2x7x7xf32, #tpu.memory_space<vmem>>, vector<1x1x1x6x6xf32>
    %11 = vector.shape_cast %10 : vector<1x1x1x6x6xf32> to vector<6x6xf32>
    %c0_21 = arith.constant 0 : index
    %c12 = arith.constant 12 : index
    %12 = vector.load %arg11[%c0_21, %c12] : memref<64x96xf32, #tpu.memory_space<vmem>>, vector<6x6xf32>
    tpu.vector_store %arg11[%c0_21, %c12], %11 {strides = array<i32>} : memref<64x96xf32, #tpu.memory_space<vmem>>, vector<6x6xf32>,
    %c0_22 = arith.constant 0 : index
    %c1_23 = arith.constant 1 : index
    %c0_24 = arith.constant 0 : index
    %c0_25 = arith.constant 0 : index
    %c0_26 = arith.constant 0 : index
    %13 = vector.load %arg1[%c0_22, %c1_23, %c0_24, %c0_25, %c0_26] : memref<1x4x2x7x7xf32, #tpu.memory_space<vmem>>, vector<1x1x1x6x6xf32>
    %14 = vector.shape_cast %13 : vector<1x1x1x6x6xf32> to vector<6x6xf32>
    %c0_27 = arith.constant 0 : index
    %c18 = arith.constant 18 : index
    %15 = vector.load %arg11[%c0_27, %c18] : memref<64x96xf32, #tpu.memory_space<vmem>>, vector<6x6xf32>
    tpu.vector_store %arg11[%c0_27, %c18], %14 {strides = array<i32>} : memref<64x96xf32, #tpu.memory_space<vmem>>, vector<6x6xf32>,
    %c0_28 = arith.constant 0 : index
    %c1_29 = arith.constant 1 : index
    %c1_30 = arith.constant 1 : index
    %c0_31 = arith.constant 0 : index
    %c0_32 = arith.constant 0 : index
    %16 = vector.load %arg1[%c0_28, %c1_29, %c1_30, %c0_31, %c0_32] : memref<1x4x2x7x7xf32, #tpu.memory_space<vmem>>, vector<1x1x1x6x6xf32>
    %17 = vector.shape_cast %16 : vector<1x1x1x6x6xf32> to vector<6x6xf32>
    %c0_33 = arith.constant 0 : index
    %c24 = arith.constant 24 : index
    %18 = vector.load %arg11[%c0_33, %c24] : memref<64x96xf32, #tpu.memory_space<vmem>>, vector<6x6xf32>
    tpu.vector_store %arg11[%c0_33, %c24], %17 {strides = array<i32>} : memref<64x96xf32, #tpu.memory_space<vmem>>, vector<6x6xf32>,
    %c0_34 = arith.constant 0 : index
    %c1_35 = arith.constant 1 : index
    %c0_36 = arith.constant 0 : index
    %c0_37 = arith.constant 0 : index
    %c1_38 = arith.constant 1 : index
    %19 = vector.load %arg1[%c0_34, %c1_35, %c0_36, %c0_37, %c1_38] : memref<1x4x2x7x7xf32, #tpu.memory_space<vmem>>, vector<1x1x1x6x6xf32>
    %20 = vector.shape_cast %19 : vector<1x1x1x6x6xf32> to vector<6x6xf32>
    %c0_39 = arith.constant 0 : index
    %c30 = arith.constant 30 : index
    %21 = vector.load %arg11[%c0_39, %c30] : memref<64x96xf32, #tpu.memory_space<vmem>>, vector<6x6xf32>
    tpu.vector_store %arg11[%c0_39, %c30], %20 {strides = array<i32>} : memref<64x96xf32, #tpu.memory_space<vmem>>, vector<6x6xf32>,
    %c0_40 = arith.constant 0 : index
    %c2 = arith.constant 2 : index
    %c0_41 = arith.constant 0 : index
    %c0_42 = arith.constant 0 : index
    %c0_43 = arith.constant 0 : index
    %22 = vector.load %arg1[%c0_40, %c2, %c0_41, %c0_42, %c0_43] : memref<1x4x2x7x7xf32, #tpu.memory_space<vmem>>, vector<1x1x1x6x6xf32>
    %23 = vector.shape_cast %22 : vector<1x1x1x6x6xf32> to vector<6x6xf32>
    %c0_44 = arith.constant 0 : index
    %c36 = arith.constant 36 : index
    %24 = vector.load %arg11[%c0_44, %c36] : memref<64x96xf32, #tpu.memory_space<vmem>>, vector<6x6xf32>
    tpu.vector_store %arg11[%c0_44, %c36], %23 {strides = array<i32>} : memref<64x96xf32, #tpu.memory_space<vmem>>, vector<6x6xf32>,
    %c0_45 = arith.constant 0 : index
    %c2_46 = arith.constant 2 : index
    %c1_47 = arith.constant 1 : index
    %c0_48 = arith.constant 0 : index
    %c0_49 = arith.constant 0 : index
    %25 = vector.load %arg1[%c0_45, %c2_46, %c1_47, %c0_48, %c0_49] : memref<1x4x2x7x7xf32, #tpu.memory_space<vmem>>, vector<1x1x1x6x6xf32>
    %26 = vector.shape_cast %25 : vector<1x1x1x6x6xf32> to vector<6x6xf32>
    %c0_50 = arith.constant 0 : index
    %c42 = arith.constant 42 : index
    %27 = vector.load %arg11[%c0_50, %c42] : memref<64x96xf32, #tpu.memory_space<vmem>>, vector<6x6xf32>
    tpu.vector_store %arg11[%c0_50, %c42], %26 {strides = array<i32>} : memref<64x96xf32, #tpu.memory_space<vmem>>, vector<6x6xf32>,
    %c0_51 = arith.constant 0 : index
    %c2_52 = arith.constant 2 : index
    %c0_53 = arith.constant 0 : index
    %c0_54 = arith.constant 0 : index
    %c1_55 = arith.constant 1 : index
    %28 = vector.load %arg1[%c0_51, %c2_52, %c0_53, %c0_54, %c1_55] : memref<1x4x2x7x7xf32, #tpu.memory_space<vmem>>, vector<1x1x1x6x6xf32>
    %29 = vector.shape_cast %28 : vector<1x1x1x6x6xf32> to vector<6x6xf32>
    %c0_56 = arith.constant 0 : index
    %c48 = arith.constant 48 : index
    %30 = vector.load %arg11[%c0_56, %c48] : memref<64x96xf32, #tpu.memory_space<vmem>>, vector<6x6xf32>
    tpu.vector_store %arg11[%c0_56, %c48], %29 {strides = array<i32>} : memref<64x96xf32, #tpu.memory_space<vmem>>, vector<6x6xf32>,
    %c0_57 = arith.constant 0 : index
    %c3 = arith.constant 3 : index
    %c0_58 = arith.constant 0 : index
    %c0_59 = arith.constant 0 : index
    %c0_60 = arith.constant 0 : index
    %31 = vector.load %arg1[%c0_57, %c3, %c0_58, %c0_59, %c0_60] : memref<1x4x2x7x7xf32, #tpu.memory_space<vmem>>, vector<1x1x1x6x6xf32>
    %32 = vector.shape_cast %31 : vector<1x1x1x6x6xf32> to vector<6x6xf32>
    %c0_61 = arith.constant 0 : index
    %c54 = arith.constant 54 : index
    %33 = vector.load %arg11[%c0_61, %c54] : memref<64x96xf32, #tpu.memory_space<vmem>>, vector<6x6xf32>
    tpu.vector_store %arg11[%c0_61, %c54], %32 {strides = array<i32>} : memref<64x96xf32, #tpu.memory_space<vmem>>, vector<6x6xf32>,
    %c0_62 = arith.constant 0 : index
    %c3_63 = arith.constant 3 : index
    %c1_64 = arith.constant 1 : index
    %c0_65 = arith.constant 0 : index
    %c0_66 = arith.constant 0 : index
    %34 = vector.load %arg1[%c0_62, %c3_63, %c1_64, %c0_65, %c0_66] : memref<1x4x2x7x7xf32, #tpu.memory_space<vmem>>, vector<1x1x1x6x6xf32>
    %35 = vector.shape_cast %34 : vector<1x1x1x6x6xf32> to vector<6x6xf32>
    %c0_67 = arith.constant 0 : index
    %c60 = arith.constant 60 : index
    %36 = vector.load %arg11[%c0_67, %c60] : memref<64x96xf32, #tpu.memory_space<vmem>>, vector<6x6xf32>
    tpu.vector_store %arg11[%c0_67, %c60], %35 {strides = array<i32>} : memref<64x96xf32, #tpu.memory_space<vmem>>, vector<6x6xf32>,
    %c0_68 = arith.constant 0 : index
    %c3_69 = arith.constant 3 : index
    %c0_70 = arith.constant 0 : index
    %c0_71 = arith.constant 0 : index
    %c1_72 = arith.constant 1 : index
    %37 = vector.load %arg1[%c0_68, %c3_69, %c0_70, %c0_71, %c1_72] : memref<1x4x2x7x7xf32, #tpu.memory_space<vmem>>, vector<1x1x1x6x6xf32>
    %38 = vector.shape_cast %37 : vector<1x1x1x6x6xf32> to vector<6x6xf32>
    %c0_73 = arith.constant 0 : index
    %c66 = arith.constant 66 : index
    %39 = vector.load %arg11[%c0_73, %c66] : memref<64x96xf32, #tpu.memory_space<vmem>>, vector<6x6xf32>
    tpu.vector_store %arg11[%c0_73, %c66], %38 {strides = array<i32>} : memref<64x96xf32, #tpu.memory_space<vmem>>, vector<6x6xf32>,
    %c0_74 = arith.constant 0 : index
    %c0_75 = arith.constant 0 : index
    %c0_76 = arith.constant 0 : index
    %c1_77 = arith.constant 1 : index
    %c0_78 = arith.constant 0 : index
    %40 = vector.load %arg1[%c0_74, %c0_75, %c0_76, %c1_77, %c0_78] : memref<1x4x2x7x7xf32, #tpu.memory_space<vmem>>, vector<1x1x1x6x6xf32>
    %41 = vector.shape_cast %40 : vector<1x1x1x6x6xf32> to vector<6x6xf32>
    %c0_79 = arith.constant 0 : index
    %c72 = arith.constant 72 : index
    %42 = vector.load %arg11[%c0_79, %c72] : memref<64x96xf32, #tpu.memory_space<vmem>>, vector<6x6xf32>
    tpu.vector_store %arg11[%c0_79, %c72], %41 {strides = array<i32>} : memref<64x96xf32, #tpu.memory_space<vmem>>, vector<6x6xf32>,
    %c0_80 = arith.constant 0 : index
    %c0_81 = arith.constant 0 : index
    %c1_82 = arith.constant 1 : index
    %c1_83 = arith.constant 1 : index
    %c0_84 = arith.constant 0 : index
    %43 = vector.load %arg1[%c0_80, %c0_81, %c1_82, %c1_83, %c0_84] : memref<1x4x2x7x7xf32, #tpu.memory_space<vmem>>, vector<1x1x1x6x6xf32>
    %44 = vector.shape_cast %43 : vector<1x1x1x6x6xf32> to vector<6x6xf32>
    %c0_85 = arith.constant 0 : index
    %c78 = arith.constant 78 : index
    %45 = vector.load %arg11[%c0_85, %c78] : memref<64x96xf32, #tpu.memory_space<vmem>>, vector<6x6xf32>
    tpu.vector_store %arg11[%c0_85, %c78], %44 {strides = array<i32>} : memref<64x96xf32, #tpu.memory_space<vmem>>, vector<6x6xf32>,
    %c0_86 = arith.constant 0 : index
    %c0_87 = arith.constant 0 : index
    %c0_88 = arith.constant 0 : index
    %c1_89 = arith.constant 1 : index
    %c1_90 = arith.constant 1 : index
    %46 = vector.load %arg1[%c0_86, %c0_87, %c0_88, %c1_89, %c1_90] : memref<1x4x2x7x7xf32, #tpu.memory_space<vmem>>, vector<1x1x1x6x6xf32>
    %47 = vector.shape_cast %46 : vector<1x1x1x6x6xf32> to vector<6x6xf32>
    %c0_91 = arith.constant 0 : index
    %c84 = arith.constant 84 : index
    %48 = vector.load %arg11[%c0_91, %c84] : memref<64x96xf32, #tpu.memory_space<vmem>>, vector<6x6xf32>
    tpu.vector_store %arg11[%c0_91, %c84], %47 {strides = array<i32>} : memref<64x96xf32, #tpu.memory_space<vmem>>, vector<6x6xf32>,
    %c8 = arith.constant 8 : index
    %c0_92 = arith.constant 0 : index
    %49 = vector.load %arg11[%c8, %c0_92] : memref<64x96xf32, #tpu.memory_space<vmem>>, vector<6x6xf32>
    tpu.vector_store %arg11[%c8, %c0_92], %8 {strides = array<i32>} : memref<64x96xf32, #tpu.memory_space<vmem>>, vector<6x6xf32>,
    %c8_93 = arith.constant 8 : index
    %c6_94 = arith.constant 6 : index
    %50 = vector.load %arg11[%c8_93, %c6_94] : memref<64x96xf32, #tpu.memory_space<vmem>>, vector<6x6xf32>
    tpu.vector_store %arg11[%c8_93, %c6_94], %11 {strides = array<i32>} : memref<64x96xf32, #tpu.memory_space<vmem>>, vector<6x6xf32>,
    %c0_95 = arith.constant 0 : index
    %c0_96 = arith.constant 0 : index
    %c1_97 = arith.constant 1 : index
    %c0_98 = arith.constant 0 : index
    %c1_99 = arith.constant 1 : index
    %51 = vector.load %arg1[%c0_95, %c0_96, %c1_97, %c0_98, %c1_99] : memref<1x4x2x7x7xf32, #tpu.memory_space<vmem>>, vector<1x1x1x6x6xf32>
    %52 = vector.shape_cast %51 : vector<1x1x1x6x6xf32> to vector<6x6xf32>
    %c8_100 = arith.constant 8 : index
    %c12_101 = arith.constant 12 : index
    %53 = vector.load %arg11[%c8_100, %c12_101] : memref<64x96xf32, #tpu.memory_space<vmem>>, vector<6x6xf32>
    tpu.vector_store %arg11[%c8_100, %c12_101], %52 {strides = array<i32>} : memref<64x96xf32, #tpu.memory_space<vmem>>, vector<6x6xf32>,
    %c8_102 = arith.constant 8 : index
    %c18_103 = arith.constant 18 : index
    %54 = vector.load %arg11[%c8_102, %c18_103] : memref<64x96xf32, #tpu.memory_space<vmem>>, vector<6x6xf32>
    tpu.vector_store %arg11[%c8_102, %c18_103], %17 {strides = array<i32>} : memref<64x96xf32, #tpu.memory_space<vmem>>, vector<6x6xf32>,
    %c8_104 = arith.constant 8 : index
    %c24_105 = arith.constant 24 : index
    %55 = vector.load %arg11[%c8_104, %c24_105] : memref<64x96xf32, #tpu.memory_space<vmem>>, vector<6x6xf32>
    tpu.vector_store %arg11[%c8_104, %c24_105], %20 {strides = array<i32>} : memref<64x96xf32, #tpu.memory_space<vmem>>, vector<6x6xf32>,
    %c0_106 = arith.constant 0 : index
    %c1_107 = arith.constant 1 : index
    %c1_108 = arith.constant 1 : index
    %c0_109 = arith.constant 0 : index
    %c1_110 = arith.constant 1 : index
    %56 = vector.load %arg1[%c0_106, %c1_107, %c1_108, %c0_109, %c1_110] : memref<1x4x2x7x7xf32, #tpu.memory_space<vmem>>, vector<1x1x1x6x6xf32>
    %57 = vector.shape_cast %56 : vector<1x1x1x6x6xf32> to vector<6x6xf32>
    %c8_111 = arith.constant 8 : index
    %c30_112 = arith.constant 30 : index
    %58 = vector.load %arg11[%c8_111, %c30_112] : memref<64x96xf32, #tpu.memory_space<vmem>>, vector<6x6xf32>
    tpu.vector_store %arg11[%c8_111, %c30_112], %57 {strides = array<i32>} : memref<64x96xf32, #tpu.memory_space<vmem>>, vector<6x6xf32>,
    %c8_113 = arith.constant 8 : index
    %c36_114 = arith.constant 36 : index
    %59 = vector.load %arg11[%c8_113, %c36_114] : memref<64x96xf32, #tpu.memory_space<vmem>>, vector<6x6xf32>
    tpu.vector_store %arg11[%c8_113, %c36_114], %26 {strides = array<i32>} : memref<64x96xf32, #tpu.memory_space<vmem>>, vector<6x6xf32>,
    %c8_115 = arith.constant 8 : index
    %c42_116 = arith.constant 42 : index
    %60 = vector.load %arg11[%c8_115, %c42_116] : memref<64x96xf32, #tpu.memory_space<vmem>>, vector<6x6xf32>
    tpu.vector_store %arg11[%c8_115, %c42_116], %29 {strides = array<i32>} : memref<64x96xf32, #tpu.memory_space<vmem>>, vector<6x6xf32>,
    %c0_117 = arith.constant 0 : index
    %c2_118 = arith.constant 2 : index
    %c1_119 = arith.constant 1 : index
    %c0_120 = arith.constant 0 : index
    %c1_121 = arith.constant 1 : index
    %61 = vector.load %arg1[%c0_117, %c2_118, %c1_119, %c0_120, %c1_121] : memref<1x4x2x7x7xf32, #tpu.memory_space<vmem>>, vector<1x1x1x6x6xf32>
    %62 = vector.shape_cast %61 : vector<1x1x1x6x6xf32> to vector<6x6xf32>
    %c8_122 = arith.constant 8 : index
    %c48_123 = arith.constant 48 : index
    %63 = vector.load %arg11[%c8_122, %c48_123] : memref<64x96xf32, #tpu.memory_space<vmem>>, vector<6x6xf32>
    tpu.vector_store %arg11[%c8_122, %c48_123], %62 {strides = array<i32>} : memref<64x96xf32, #tpu.memory_space<vmem>>, vector<6x6xf32>,
    %c8_124 = arith.constant 8 : index
    %c54_125 = arith.constant 54 : index
    %64 = vector.load %arg11[%c8_124, %c54_125] : memref<64x96xf32, #tpu.memory_space<vmem>>, vector<6x6xf32>
    tpu.vector_store %arg11[%c8_124, %c54_125], %35 {strides = array<i32>} : memref<64x96xf32, #tpu.memory_space<vmem>>, vector<6x6xf32>,
    %c8_126 = arith.constant 8 : index
    %c60_127 = arith.constant 60 : index
    %65 = vector.load %arg11[%c8_126, %c60_127] : memref<64x96xf32, #tpu.memory_space<vmem>>, vector<6x6xf32>
    tpu.vector_store %arg11[%c8_126, %c60_127], %38 {strides = array<i32>} : memref<64x96xf32, #tpu.memory_space<vmem>>, vector<6x6xf32>,
    %c0_128 = arith.constant 0 : index
    %c3_129 = arith.constant 3 : index
    %c1_130 = arith.constant 1 : index
    %c0_131 = arith.constant 0 : index
    %c1_132 = arith.constant 1 : index
    %66 = vector.load %arg1[%c0_128, %c3_129, %c1_130, %c0_131, %c1_132] : memref<1x4x2x7x7xf32, #tpu.memory_space<vmem>>, vector<1x1x1x6x6xf32>
    %67 = vector.shape_cast %66 : vector<1x1x1x6x6xf32> to vector<6x6xf32>
    %c8_133 = arith.constant 8 : index
    %c66_134 = arith.constant 66 : index
    %68 = vector.load %arg11[%c8_133, %c66_134] : memref<64x96xf32, #tpu.memory_space<vmem>>, vector<6x6xf32>
    tpu.vector_store %arg11[%c8_133, %c66_134], %67 {strides = array<i32>} : memref<64x96xf32, #tpu.memory_space<vmem>>, vector<6x6xf32>,
    %c8_135 = arith.constant 8 : index
    %c72_136 = arith.constant 72 : index
    %69 = vector.load %arg11[%c8_135, %c72_136] : memref<64x96xf32, #tpu.memory_space<vmem>>, vector<6x6xf32>
    tpu.vector_store %arg11[%c8_135, %c72_136], %44 {strides = array<i32>} : memref<64x96xf32, #tpu.memory_space<vmem>>, vector<6x6xf32>,
    %c8_137 = arith.constant 8 : index
    %c78_138 = arith.constant 78 : index
    %70 = vector.load %arg11[%c8_137, %c78_138] : memref<64x96xf32, #tpu.memory_space<vmem>>, vector<6x6xf32>
    tpu.vector_store %arg11[%c8_137, %c78_138], %47 {strides = array<i32>} : memref<64x96xf32, #tpu.memory_space<vmem>>, vector<6x6xf32>,
    %c0_139 = arith.constant 0 : index
    %c0_140 = arith.constant 0 : index
    %c1_141 = arith.constant 1 : index
    %c1_142 = arith.constant 1 : index
    %c1_143 = arith.constant 1 : index
    %71 = vector.load %arg1[%c0_139, %c0_140, %c1_141, %c1_142, %c1_143] : memref<1x4x2x7x7xf32, #tpu.memory_space<vmem>>, vector<1x1x1x6x6xf32>
    %72 = vector.shape_cast %71 : vector<1x1x1x6x6xf32> to vector<6x6xf32>
    %c8_144 = arith.constant 8 : index
    %c84_145 = arith.constant 84 : index
    %73 = vector.load %arg11[%c8_144, %c84_145] : memref<64x96xf32, #tpu.memory_space<vmem>>, vector<6x6xf32>
    tpu.vector_store %arg11[%c8_144, %c84_145], %72 {strides = array<i32>} : memref<64x96xf32, #tpu.memory_space<vmem>>, vector<6x6xf32>,
    %c16 = arith.constant 16 : index
    %c0_146 = arith.constant 0 : index
    %74 = vector.load %arg11[%c16, %c0_146] : memref<64x96xf32, #tpu.memory_space<vmem>>, vector<6x6xf32>
    tpu.vector_store %arg11[%c16, %c0_146], %14 {strides = array<i32>} : memref<64x96xf32, #tpu.memory_space<vmem>>, vector<6x6xf32>,
    %c16_147 = arith.constant 16 : index
    %c6_148 = arith.constant 6 : index
    %75 = vector.load %arg11[%c16_147, %c6_148] : memref<64x96xf32, #tpu.memory_space<vmem>>, vector<6x6xf32>
    tpu.vector_store %arg11[%c16_147, %c6_148], %17 {strides = array<i32>} : memref<64x96xf32, #tpu.memory_space<vmem>>, vector<6x6xf32>,
    %c16_149 = arith.constant 16 : index
    %c12_150 = arith.constant 12 : index
    %76 = vector.load %arg11[%c16_149, %c12_150] : memref<64x96xf32, #tpu.memory_space<vmem>>, vector<6x6xf32>
    tpu.vector_store %arg11[%c16_149, %c12_150], %20 {strides = array<i32>} : memref<64x96xf32, #tpu.memory_space<vmem>>, vector<6x6xf32>,
    %c16_151 = arith.constant 16 : index
    %c18_152 = arith.constant 18 : index
    %77 = vector.load %arg11[%c16_151, %c18_152] : memref<64x96xf32, #tpu.memory_space<vmem>>, vector<6x6xf32>
    tpu.vector_store %arg11[%c16_151, %c18_152], %23 {strides = array<i32>} : memref<64x96xf32, #tpu.memory_space<vmem>>, vector<6x6xf32>,
    %c16_153 = arith.constant 16 : index
    %c24_154 = arith.constant 24 : index
    %78 = vector.load %arg11[%c16_153, %c24_154] : memref<64x96xf32, #tpu.memory_space<vmem>>, vector<6x6xf32>
    tpu.vector_store %arg11[%c16_153, %c24_154], %26 {strides = array<i32>} : memref<64x96xf32, #tpu.memory_space<vmem>>, vector<6x6xf32>,
    %c16_155 = arith.constant 16 : index
    %c30_156 = arith.constant 30 : index
    %79 = vector.load %arg11[%c16_155, %c30_156] : memref<64x96xf32, #tpu.memory_space<vmem>>, vector<6x6xf32>
    tpu.vector_store %arg11[%c16_155, %c30_156], %29 {strides = array<i32>} : memref<64x96xf32, #tpu.memory_space<vmem>>, vector<6x6xf32>,
    %c16_157 = arith.constant 16 : index
    %c36_158 = arith.constant 36 : index
    %80 = vector.load %arg11[%c16_157, %c36_158] : memref<64x96xf32, #tpu.memory_space<vmem>>, vector<6x6xf32>
    tpu.vector_store %arg11[%c16_157, %c36_158], %32 {strides = array<i32>} : memref<64x96xf32, #tpu.memory_space<vmem>>, vector<6x6xf32>,
    %c16_159 = arith.constant 16 : index
    %c42_160 = arith.constant 42 : index
    %81 = vector.load %arg11[%c16_159, %c42_160] : memref<64x96xf32, #tpu.memory_space<vmem>>, vector<6x6xf32>
    tpu.vector_store %arg11[%c16_159, %c42_160], %35 {strides = array<i32>} : memref<64x96xf32, #tpu.memory_space<vmem>>, vector<6x6xf32>,
    %c16_161 = arith.constant 16 : index
    %c48_162 = arith.constant 48 : index
    %82 = vector.load %arg11[%c16_161, %c48_162] : memref<64x96xf32, #tpu.memory_space<vmem>>, vector<6x6xf32>
    tpu.vector_store %arg11[%c16_161, %c48_162], %38 {strides = array<i32>} : memref<64x96xf32, #tpu.memory_space<vmem>>, vector<6x6xf32>,
    %c16_163 = arith.constant 16 : index
    %c54_164 = arith.constant 54 : index
    %83 = vector.load %arg11[%c16_163, %c54_164] : memref<64x96xf32, #tpu.memory_space<vmem>>, vector<6x6xf32>
    tpu.vector_store %arg11[%c16_163, %c54_164], %41 {strides = array<i32>} : memref<64x96xf32, #tpu.memory_space<vmem>>, vector<6x6xf32>,
    %c16_165 = arith.constant 16 : index
    %c60_166 = arith.constant 60 : index
    %84 = vector.load %arg11[%c16_165, %c60_166] : memref<64x96xf32, #tpu.memory_space<vmem>>, vector<6x6xf32>
    tpu.vector_store %arg11[%c16_165, %c60_166], %44 {strides = array<i32>} : memref<64x96xf32, #tpu.memory_space<vmem>>, vector<6x6xf32>,
    %c16_167 = arith.constant 16 : index
    %c66_168 = arith.constant 66 : index
    %85 = vector.load %arg11[%c16_167, %c66_168] : memref<64x96xf32, #tpu.memory_space<vmem>>, vector<6x6xf32>
    tpu.vector_store %arg11[%c16_167, %c66_168], %47 {strides = array<i32>} : memref<64x96xf32, #tpu.memory_space<vmem>>, vector<6x6xf32>,
    %c0_169 = arith.constant 0 : index
    %c1_170 = arith.constant 1 : index
    %c0_171 = arith.constant 0 : index
    %c1_172 = arith.constant 1 : index
    %c0_173 = arith.constant 0 : index
    %86 = vector.load %arg1[%c0_169, %c1_170, %c0_171, %c1_172, %c0_173] : memref<1x4x2x7x7xf32, #tpu.memory_space<vmem>>, vector<1x1x1x6x6xf32>
    %87 = vector.shape_cast %86 : vector<1x1x1x6x6xf32> to vector<6x6xf32>
    %c16_174 = arith.constant 16 : index
    %c72_175 = arith.constant 72 : index
    %88 = vector.load %arg11[%c16_174, %c72_175] : memref<64x96xf32, #tpu.memory_space<vmem>>, vector<6x6xf32>
    tpu.vector_store %arg11[%c16_174, %c72_175], %87 {strides = array<i32>} : memref<64x96xf32, #tpu.memory_space<vmem>>, vector<6x6xf32>,
    %c0_176 = arith.constant 0 : index
    %c1_177 = arith.constant 1 : index
    %c1_178 = arith.constant 1 : index
    %c1_179 = arith.constant 1 : index
    %c0_180 = arith.constant 0 : index
    %89 = vector.load %arg1[%c0_176, %c1_177, %c1_178, %c1_179, %c0_180] : memref<1x4x2x7x7xf32, #tpu.memory_space<vmem>>, vector<1x1x1x6x6xf32>
    %90 = vector.shape_cast %89 : vector<1x1x1x6x6xf32> to vector<6x6xf32>
    %c16_181 = arith.constant 16 : index
    %c78_182 = arith.constant 78 : index
    %91 = vector.load %arg11[%c16_181, %c78_182] : memref<64x96xf32, #tpu.memory_space<vmem>>, vector<6x6xf32>
    tpu.vector_store %arg11[%c16_181, %c78_182], %90 {strides = array<i32>} : memref<64x96xf32, #tpu.memory_space<vmem>>, vector<6x6xf32>,
    %c0_183 = arith.constant 0 : index
    %c1_184 = arith.constant 1 : index
    %c0_185 = arith.constant 0 : index
    %c1_186 = arith.constant 1 : index
    %c1_187 = arith.constant 1 : index
    %92 = vector.load %arg1[%c0_183, %c1_184, %c0_185, %c1_186, %c1_187] : memref<1x4x2x7x7xf32, #tpu.memory_space<vmem>>, vector<1x1x1x6x6xf32>
    %93 = vector.shape_cast %92 : vector<1x1x1x6x6xf32> to vector<6x6xf32>
    %c16_188 = arith.constant 16 : index
    %c84_189 = arith.constant 84 : index
    %94 = vector.load %arg11[%c16_188, %c84_189] : memref<64x96xf32, #tpu.memory_space<vmem>>, vector<6x6xf32>
    tpu.vector_store %arg11[%c16_188, %c84_189], %93 {strides = array<i32>} : memref<64x96xf32, #tpu.memory_space<vmem>>, vector<6x6xf32>,
    %c24_190 = arith.constant 24 : index
    %c0_191 = arith.constant 0 : index
    %95 = vector.load %arg11[%c24_190, %c0_191] : memref<64x96xf32, #tpu.memory_space<vmem>>, vector<6x6xf32>
    tpu.vector_store %arg11[%c24_190, %c0_191], %17 {strides = array<i32>} : memref<64x96xf32, #tpu.memory_space<vmem>>, vector<6x6xf32>,
    %c24_192 = arith.constant 24 : index
    %c6_193 = arith.constant 6 : index
    %96 = vector.load %arg11[%c24_192, %c6_193] : memref<64x96xf32, #tpu.memory_space<vmem>>, vector<6x6xf32>
    tpu.vector_store %arg11[%c24_192, %c6_193], %20 {strides = array<i32>} : memref<64x96xf32, #tpu.memory_space<vmem>>, vector<6x6xf32>,
    %c24_194 = arith.constant 24 : index
    %c12_195 = arith.constant 12 : index
    %97 = vector.load %arg11[%c24_194, %c12_195] : memref<64x96xf32, #tpu.memory_space<vmem>>, vector<6x6xf32>
    tpu.vector_store %arg11[%c24_194, %c12_195], %57 {strides = array<i32>} : memref<64x96xf32, #tpu.memory_space<vmem>>, vector<6x6xf32>,
    %c24_196 = arith.constant 24 : index
    %c18_197 = arith.constant 18 : index
    %98 = vector.load %arg11[%c24_196, %c18_197] : memref<64x96xf32, #tpu.memory_space<vmem>>, vector<6x6xf32>
    tpu.vector_store %arg11[%c24_196, %c18_197], %26 {strides = array<i32>} : memref<64x96xf32, #tpu.memory_space<vmem>>, vector<6x6xf32>,
    %c24_198 = arith.constant 24 : index
    %c24_199 = arith.constant 24 : index
    %99 = vector.load %arg11[%c24_198, %c24_199] : memref<64x96xf32, #tpu.memory_space<vmem>>, vector<6x6xf32>
    tpu.vector_store %arg11[%c24_198, %c24_199], %29 {strides = array<i32>} : memref<64x96xf32, #tpu.memory_space<vmem>>, vector<6x6xf32>,
    %c24_200 = arith.constant 24 : index
    %c30_201 = arith.constant 30 : index
    %100 = vector.load %arg11[%c24_200, %c30_201] : memref<64x96xf32, #tpu.memory_space<vmem>>, vector<6x6xf32>
    tpu.vector_store %arg11[%c24_200, %c30_201], %62 {strides = array<i32>} : memref<64x96xf32, #tpu.memory_space<vmem>>, vector<6x6xf32>,
    %c24_202 = arith.constant 24 : index
    %c36_203 = arith.constant 36 : index
    %101 = vector.load %arg11[%c24_202, %c36_203] : memref<64x96xf32, #tpu.memory_space<vmem>>, vector<6x6xf32>
    tpu.vector_store %arg11[%c24_202, %c36_203], %35 {strides = array<i32>} : memref<64x96xf32, #tpu.memory_space<vmem>>, vector<6x6xf32>,
    %c24_204 = arith.constant 24 : index
    %c42_205 = arith.constant 42 : index
    %102 = vector.load %arg11[%c24_204, %c42_205] : memref<64x96xf32, #tpu.memory_space<vmem>>, vector<6x6xf32>
    tpu.vector_store %arg11[%c24_204, %c42_205], %38 {strides = array<i32>} : memref<64x96xf32, #tpu.memory_space<vmem>>, vector<6x6xf32>,
    %c24_206 = arith.constant 24 : index
    %c48_207 = arith.constant 48 : index
    %103 = vector.load %arg11[%c24_206, %c48_207] : memref<64x96xf32, #tpu.memory_space<vmem>>, vector<6x6xf32>
    tpu.vector_store %arg11[%c24_206, %c48_207], %67 {strides = array<i32>} : memref<64x96xf32, #tpu.memory_space<vmem>>, vector<6x6xf32>,
    %c24_208 = arith.constant 24 : index
    %c54_209 = arith.constant 54 : index
    %104 = vector.load %arg11[%c24_208, %c54_209] : memref<64x96xf32, #tpu.memory_space<vmem>>, vector<6x6xf32>
    tpu.vector_store %arg11[%c24_208, %c54_209], %44 {strides = array<i32>} : memref<64x96xf32, #tpu.memory_space<vmem>>, vector<6x6xf32>,
    %c24_210 = arith.constant 24 : index
    %c60_211 = arith.constant 60 : index
    %105 = vector.load %arg11[%c24_210, %c60_211] : memref<64x96xf32, #tpu.memory_space<vmem>>, vector<6x6xf32>
    tpu.vector_store %arg11[%c24_210, %c60_211], %47 {strides = array<i32>} : memref<64x96xf32, #tpu.memory_space<vmem>>, vector<6x6xf32>,
    %c24_212 = arith.constant 24 : index
    %c66_213 = arith.constant 66 : index
    %106 = vector.load %arg11[%c24_212, %c66_213] : memref<64x96xf32, #tpu.memory_space<vmem>>, vector<6x6xf32>
    tpu.vector_store %arg11[%c24_212, %c66_213], %72 {strides = array<i32>} : memref<64x96xf32, #tpu.memory_space<vmem>>, vector<6x6xf32>,
    %c24_214 = arith.constant 24 : index
    %c72_215 = arith.constant 72 : index
    %107 = vector.load %arg11[%c24_214, %c72_215] : memref<64x96xf32, #tpu.memory_space<vmem>>, vector<6x6xf32>
    tpu.vector_store %arg11[%c24_214, %c72_215], %90 {strides = array<i32>} : memref<64x96xf32, #tpu.memory_space<vmem>>, vector<6x6xf32>,
    %c24_216 = arith.constant 24 : index
    %c78_217 = arith.constant 78 : index
    %108 = vector.load %arg11[%c24_216, %c78_217] : memref<64x96xf32, #tpu.memory_space<vmem>>, vector<6x6xf32>
    tpu.vector_store %arg11[%c24_216, %c78_217], %93 {strides = array<i32>} : memref<64x96xf32, #tpu.memory_space<vmem>>, vector<6x6xf32>,
    %c0_218 = arith.constant 0 : index
    %c1_219 = arith.constant 1 : index
    %c1_220 = arith.constant 1 : index
    %c1_221 = arith.constant 1 : index
    %c1_222 = arith.constant 1 : index
    %109 = vector.load %arg1[%c0_218, %c1_219, %c1_220, %c1_221, %c1_222] : memref<1x4x2x7x7xf32, #tpu.memory_space<vmem>>, vector<1x1x1x6x6xf32>
    %110 = vector.shape_cast %109 : vector<1x1x1x6x6xf32> to vector<6x6xf32>
    %c24_223 = arith.constant 24 : index
    %c84_224 = arith.constant 84 : index
    %111 = vector.load %arg11[%c24_223, %c84_224] : memref<64x96xf32, #tpu.memory_space<vmem>>, vector<6x6xf32>
    tpu.vector_store %arg11[%c24_223, %c84_224], %110 {strides = array<i32>} : memref<64x96xf32, #tpu.memory_space<vmem>>, vector<6x6xf32>,
    %c32 = arith.constant 32 : index
    %c0_225 = arith.constant 0 : index
    %112 = vector.load %arg11[%c32, %c0_225] : memref<64x96xf32, #tpu.memory_space<vmem>>, vector<6x6xf32>
    tpu.vector_store %arg11[%c32, %c0_225], %23 {strides = array<i32>} : memref<64x96xf32, #tpu.memory_space<vmem>>, vector<6x6xf32>,
    %c32_226 = arith.constant 32 : index
    %c6_227 = arith.constant 6 : index
    %113 = vector.load %arg11[%c32_226, %c6_227] : memref<64x96xf32, #tpu.memory_space<vmem>>, vector<6x6xf32>
    tpu.vector_store %arg11[%c32_226, %c6_227], %26 {strides = array<i32>} : memref<64x96xf32, #tpu.memory_space<vmem>>, vector<6x6xf32>,
    %c32_228 = arith.constant 32 : index
    %c12_229 = arith.constant 12 : index
    %114 = vector.load %arg11[%c32_228, %c12_229] : memref<64x96xf32, #tpu.memory_space<vmem>>, vector<6x6xf32>
    tpu.vector_store %arg11[%c32_228, %c12_229], %29 {strides = array<i32>} : memref<64x96xf32, #tpu.memory_space<vmem>>, vector<6x6xf32>,
    %c32_230 = arith.constant 32 : index
    %c18_231 = arith.constant 18 : index
    %115 = vector.load %arg11[%c32_230, %c18_231] : memref<64x96xf32, #tpu.memory_space<vmem>>, vector<6x6xf32>
    tpu.vector_store %arg11[%c32_230, %c18_231], %32 {strides = array<i32>} : memref<64x96xf32, #tpu.memory_space<vmem>>, vector<6x6xf32>,
    %c32_232 = arith.constant 32 : index
    %c24_233 = arith.constant 24 : index
    %116 = vector.load %arg11[%c32_232, %c24_233] : memref<64x96xf32, #tpu.memory_space<vmem>>, vector<6x6xf32>
    tpu.vector_store %arg11[%c32_232, %c24_233], %35 {strides = array<i32>} : memref<64x96xf32, #tpu.memory_space<vmem>>, vector<6x6xf32>,
    %c32_234 = arith.constant 32 : index
    %c30_235 = arith.constant 30 : index
    %117 = vector.load %arg11[%c32_234, %c30_235] : memref<64x96xf32, #tpu.memory_space<vmem>>, vector<6x6xf32>
    tpu.vector_store %arg11[%c32_234, %c30_235], %38 {strides = array<i32>} : memref<64x96xf32, #tpu.memory_space<vmem>>, vector<6x6xf32>,
    %c32_236 = arith.constant 32 : index
    %c36_237 = arith.constant 36 : index
    %118 = vector.load %arg11[%c32_236, %c36_237] : memref<64x96xf32, #tpu.memory_space<vmem>>, vector<6x6xf32>
    tpu.vector_store %arg11[%c32_236, %c36_237], %41 {strides = array<i32>} : memref<64x96xf32, #tpu.memory_space<vmem>>, vector<6x6xf32>,
    %c32_238 = arith.constant 32 : index
    %c42_239 = arith.constant 42 : index
    %119 = vector.load %arg11[%c32_238, %c42_239] : memref<64x96xf32, #tpu.memory_space<vmem>>, vector<6x6xf32>
    tpu.vector_store %arg11[%c32_238, %c42_239], %44 {strides = array<i32>} : memref<64x96xf32, #tpu.memory_space<vmem>>, vector<6x6xf32>,
    %c32_240 = arith.constant 32 : index
    %c48_241 = arith.constant 48 : index
    %120 = vector.load %arg11[%c32_240, %c48_241] : memref<64x96xf32, #tpu.memory_space<vmem>>, vector<6x6xf32>
    tpu.vector_store %arg11[%c32_240, %c48_241], %47 {strides = array<i32>} : memref<64x96xf32, #tpu.memory_space<vmem>>, vector<6x6xf32>,
    %c32_242 = arith.constant 32 : index
    %c54_243 = arith.constant 54 : index
    %121 = vector.load %arg11[%c32_242, %c54_243] : memref<64x96xf32, #tpu.memory_space<vmem>>, vector<6x6xf32>
    tpu.vector_store %arg11[%c32_242, %c54_243], %87 {strides = array<i32>} : memref<64x96xf32, #tpu.memory_space<vmem>>, vector<6x6xf32>,
    %c32_244 = arith.constant 32 : index
    %c60_245 = arith.constant 60 : index
    %122 = vector.load %arg11[%c32_244, %c60_245] : memref<64x96xf32, #tpu.memory_space<vmem>>, vector<6x6xf32>
    tpu.vector_store %arg11[%c32_244, %c60_245], %90 {strides = array<i32>} : memref<64x96xf32, #tpu.memory_space<vmem>>, vector<6x6xf32>,
    %c32_246 = arith.constant 32 : index
    %c66_247 = arith.constant 66 : index
    %123 = vector.load %arg11[%c32_246, %c66_247] : memref<64x96xf32, #tpu.memory_space<vmem>>, vector<6x6xf32>
    tpu.vector_store %arg11[%c32_246, %c66_247], %93 {strides = array<i32>} : memref<64x96xf32, #tpu.memory_space<vmem>>, vector<6x6xf32>,
    %c0_248 = arith.constant 0 : index
    %c2_249 = arith.constant 2 : index
    %c0_250 = arith.constant 0 : index
    %c1_251 = arith.constant 1 : index
    %c0_252 = arith.constant 0 : index
    %124 = vector.load %arg1[%c0_248, %c2_249, %c0_250, %c1_251, %c0_252] : memref<1x4x2x7x7xf32, #tpu.memory_space<vmem>>, vector<1x1x1x6x6xf32>
    %125 = vector.shape_cast %124 : vector<1x1x1x6x6xf32> to vector<6x6xf32>
    %c32_253 = arith.constant 32 : index
    %c72_254 = arith.constant 72 : index
    %126 = vector.load %arg11[%c32_253, %c72_254] : memref<64x96xf32, #tpu.memory_space<vmem>>, vector<6x6xf32>
    tpu.vector_store %arg11[%c32_253, %c72_254], %125 {strides = array<i32>} : memref<64x96xf32, #tpu.memory_space<vmem>>, vector<6x6xf32>,
    %c0_255 = arith.constant 0 : index
    %c2_256 = arith.constant 2 : index
    %c1_257 = arith.constant 1 : index
    %c1_258 = arith.constant 1 : index
    %c0_259 = arith.constant 0 : index
    %127 = vector.load %arg1[%c0_255, %c2_256, %c1_257, %c1_258, %c0_259] : memref<1x4x2x7x7xf32, #tpu.memory_space<vmem>>, vector<1x1x1x6x6xf32>
    %128 = vector.shape_cast %127 : vector<1x1x1x6x6xf32> to vector<6x6xf32>
    %c32_260 = arith.constant 32 : index
    %c78_261 = arith.constant 78 : index
    %129 = vector.load %arg11[%c32_260, %c78_261] : memref<64x96xf32, #tpu.memory_space<vmem>>, vector<6x6xf32>
    tpu.vector_store %arg11[%c32_260, %c78_261], %128 {strides = array<i32>} : memref<64x96xf32, #tpu.memory_space<vmem>>, vector<6x6xf32>,
    %c0_262 = arith.constant 0 : index
    %c2_263 = arith.constant 2 : index
    %c0_264 = arith.constant 0 : index
    %c1_265 = arith.constant 1 : index
    %c1_266 = arith.constant 1 : index
    %130 = vector.load %arg1[%c0_262, %c2_263, %c0_264, %c1_265, %c1_266] : memref<1x4x2x7x7xf32, #tpu.memory_space<vmem>>, vector<1x1x1x6x6xf32>
    %131 = vector.shape_cast %130 : vector<1x1x1x6x6xf32> to vector<6x6xf32>
    %c32_267 = arith.constant 32 : index
    %c84_268 = arith.constant 84 : index
    %132 = vector.load %arg11[%c32_267, %c84_268] : memref<64x96xf32, #tpu.memory_space<vmem>>, vector<6x6xf32>
    tpu.vector_store %arg11[%c32_267, %c84_268], %131 {strides = array<i32>} : memref<64x96xf32, #tpu.memory_space<vmem>>, vector<6x6xf32>,
    %c40 = arith.constant 40 : index
    %c0_269 = arith.constant 0 : index
    %133 = vector.load %arg11[%c40, %c0_269] : memref<64x96xf32, #tpu.memory_space<vmem>>, vector<6x6xf32>
    tpu.vector_store %arg11[%c40, %c0_269], %26 {strides = array<i32>} : memref<64x96xf32, #tpu.memory_space<vmem>>, vector<6x6xf32>,
    %c40_270 = arith.constant 40 : index
    %c6_271 = arith.constant 6 : index
    %134 = vector.load %arg11[%c40_270, %c6_271] : memref<64x96xf32, #tpu.memory_space<vmem>>, vector<6x6xf32>
    tpu.vector_store %arg11[%c40_270, %c6_271], %29 {strides = array<i32>} : memref<64x96xf32, #tpu.memory_space<vmem>>, vector<6x6xf32>,
    %c40_272 = arith.constant 40 : index
    %c12_273 = arith.constant 12 : index
    %135 = vector.load %arg11[%c40_272, %c12_273] : memref<64x96xf32, #tpu.memory_space<vmem>>, vector<6x6xf32>
    tpu.vector_store %arg11[%c40_272, %c12_273], %62 {strides = array<i32>} : memref<64x96xf32, #tpu.memory_space<vmem>>, vector<6x6xf32>,
    %c40_274 = arith.constant 40 : index
    %c18_275 = arith.constant 18 : index
    %136 = vector.load %arg11[%c40_274, %c18_275] : memref<64x96xf32, #tpu.memory_space<vmem>>, vector<6x6xf32>
    tpu.vector_store %arg11[%c40_274, %c18_275], %35 {strides = array<i32>} : memref<64x96xf32, #tpu.memory_space<vmem>>, vector<6x6xf32>,
    %c40_276 = arith.constant 40 : index
    %c24_277 = arith.constant 24 : index
    %137 = vector.load %arg11[%c40_276, %c24_277] : memref<64x96xf32, #tpu.memory_space<vmem>>, vector<6x6xf32>
    tpu.vector_store %arg11[%c40_276, %c24_277], %38 {strides = array<i32>} : memref<64x96xf32, #tpu.memory_space<vmem>>, vector<6x6xf32>,
    %c40_278 = arith.constant 40 : index
    %c30_279 = arith.constant 30 : index
    %138 = vector.load %arg11[%c40_278, %c30_279] : memref<64x96xf32, #tpu.memory_space<vmem>>, vector<6x6xf32>
    tpu.vector_store %arg11[%c40_278, %c30_279], %67 {strides = array<i32>} : memref<64x96xf32, #tpu.memory_space<vmem>>, vector<6x6xf32>,
    %c40_280 = arith.constant 40 : index
    %c36_281 = arith.constant 36 : index
    %139 = vector.load %arg11[%c40_280, %c36_281] : memref<64x96xf32, #tpu.memory_space<vmem>>, vector<6x6xf32>
    tpu.vector_store %arg11[%c40_280, %c36_281], %44 {strides = array<i32>} : memref<64x96xf32, #tpu.memory_space<vmem>>, vector<6x6xf32>,
    %c40_282 = arith.constant 40 : index
    %c42_283 = arith.constant 42 : index
    %140 = vector.load %arg11[%c40_282, %c42_283] : memref<64x96xf32, #tpu.memory_space<vmem>>, vector<6x6xf32>
    tpu.vector_store %arg11[%c40_282, %c42_283], %47 {strides = array<i32>} : memref<64x96xf32, #tpu.memory_space<vmem>>, vector<6x6xf32>,
    %c40_284 = arith.constant 40 : index
    %c48_285 = arith.constant 48 : index
    %141 = vector.load %arg11[%c40_284, %c48_285] : memref<64x96xf32, #tpu.memory_space<vmem>>, vector<6x6xf32>
    tpu.vector_store %arg11[%c40_284, %c48_285], %72 {strides = array<i32>} : memref<64x96xf32, #tpu.memory_space<vmem>>, vector<6x6xf32>,
    %c40_286 = arith.constant 40 : index
    %c54_287 = arith.constant 54 : index
    %142 = vector.load %arg11[%c40_286, %c54_287] : memref<64x96xf32, #tpu.memory_space<vmem>>, vector<6x6xf32>
    tpu.vector_store %arg11[%c40_286, %c54_287], %90 {strides = array<i32>} : memref<64x96xf32, #tpu.memory_space<vmem>>, vector<6x6xf32>,
    %c40_288 = arith.constant 40 : index
    %c60_289 = arith.constant 60 : index
    %143 = vector.load %arg11[%c40_288, %c60_289] : memref<64x96xf32, #tpu.memory_space<vmem>>, vector<6x6xf32>
    tpu.vector_store %arg11[%c40_288, %c60_289], %93 {strides = array<i32>} : memref<64x96xf32, #tpu.memory_space<vmem>>, vector<6x6xf32>,
    %c40_290 = arith.constant 40 : index
    %c66_291 = arith.constant 66 : index
    %144 = vector.load %arg11[%c40_290, %c66_291] : memref<64x96xf32, #tpu.memory_space<vmem>>, vector<6x6xf32>
    tpu.vector_store %arg11[%c40_290, %c66_291], %110 {strides = array<i32>} : memref<64x96xf32, #tpu.memory_space<vmem>>, vector<6x6xf32>,
    %c40_292 = arith.constant 40 : index
    %c72_293 = arith.constant 72 : index
    %145 = vector.load %arg11[%c40_292, %c72_293] : memref<64x96xf32, #tpu.memory_space<vmem>>, vector<6x6xf32>
    tpu.vector_store %arg11[%c40_292, %c72_293], %128 {strides = array<i32>} : memref<64x96xf32, #tpu.memory_space<vmem>>, vector<6x6xf32>,
    %c40_294 = arith.constant 40 : index
    %c78_295 = arith.constant 78 : index
    %146 = vector.load %arg11[%c40_294, %c78_295] : memref<64x96xf32, #tpu.memory_space<vmem>>, vector<6x6xf32>
    tpu.vector_store %arg11[%c40_294, %c78_295], %131 {strides = array<i32>} : memref<64x96xf32, #tpu.memory_space<vmem>>, vector<6x6xf32>,
    %c0_296 = arith.constant 0 : index
    %c2_297 = arith.constant 2 : index
    %c1_298 = arith.constant 1 : index
    %c1_299 = arith.constant 1 : index
    %c1_300 = arith.constant 1 : index
    %147 = vector.load %arg1[%c0_296, %c2_297, %c1_298, %c1_299, %c1_300] : memref<1x4x2x7x7xf32, #tpu.memory_space<vmem>>, vector<1x1x1x6x6xf32>
    %148 = vector.shape_cast %147 : vector<1x1x1x6x6xf32> to vector<6x6xf32>
    %c40_301 = arith.constant 40 : index
    %c84_302 = arith.constant 84 : index
    %149 = vector.load %arg11[%c40_301, %c84_302] : memref<64x96xf32, #tpu.memory_space<vmem>>, vector<6x6xf32>
    tpu.vector_store %arg11[%c40_301, %c84_302], %148 {strides = array<i32>} : memref<64x96xf32, #tpu.memory_space<vmem>>, vector<6x6xf32>,
    %c48_303 = arith.constant 48 : index
    %c0_304 = arith.constant 0 : index
    %150 = vector.load %arg11[%c48_303, %c0_304] : memref<64x96xf32, #tpu.memory_space<vmem>>, vector<6x6xf32>
    tpu.vector_store %arg11[%c48_303, %c0_304], %32 {strides = array<i32>} : memref<64x96xf32, #tpu.memory_space<vmem>>, vector<6x6xf32>,
    %c48_305 = arith.constant 48 : index
    %c6_306 = arith.constant 6 : index
    %151 = vector.load %arg11[%c48_305, %c6_306] : memref<64x96xf32, #tpu.memory_space<vmem>>, vector<6x6xf32>
    tpu.vector_store %arg11[%c48_305, %c6_306], %35 {strides = array<i32>} : memref<64x96xf32, #tpu.memory_space<vmem>>, vector<6x6xf32>,
    %c48_307 = arith.constant 48 : index
    %c12_308 = arith.constant 12 : index
    %152 = vector.load %arg11[%c48_307, %c12_308] : memref<64x96xf32, #tpu.memory_space<vmem>>, vector<6x6xf32>
    tpu.vector_store %arg11[%c48_307, %c12_308], %38 {strides = array<i32>} : memref<64x96xf32, #tpu.memory_space<vmem>>, vector<6x6xf32>,
    %c48_309 = arith.constant 48 : index
    %c18_310 = arith.constant 18 : index
    %153 = vector.load %arg11[%c48_309, %c18_310] : memref<64x96xf32, #tpu.memory_space<vmem>>, vector<6x6xf32>
    tpu.vector_store %arg11[%c48_309, %c18_310], %41 {strides = array<i32>} : memref<64x96xf32, #tpu.memory_space<vmem>>, vector<6x6xf32>,
    %c48_311 = arith.constant 48 : index
    %c24_312 = arith.constant 24 : index
    %154 = vector.load %arg11[%c48_311, %c24_312] : memref<64x96xf32, #tpu.memory_space<vmem>>, vector<6x6xf32>
    tpu.vector_store %arg11[%c48_311, %c24_312], %44 {strides = array<i32>} : memref<64x96xf32, #tpu.memory_space<vmem>>, vector<6x6xf32>,
    %c48_313 = arith.constant 48 : index
    %c30_314 = arith.constant 30 : index
    %155 = vector.load %arg11[%c48_313, %c30_314] : memref<64x96xf32, #tpu.memory_space<vmem>>, vector<6x6xf32>
    tpu.vector_store %arg11[%c48_313, %c30_314], %47 {strides = array<i32>} : memref<64x96xf32, #tpu.memory_space<vmem>>, vector<6x6xf32>,
    %c48_315 = arith.constant 48 : index
    %c36_316 = arith.constant 36 : index
    %156 = vector.load %arg11[%c48_315, %c36_316] : memref<64x96xf32, #tpu.memory_space<vmem>>, vector<6x6xf32>
    tpu.vector_store %arg11[%c48_315, %c36_316], %87 {strides = array<i32>} : memref<64x96xf32, #tpu.memory_space<vmem>>, vector<6x6xf32>,
    %c48_317 = arith.constant 48 : index
    %c42_318 = arith.constant 42 : index
    %157 = vector.load %arg11[%c48_317, %c42_318] : memref<64x96xf32, #tpu.memory_space<vmem>>, vector<6x6xf32>
    tpu.vector_store %arg11[%c48_317, %c42_318], %90 {strides = array<i32>} : memref<64x96xf32, #tpu.memory_space<vmem>>, vector<6x6xf32>,
    %c48_319 = arith.constant 48 : index
    %c48_320 = arith.constant 48 : index
    %158 = vector.load %arg11[%c48_319, %c48_320] : memref<64x96xf32, #tpu.memory_space<vmem>>, vector<6x6xf32>
    tpu.vector_store %arg11[%c48_319, %c48_320], %93 {strides = array<i32>} : memref<64x96xf32, #tpu.memory_space<vmem>>, vector<6x6xf32>,
    %c48_321 = arith.constant 48 : index
    %c54_322 = arith.constant 54 : index
    %159 = vector.load %arg11[%c48_321, %c54_322] : memref<64x96xf32, #tpu.memory_space<vmem>>, vector<6x6xf32>
    tpu.vector_store %arg11[%c48_321, %c54_322], %125 {strides = array<i32>} : memref<64x96xf32, #tpu.memory_space<vmem>>, vector<6x6xf32>,
    %c48_323 = arith.constant 48 : index
    %c60_324 = arith.constant 60 : index
    %160 = vector.load %arg11[%c48_323, %c60_324] : memref<64x96xf32, #tpu.memory_space<vmem>>, vector<6x6xf32>
    tpu.vector_store %arg11[%c48_323, %c60_324], %128 {strides = array<i32>} : memref<64x96xf32, #tpu.memory_space<vmem>>, vector<6x6xf32>,
    %c48_325 = arith.constant 48 : index
    %c66_326 = arith.constant 66 : index
    %161 = vector.load %arg11[%c48_325, %c66_326] : memref<64x96xf32, #tpu.memory_space<vmem>>, vector<6x6xf32>
    tpu.vector_store %arg11[%c48_325, %c66_326], %131 {strides = array<i32>} : memref<64x96xf32, #tpu.memory_space<vmem>>, vector<6x6xf32>,
    %c0_327 = arith.constant 0 : index
    %c3_328 = arith.constant 3 : index
    %c0_329 = arith.constant 0 : index
    %c1_330 = arith.constant 1 : index
    %c0_331 = arith.constant 0 : index
    %162 = vector.load %arg1[%c0_327, %c3_328, %c0_329, %c1_330, %c0_331] : memref<1x4x2x7x7xf32, #tpu.memory_space<vmem>>, vector<1x1x1x6x6xf32>
    %163 = vector.shape_cast %162 : vector<1x1x1x6x6xf32> to vector<6x6xf32>
    %c48_332 = arith.constant 48 : index
    %c72_333 = arith.constant 72 : index
    %164 = vector.load %arg11[%c48_332, %c72_333] : memref<64x96xf32, #tpu.memory_space<vmem>>, vector<6x6xf32>
    tpu.vector_store %arg11[%c48_332, %c72_333], %163 {strides = array<i32>} : memref<64x96xf32, #tpu.memory_space<vmem>>, vector<6x6xf32>,
    %c0_334 = arith.constant 0 : index
    %c3_335 = arith.constant 3 : index
    %c1_336 = arith.constant 1 : index
    %c1_337 = arith.constant 1 : index
    %c0_338 = arith.constant 0 : index
    %165 = vector.load %arg1[%c0_334, %c3_335, %c1_336, %c1_337, %c0_338] : memref<1x4x2x7x7xf32, #tpu.memory_space<vmem>>, vector<1x1x1x6x6xf32>
    %166 = vector.shape_cast %165 : vector<1x1x1x6x6xf32> to vector<6x6xf32>
    %c48_339 = arith.constant 48 : index
    %c78_340 = arith.constant 78 : index
    %167 = vector.load %arg11[%c48_339, %c78_340] : memref<64x96xf32, #tpu.memory_space<vmem>>, vector<6x6xf32>
    tpu.vector_store %arg11[%c48_339, %c78_340], %166 {strides = array<i32>} : memref<64x96xf32, #tpu.memory_space<vmem>>, vector<6x6xf32>,
    %c0_341 = arith.constant 0 : index
    %c3_342 = arith.constant 3 : index
    %c0_343 = arith.constant 0 : index
    %c1_344 = arith.constant 1 : index
    %c1_345 = arith.constant 1 : index
    %168 = vector.load %arg1[%c0_341, %c3_342, %c0_343, %c1_344, %c1_345] : memref<1x4x2x7x7xf32, #tpu.memory_space<vmem>>, vector<1x1x1x6x6xf32>
    %169 = vector.shape_cast %168 : vector<1x1x1x6x6xf32> to vector<6x6xf32>
    %c48_346 = arith.constant 48 : index
    %c84_347 = arith.constant 84 : index
    %170 = vector.load %arg11[%c48_346, %c84_347] : memref<64x96xf32, #tpu.memory_space<vmem>>, vector<6x6xf32>
    tpu.vector_store %arg11[%c48_346, %c84_347], %169 {strides = array<i32>} : memref<64x96xf32, #tpu.memory_space<vmem>>, vector<6x6xf32>,
    %c56 = arith.constant 56 : index
    %c0_348 = arith.constant 0 : index
    %171 = vector.load %arg11[%c56, %c0_348] : memref<64x96xf32, #tpu.memory_space<vmem>>, vector<6x6xf32>
    tpu.vector_store %arg11[%c56, %c0_348], %35 {strides = array<i32>} : memref<64x96xf32, #tpu.memory_space<vmem>>, vector<6x6xf32>,
    %c56_349 = arith.constant 56 : index
    %c6_350 = arith.constant 6 : index
    %172 = vector.load %arg11[%c56_349, %c6_350] : memref<64x96xf32, #tpu.memory_space<vmem>>, vector<6x6xf32>
    tpu.vector_store %arg11[%c56_349, %c6_350], %38 {strides = array<i32>} : memref<64x96xf32, #tpu.memory_space<vmem>>, vector<6x6xf32>,
    %c56_351 = arith.constant 56 : index
    %c12_352 = arith.constant 12 : index
    %173 = vector.load %arg11[%c56_351, %c12_352] : memref<64x96xf32, #tpu.memory_space<vmem>>, vector<6x6xf32>
    tpu.vector_store %arg11[%c56_351, %c12_352], %67 {strides = array<i32>} : memref<64x96xf32, #tpu.memory_space<vmem>>, vector<6x6xf32>,
    %c56_353 = arith.constant 56 : index
    %c18_354 = arith.constant 18 : index
    %174 = vector.load %arg11[%c56_353, %c18_354] : memref<64x96xf32, #tpu.memory_space<vmem>>, vector<6x6xf32>
    tpu.vector_store %arg11[%c56_353, %c18_354], %44 {strides = array<i32>} : memref<64x96xf32, #tpu.memory_space<vmem>>, vector<6x6xf32>,
    %c56_355 = arith.constant 56 : index
    %c24_356 = arith.constant 24 : index
    %175 = vector.load %arg11[%c56_355, %c24_356] : memref<64x96xf32, #tpu.memory_space<vmem>>, vector<6x6xf32>
    tpu.vector_store %arg11[%c56_355, %c24_356], %47 {strides = array<i32>} : memref<64x96xf32, #tpu.memory_space<vmem>>, vector<6x6xf32>,
    %c56_357 = arith.constant 56 : index
    %c30_358 = arith.constant 30 : index
    %176 = vector.load %arg11[%c56_357, %c30_358] : memref<64x96xf32, #tpu.memory_space<vmem>>, vector<6x6xf32>
    tpu.vector_store %arg11[%c56_357, %c30_358], %72 {strides = array<i32>} : memref<64x96xf32, #tpu.memory_space<vmem>>, vector<6x6xf32>,
    %c56_359 = arith.constant 56 : index
    %c36_360 = arith.constant 36 : index
    %177 = vector.load %arg11[%c56_359, %c36_360] : memref<64x96xf32, #tpu.memory_space<vmem>>, vector<6x6xf32>
    tpu.vector_store %arg11[%c56_359, %c36_360], %90 {strides = array<i32>} : memref<64x96xf32, #tpu.memory_space<vmem>>, vector<6x6xf32>,
    %c56_361 = arith.constant 56 : index
    %c42_362 = arith.constant 42 : index
    %178 = vector.load %arg11[%c56_361, %c42_362] : memref<64x96xf32, #tpu.memory_space<vmem>>, vector<6x6xf32>
    tpu.vector_store %arg11[%c56_361, %c42_362], %93 {strides = array<i32>} : memref<64x96xf32, #tpu.memory_space<vmem>>, vector<6x6xf32>,
    %c56_363 = arith.constant 56 : index
    %c48_364 = arith.constant 48 : index
    %179 = vector.load %arg11[%c56_363, %c48_364] : memref<64x96xf32, #tpu.memory_space<vmem>>, vector<6x6xf32>
    tpu.vector_store %arg11[%c56_363, %c48_364], %110 {strides = array<i32>} : memref<64x96xf32, #tpu.memory_space<vmem>>, vector<6x6xf32>,
    %c56_365 = arith.constant 56 : index
    %c54_366 = arith.constant 54 : index
    %180 = vector.load %arg11[%c56_365, %c54_366] : memref<64x96xf32, #tpu.memory_space<vmem>>, vector<6x6xf32>
    tpu.vector_store %arg11[%c56_365, %c54_366], %128 {strides = array<i32>} : memref<64x96xf32, #tpu.memory_space<vmem>>, vector<6x6xf32>,
    %c56_367 = arith.constant 56 : index
    %c60_368 = arith.constant 60 : index
    %181 = vector.load %arg11[%c56_367, %c60_368] : memref<64x96xf32, #tpu.memory_space<vmem>>, vector<6x6xf32>
    tpu.vector_store %arg11[%c56_367, %c60_368], %131 {strides = array<i32>} : memref<64x96xf32, #tpu.memory_space<vmem>>, vector<6x6xf32>,
    %c56_369 = arith.constant 56 : index
    %c66_370 = arith.constant 66 : index
    %182 = vector.load %arg11[%c56_369, %c66_370] : memref<64x96xf32, #tpu.memory_space<vmem>>, vector<6x6xf32>
    tpu.vector_store %arg11[%c56_369, %c66_370], %148 {strides = array<i32>} : memref<64x96xf32, #tpu.memory_space<vmem>>, vector<6x6xf32>,
    %c56_371 = arith.constant 56 : index
    %c72_372 = arith.constant 72 : index
    %183 = vector.load %arg11[%c56_371, %c72_372] : memref<64x96xf32, #tpu.memory_space<vmem>>, vector<6x6xf32>
    tpu.vector_store %arg11[%c56_371, %c72_372], %166 {strides = array<i32>} : memref<64x96xf32, #tpu.memory_space<vmem>>, vector<6x6xf32>,
    %c56_373 = arith.constant 56 : index
    %c78_374 = arith.constant 78 : index
    %184 = vector.load %arg11[%c56_373, %c78_374] : memref<64x96xf32, #tpu.memory_space<vmem>>, vector<6x6xf32>
    tpu.vector_store %arg11[%c56_373, %c78_374], %169 {strides = array<i32>} : memref<64x96xf32, #tpu.memory_space<vmem>>, vector<6x6xf32>,
    %c0_375 = arith.constant 0 : index
    %c3_376 = arith.constant 3 : index
    %c1_377 = arith.constant 1 : index
    %c1_378 = arith.constant 1 : index
    %c1_379 = arith.constant 1 : index
    %185 = vector.load %arg1[%c0_375, %c3_376, %c1_377, %c1_378, %c1_379] : memref<1x4x2x7x7xf32, #tpu.memory_space<vmem>>, vector<1x1x1x6x6xf32>
    %186 = vector.shape_cast %185 : vector<1x1x1x6x6xf32> to vector<6x6xf32>
    %c56_380 = arith.constant 56 : index
    %c84_381 = arith.constant 84 : index
    %187 = vector.load %arg11[%c56_380, %c84_381] : memref<64x96xf32, #tpu.memory_space<vmem>>, vector<6x6xf32>
    tpu.vector_store %arg11[%c56_380, %c84_381], %186 {strides = array<i32>} : memref<64x96xf32, #tpu.memory_space<vmem>>, vector<6x6xf32>,
    %c0_382 = arith.constant 0 : index
    %c0_383 = arith.constant 0 : index
    %188 = vector.load %arg11[%c0_382, %c0_383] : memref<64x96xf32, #tpu.memory_space<vmem>>, vector<64x96xf32>
    %c0_384 = arith.constant 0 : index
    %c0_385 = arith.constant 0 : index
    %189 = vector.load %arg2[%c0_384, %c0_385] : memref<96x60xf32, #tpu.memory_space<vmem>>, vector<96x60xf32>
    %cst_386 = arith.constant dense<0.000000e+00> : vector<64x60xf32>
    %190 = tpu.matmul %188, %189, %cst_386 {dimension_numbers = #tpu.dot_dimension_numbers<[1], [0], [0], [1], [0, 0, 1, 1], [], []>} : vector<64x96xf32>, vector<96x60xf32>, vector<64x60xf32> -> vector<64x60xf32>
    %191 = vector.extract_strided_slice %190 {offsets = [0, 0], sizes = [6, 60], strides = [1, 1]} : vector<64x60xf32> to vector<6x60xf32>
    %192 = vector.extract_strided_slice %190 {offsets = [8, 0], sizes = [6, 60], strides = [1, 1]} : vector<64x60xf32> to vector<6x60xf32>
    %193 = arith.maximumf %191, %192 : vector<6x60xf32>
    %194 = vector.extract_strided_slice %190 {offsets = [16, 0], sizes = [6, 60], strides = [1, 1]} : vector<64x60xf32> to vector<6x60xf32>
    %195 = vector.extract_strided_slice %190 {offsets = [24, 0], sizes = [6, 60], strides = [1, 1]} : vector<64x60xf32> to vector<6x60xf32>
    %196 = arith.maximumf %194, %195 : vector<6x60xf32>
    %197 = arith.maximumf %193, %196 : vector<6x60xf32>
    %c0_387 = arith.constant 0 : index
    %c0_388 = arith.constant 0 : index
    %198 = vector.load %arg3[%c0_387, %c0_388] : memref<1x60xf32, #tpu.memory_space<vmem>>, vector<1x60xf32>
    %199 = vector.broadcast %198 : vector<1x60xf32> to vector<6x60xf32>
    %200 = arith.addf %197, %199 : vector<6x60xf32>
    %cst_389 = arith.constant 0.000000e+00 : f32
    %201 = vector.broadcast %cst_389 : f32 to vector<6x60xf32>
    %202 = arith.maximumf %200, %201 : vector<6x60xf32>
    %c0_390 = arith.constant 0 : index
    %c0_391 = arith.constant 0 : index
    %c0_392 = arith.constant 0 : index
    %203 = vector.load %arg12[%c0_390, %c0_391, %c0_392] : memref<2x8x60xf32, #tpu.memory_space<vmem>>, vector<1x6x60xf32>
    %204 = vector.shape_cast %203 : vector<1x6x60xf32> to vector<6x60xf32>
    %205 = vector.shape_cast %202 : vector<6x60xf32> to vector<1x6x60xf32>
    tpu.vector_store %arg12[%c0_390, %c0_391, %c0_392], %205 {strides = array<i32>} : memref<2x8x60xf32, #tpu.memory_space<vmem>>, vector<1x6x60xf32>,
    %206 = vector.extract_strided_slice %190 {offsets = [32, 0], sizes = [6, 60], strides = [1, 1]} : vector<64x60xf32> to vector<6x60xf32>
    %207 = vector.extract_strided_slice %190 {offsets = [40, 0], sizes = [6, 60], strides = [1, 1]} : vector<64x60xf32> to vector<6x60xf32>
    %208 = arith.maximumf %206, %207 : vector<6x60xf32>
    %209 = vector.extract_strided_slice %190 {offsets = [48, 0], sizes = [6, 60], strides = [1, 1]} : vector<64x60xf32> to vector<6x60xf32>
    %210 = vector.extract_strided_slice %190 {offsets = [56, 0], sizes = [6, 60], strides = [1, 1]} : vector<64x60xf32> to vector<6x60xf32>
    %211 = arith.maximumf %209, %210 : vector<6x60xf32>
    %212 = arith.maximumf %208, %211 : vector<6x60xf32>
    %c0_393 = arith.constant 0 : index
    %c0_394 = arith.constant 0 : index
    %213 = vector.load %arg3[%c0_393, %c0_394] : memref<1x60xf32, #tpu.memory_space<vmem>>, vector<1x60xf32>
    %214 = vector.broadcast %213 : vector<1x60xf32> to vector<6x60xf32>
    %215 = arith.addf %212, %214 : vector<6x60xf32>
    %cst_395 = arith.constant 0.000000e+00 : f32
    %216 = vector.broadcast %cst_395 : f32 to vector<6x60xf32>
    %217 = arith.maximumf %215, %216 : vector<6x60xf32>
    %c1_396 = arith.constant 1 : index
    %c0_397 = arith.constant 0 : index
    %c0_398 = arith.constant 0 : index
    %218 = vector.load %arg12[%c1_396, %c0_397, %c0_398] : memref<2x8x60xf32, #tpu.memory_space<vmem>>, vector<1x6x60xf32>
    %219 = vector.shape_cast %218 : vector<1x6x60xf32> to vector<6x60xf32>
    %220 = vector.shape_cast %217 : vector<6x60xf32> to vector<1x6x60xf32>
    tpu.vector_store %arg12[%c1_396, %c0_397, %c0_398], %220 {strides = array<i32>} : memref<2x8x60xf32, #tpu.memory_space<vmem>>, vector<1x6x60xf32>,
    %c0_399 = arith.constant 0 : index
    %c0_400 = arith.constant 0 : index
    %c0_401 = arith.constant 0 : index
    %221 = vector.load %arg12[%c0_399, %c0_400, %c0_401] : memref<2x8x60xf32, #tpu.memory_space<vmem>>, vector<1x4x50xf32>
    %222 = vector.shape_cast %221 : vector<1x4x50xf32> to vector<4x50xf32>
    %c0_402 = arith.constant 0 : index
    %c0_403 = arith.constant 0 : index
    %223 = vector.load %arg13[%c0_402, %c0_403] : memref<32x256xf32, #tpu.memory_space<vmem>>, vector<4x50xf32>
    tpu.vector_store %arg13[%c0_402, %c0_403], %222 {strides = array<i32>} : memref<32x256xf32, #tpu.memory_space<vmem>>, vector<4x50xf32>,
    %c1_404 = arith.constant 1 : index
    %c0_405 = arith.constant 0 : index
    %c0_406 = arith.constant 0 : index
    %224 = vector.load %arg12[%c1_404, %c0_405, %c0_406] : memref<2x8x60xf32, #tpu.memory_space<vmem>>, vector<1x4x50xf32>
    %225 = vector.shape_cast %224 : vector<1x4x50xf32> to vector<4x50xf32>
    %c0_407 = arith.constant 0 : index
    %c50 = arith.constant 50 : index
    %226 = vector.load %arg13[%c0_407, %c50] : memref<32x256xf32, #tpu.memory_space<vmem>>, vector<4x50xf32>
    tpu.vector_store %arg13[%c0_407, %c50], %225 {strides = array<i32>} : memref<32x256xf32, #tpu.memory_space<vmem>>, vector<4x50xf32>,
    %c0_408 = arith.constant 0 : index
    %c1_409 = arith.constant 1 : index
    %c0_410 = arith.constant 0 : index
    %227 = vector.load %arg12[%c0_408, %c1_409, %c0_410] : memref<2x8x60xf32, #tpu.memory_space<vmem>>, vector<1x4x50xf32>
    %228 = vector.shape_cast %227 : vector<1x4x50xf32> to vector<4x50xf32>
    %c0_411 = arith.constant 0 : index
    %c100 = arith.constant 100 : index
    %229 = vector.load %arg13[%c0_411, %c100] : memref<32x256xf32, #tpu.memory_space<vmem>>, vector<4x50xf32>
    tpu.vector_store %arg13[%c0_411, %c100], %228 {strides = array<i32>} : memref<32x256xf32, #tpu.memory_space<vmem>>, vector<4x50xf32>,
    %c1_412 = arith.constant 1 : index
    %c1_413 = arith.constant 1 : index
    %c0_414 = arith.constant 0 : index
    %230 = vector.load %arg12[%c1_412, %c1_413, %c0_414] : memref<2x8x60xf32, #tpu.memory_space<vmem>>, vector<1x4x50xf32>
    %231 = vector.shape_cast %230 : vector<1x4x50xf32> to vector<4x50xf32>
    %c0_415 = arith.constant 0 : index
    %c150 = arith.constant 150 : index
    %232 = vector.load %arg13[%c0_415, %c150] : memref<32x256xf32, #tpu.memory_space<vmem>>, vector<4x50xf32>
    tpu.vector_store %arg13[%c0_415, %c150], %231 {strides = array<i32>} : memref<32x256xf32, #tpu.memory_space<vmem>>, vector<4x50xf32>,
    %c0_416 = arith.constant 0 : index
    %c2_417 = arith.constant 2 : index
    %c0_418 = arith.constant 0 : index
    %233 = vector.load %arg12[%c0_416, %c2_417, %c0_418] : memref<2x8x60xf32, #tpu.memory_space<vmem>>, vector<1x4x50xf32>
    %234 = vector.shape_cast %233 : vector<1x4x50xf32> to vector<4x50xf32>
    %c0_419 = arith.constant 0 : index
    %c200 = arith.constant 200 : index
    %235 = vector.load %arg13[%c0_419, %c200] : memref<32x256xf32, #tpu.memory_space<vmem>>, vector<4x50xf32>
    tpu.vector_store %arg13[%c0_419, %c200], %234 {strides = array<i32>} : memref<32x256xf32, #tpu.memory_space<vmem>>, vector<4x50xf32>,
    %c0_420 = arith.constant 0 : index
    %c0_421 = arith.constant 0 : index
    %c10 = arith.constant 10 : index
    %236 = vector.load %arg12[%c0_420, %c0_421, %c10] : memref<2x8x60xf32, #tpu.memory_space<vmem>>, vector<1x4x50xf32>
    %237 = vector.shape_cast %236 : vector<1x4x50xf32> to vector<4x50xf32>
    %c8_422 = arith.constant 8 : index
    %c0_423 = arith.constant 0 : index
    %238 = vector.load %arg13[%c8_422, %c0_423] : memref<32x256xf32, #tpu.memory_space<vmem>>, vector<4x50xf32>
    tpu.vector_store %arg13[%c8_422, %c0_423], %237 {strides = array<i32>} : memref<32x256xf32, #tpu.memory_space<vmem>>, vector<4x50xf32>,
    %c1_424 = arith.constant 1 : index
    %c0_425 = arith.constant 0 : index
    %c10_426 = arith.constant 10 : index
    %239 = vector.load %arg12[%c1_424, %c0_425, %c10_426] : memref<2x8x60xf32, #tpu.memory_space<vmem>>, vector<1x4x50xf32>
    %240 = vector.shape_cast %239 : vector<1x4x50xf32> to vector<4x50xf32>
    %c8_427 = arith.constant 8 : index
    %c50_428 = arith.constant 50 : index
    %241 = vector.load %arg13[%c8_427, %c50_428] : memref<32x256xf32, #tpu.memory_space<vmem>>, vector<4x50xf32>
    tpu.vector_store %arg13[%c8_427, %c50_428], %240 {strides = array<i32>} : memref<32x256xf32, #tpu.memory_space<vmem>>, vector<4x50xf32>,
    %c0_429 = arith.constant 0 : index
    %c1_430 = arith.constant 1 : index
    %c10_431 = arith.constant 10 : index
    %242 = vector.load %arg12[%c0_429, %c1_430, %c10_431] : memref<2x8x60xf32, #tpu.memory_space<vmem>>, vector<1x4x50xf32>
    %243 = vector.shape_cast %242 : vector<1x4x50xf32> to vector<4x50xf32>
    %c8_432 = arith.constant 8 : index
    %c100_433 = arith.constant 100 : index
    %244 = vector.load %arg13[%c8_432, %c100_433] : memref<32x256xf32, #tpu.memory_space<vmem>>, vector<4x50xf32>
    tpu.vector_store %arg13[%c8_432, %c100_433], %243 {strides = array<i32>} : memref<32x256xf32, #tpu.memory_space<vmem>>, vector<4x50xf32>,
    %c1_434 = arith.constant 1 : index
    %c1_435 = arith.constant 1 : index
    %c10_436 = arith.constant 10 : index
    %245 = vector.load %arg12[%c1_434, %c1_435, %c10_436] : memref<2x8x60xf32, #tpu.memory_space<vmem>>, vector<1x4x50xf32>
    %246 = vector.shape_cast %245 : vector<1x4x50xf32> to vector<4x50xf32>
    %c8_437 = arith.constant 8 : index
    %c150_438 = arith.constant 150 : index
    %247 = vector.load %arg13[%c8_437, %c150_438] : memref<32x256xf32, #tpu.memory_space<vmem>>, vector<4x50xf32>
    tpu.vector_store %arg13[%c8_437, %c150_438], %246 {strides = array<i32>} : memref<32x256xf32, #tpu.memory_space<vmem>>, vector<4x50xf32>,
    %c0_439 = arith.constant 0 : index
    %c2_440 = arith.constant 2 : index
    %c10_441 = arith.constant 10 : index
    %248 = vector.load %arg12[%c0_439, %c2_440, %c10_441] : memref<2x8x60xf32, #tpu.memory_space<vmem>>, vector<1x4x50xf32>
    %249 = vector.shape_cast %248 : vector<1x4x50xf32> to vector<4x50xf32>
    %c8_442 = arith.constant 8 : index
    %c200_443 = arith.constant 200 : index
    %250 = vector.load %arg13[%c8_442, %c200_443] : memref<32x256xf32, #tpu.memory_space<vmem>>, vector<4x50xf32>
    tpu.vector_store %arg13[%c8_442, %c200_443], %249 {strides = array<i32>} : memref<32x256xf32, #tpu.memory_space<vmem>>, vector<4x50xf32>,
    %c1_444 = arith.constant 1 : index
    %c0_445 = arith.constant 0 : index
    %c0_446 = arith.constant 0 : index
    %251 = vector.load %arg12[%c1_444, %c0_445, %c0_446] : memref<2x8x60xf32, #tpu.memory_space<vmem>>, vector<1x4x50xf32>
    %252 = vector.shape_cast %251 : vector<1x4x50xf32> to vector<4x50xf32>
    %c16_447 = arith.constant 16 : index
    %c0_448 = arith.constant 0 : index
    %253 = vector.load %arg13[%c16_447, %c0_448] : memref<32x256xf32, #tpu.memory_space<vmem>>, vector<4x50xf32>
    tpu.vector_store %arg13[%c16_447, %c0_448], %252 {strides = array<i32>} : memref<32x256xf32, #tpu.memory_space<vmem>>, vector<4x50xf32>,
    %c0_449 = arith.constant 0 : index
    %c1_450 = arith.constant 1 : index
    %c0_451 = arith.constant 0 : index
    %254 = vector.load %arg12[%c0_449, %c1_450, %c0_451] : memref<2x8x60xf32, #tpu.memory_space<vmem>>, vector<1x4x50xf32>
    %255 = vector.shape_cast %254 : vector<1x4x50xf32> to vector<4x50xf32>
    %c16_452 = arith.constant 16 : index
    %c50_453 = arith.constant 50 : index
    %256 = vector.load %arg13[%c16_452, %c50_453] : memref<32x256xf32, #tpu.memory_space<vmem>>, vector<4x50xf32>
    tpu.vector_store %arg13[%c16_452, %c50_453], %255 {strides = array<i32>} : memref<32x256xf32, #tpu.memory_space<vmem>>, vector<4x50xf32>,
    %c1_454 = arith.constant 1 : index
    %c1_455 = arith.constant 1 : index
    %c0_456 = arith.constant 0 : index
    %257 = vector.load %arg12[%c1_454, %c1_455, %c0_456] : memref<2x8x60xf32, #tpu.memory_space<vmem>>, vector<1x4x50xf32>
    %258 = vector.shape_cast %257 : vector<1x4x50xf32> to vector<4x50xf32>
    %c16_457 = arith.constant 16 : index
    %c100_458 = arith.constant 100 : index
    %259 = vector.load %arg13[%c16_457, %c100_458] : memref<32x256xf32, #tpu.memory_space<vmem>>, vector<4x50xf32>
    tpu.vector_store %arg13[%c16_457, %c100_458], %258 {strides = array<i32>} : memref<32x256xf32, #tpu.memory_space<vmem>>, vector<4x50xf32>,
    %c0_459 = arith.constant 0 : index
    %c2_460 = arith.constant 2 : index
    %c0_461 = arith.constant 0 : index
    %260 = vector.load %arg12[%c0_459, %c2_460, %c0_461] : memref<2x8x60xf32, #tpu.memory_space<vmem>>, vector<1x4x50xf32>
    %261 = vector.shape_cast %260 : vector<1x4x50xf32> to vector<4x50xf32>
    %c16_462 = arith.constant 16 : index
    %c150_463 = arith.constant 150 : index
    %262 = vector.load %arg13[%c16_462, %c150_463] : memref<32x256xf32, #tpu.memory_space<vmem>>, vector<4x50xf32>
    tpu.vector_store %arg13[%c16_462, %c150_463], %261 {strides = array<i32>} : memref<32x256xf32, #tpu.memory_space<vmem>>, vector<4x50xf32>,
    %c1_464 = arith.constant 1 : index
    %c2_465 = arith.constant 2 : index
    %c0_466 = arith.constant 0 : index
    %263 = vector.load %arg12[%c1_464, %c2_465, %c0_466] : memref<2x8x60xf32, #tpu.memory_space<vmem>>, vector<1x4x50xf32>
    %264 = vector.shape_cast %263 : vector<1x4x50xf32> to vector<4x50xf32>
    %c16_467 = arith.constant 16 : index
    %c200_468 = arith.constant 200 : index
    %265 = vector.load %arg13[%c16_467, %c200_468] : memref<32x256xf32, #tpu.memory_space<vmem>>, vector<4x50xf32>
    tpu.vector_store %arg13[%c16_467, %c200_468], %264 {strides = array<i32>} : memref<32x256xf32, #tpu.memory_space<vmem>>, vector<4x50xf32>,
    %c1_469 = arith.constant 1 : index
    %c0_470 = arith.constant 0 : index
    %c10_471 = arith.constant 10 : index
    %266 = vector.load %arg12[%c1_469, %c0_470, %c10_471] : memref<2x8x60xf32, #tpu.memory_space<vmem>>, vector<1x4x50xf32>
    %267 = vector.shape_cast %266 : vector<1x4x50xf32> to vector<4x50xf32>
    %c24_472 = arith.constant 24 : index
    %c0_473 = arith.constant 0 : index
    %268 = vector.load %arg13[%c24_472, %c0_473] : memref<32x256xf32, #tpu.memory_space<vmem>>, vector<4x50xf32>
    tpu.vector_store %arg13[%c24_472, %c0_473], %267 {strides = array<i32>} : memref<32x256xf32, #tpu.memory_space<vmem>>, vector<4x50xf32>,
    %c0_474 = arith.constant 0 : index
    %c1_475 = arith.constant 1 : index
    %c10_476 = arith.constant 10 : index
    %269 = vector.load %arg12[%c0_474, %c1_475, %c10_476] : memref<2x8x60xf32, #tpu.memory_space<vmem>>, vector<1x4x50xf32>
    %270 = vector.shape_cast %269 : vector<1x4x50xf32> to vector<4x50xf32>
    %c24_477 = arith.constant 24 : index
    %c50_478 = arith.constant 50 : index
    %271 = vector.load %arg13[%c24_477, %c50_478] : memref<32x256xf32, #tpu.memory_space<vmem>>, vector<4x50xf32>
    tpu.vector_store %arg13[%c24_477, %c50_478], %270 {strides = array<i32>} : memref<32x256xf32, #tpu.memory_space<vmem>>, vector<4x50xf32>,
    %c1_479 = arith.constant 1 : index
    %c1_480 = arith.constant 1 : index
    %c10_481 = arith.constant 10 : index
    %272 = vector.load %arg12[%c1_479, %c1_480, %c10_481] : memref<2x8x60xf32, #tpu.memory_space<vmem>>, vector<1x4x50xf32>
    %273 = vector.shape_cast %272 : vector<1x4x50xf32> to vector<4x50xf32>
    %c24_482 = arith.constant 24 : index
    %c100_483 = arith.constant 100 : index
    %274 = vector.load %arg13[%c24_482, %c100_483] : memref<32x256xf32, #tpu.memory_space<vmem>>, vector<4x50xf32>
    tpu.vector_store %arg13[%c24_482, %c100_483], %273 {strides = array<i32>} : memref<32x256xf32, #tpu.memory_space<vmem>>, vector<4x50xf32>,
    %c0_484 = arith.constant 0 : index
    %c2_485 = arith.constant 2 : index
    %c10_486 = arith.constant 10 : index
    %275 = vector.load %arg12[%c0_484, %c2_485, %c10_486] : memref<2x8x60xf32, #tpu.memory_space<vmem>>, vector<1x4x50xf32>
    %276 = vector.shape_cast %275 : vector<1x4x50xf32> to vector<4x50xf32>
    %c24_487 = arith.constant 24 : index
    %c150_488 = arith.constant 150 : index
    %277 = vector.load %arg13[%c24_487, %c150_488] : memref<32x256xf32, #tpu.memory_space<vmem>>, vector<4x50xf32>
    tpu.vector_store %arg13[%c24_487, %c150_488], %276 {strides = array<i32>} : memref<32x256xf32, #tpu.memory_space<vmem>>, vector<4x50xf32>,
    %c1_489 = arith.constant 1 : index
    %c2_490 = arith.constant 2 : index
    %c10_491 = arith.constant 10 : index
    %278 = vector.load %arg12[%c1_489, %c2_490, %c10_491] : memref<2x8x60xf32, #tpu.memory_space<vmem>>, vector<1x4x50xf32>
    %279 = vector.shape_cast %278 : vector<1x4x50xf32> to vector<4x50xf32>
    %c24_492 = arith.constant 24 : index
    %c200_493 = arith.constant 200 : index
    %280 = vector.load %arg13[%c24_492, %c200_493] : memref<32x256xf32, #tpu.memory_space<vmem>>, vector<4x50xf32>
    tpu.vector_store %arg13[%c24_492, %c200_493], %279 {strides = array<i32>} : memref<32x256xf32, #tpu.memory_space<vmem>>, vector<4x50xf32>,
    %c0_494 = arith.constant 0 : index
    %c0_495 = arith.constant 0 : index
    %281 = vector.load %arg13[%c0_494, %c0_495] : memref<32x256xf32, #tpu.memory_space<vmem>>, vector<32x256xf32>
    %c0_496 = arith.constant 0 : index
    %c0_497 = arith.constant 0 : index
    %282 = vector.load %arg4[%c0_496, %c0_497] : memref<256x20xf32, #tpu.memory_space<vmem>>, vector<256x20xf32>
    %cst_498 = arith.constant dense<0.000000e+00> : vector<32x20xf32>
    %283 = tpu.matmul %281, %282, %cst_498 {dimension_numbers = #tpu.dot_dimension_numbers<[1], [0], [0], [1], [0, 0, 1, 1], [], []>} : vector<32x256xf32>, vector<256x20xf32>, vector<32x20xf32> -> vector<32x20xf32>
    %284 = vector.extract_strided_slice %283 {offsets = [0, 0], sizes = [4, 20], strides = [1, 1]} : vector<32x20xf32> to vector<4x20xf32>
    %285 = vector.extract_strided_slice %283 {offsets = [8, 0], sizes = [4, 20], strides = [1, 1]} : vector<32x20xf32> to vector<4x20xf32>
    %286 = arith.maximumf %284, %285 : vector<4x20xf32>
    %287 = vector.extract_strided_slice %283 {offsets = [16, 0], sizes = [4, 20], strides = [1, 1]} : vector<32x20xf32> to vector<4x20xf32>
    %288 = vector.extract_strided_slice %283 {offsets = [24, 0], sizes = [4, 20], strides = [1, 1]} : vector<32x20xf32> to vector<4x20xf32>
    %289 = arith.maximumf %287, %288 : vector<4x20xf32>
    %290 = arith.maximumf %286, %289 : vector<4x20xf32>
    %c0_499 = arith.constant 0 : index
    %c0_500 = arith.constant 0 : index
    %291 = vector.load %arg5[%c0_499, %c0_500] : memref<1x20xf32, #tpu.memory_space<vmem>>, vector<1x20xf32>
    %292 = vector.broadcast %291 : vector<1x20xf32> to vector<4x20xf32>
    %293 = arith.addf %290, %292 : vector<4x20xf32>
    %cst_501 = arith.constant 0.000000e+00 : f32
    %294 = vector.broadcast %cst_501 : f32 to vector<4x20xf32>
    %295 = arith.maximumf %293, %294 : vector<4x20xf32>
    %296 = vector.extract_strided_slice %295 {offsets = [0, 0], sizes = [1, 20], strides = [1, 1]} : vector<4x20xf32> to vector<1x20xf32>
    %c0_502 = arith.constant 0 : index
    %c0_503 = arith.constant 0 : index
    %297 = vector.load %arg14[%c0_502, %c0_503] : memref<1x80xf32, #tpu.memory_space<vmem>>, vector<1x20xf32>
    tpu.vector_store %arg14[%c0_502, %c0_503], %296 {strides = array<i32>} : memref<1x80xf32, #tpu.memory_space<vmem>>, vector<1x20xf32>,
    %298 = vector.extract_strided_slice %295 {offsets = [1, 0], sizes = [1, 20], strides = [1, 1]} : vector<4x20xf32> to vector<1x20xf32>
    %c0_504 = arith.constant 0 : index
    %c20 = arith.constant 20 : index
    %299 = vector.load %arg14[%c0_504, %c20] : memref<1x80xf32, #tpu.memory_space<vmem>>, vector<1x20xf32>
    tpu.vector_store %arg14[%c0_504, %c20], %298 {strides = array<i32>} : memref<1x80xf32, #tpu.memory_space<vmem>>, vector<1x20xf32>,
    %300 = vector.extract_strided_slice %295 {offsets = [2, 0], sizes = [1, 20], strides = [1, 1]} : vector<4x20xf32> to vector<1x20xf32>
    %c0_505 = arith.constant 0 : index
    %c40_506 = arith.constant 40 : index
    %301 = vector.load %arg14[%c0_505, %c40_506] : memref<1x80xf32, #tpu.memory_space<vmem>>, vector<1x20xf32>
    tpu.vector_store %arg14[%c0_505, %c40_506], %300 {strides = array<i32>} : memref<1x80xf32, #tpu.memory_space<vmem>>, vector<1x20xf32>,
    %302 = vector.extract_strided_slice %295 {offsets = [3, 0], sizes = [1, 20], strides = [1, 1]} : vector<4x20xf32> to vector<1x20xf32>
    %c0_507 = arith.constant 0 : index
    %c60_508 = arith.constant 60 : index
    %303 = vector.load %arg14[%c0_507, %c60_508] : memref<1x80xf32, #tpu.memory_space<vmem>>, vector<1x20xf32>
    tpu.vector_store %arg14[%c0_507, %c60_508], %302 {strides = array<i32>} : memref<1x80xf32, #tpu.memory_space<vmem>>, vector<1x20xf32>,
    %c0_509 = arith.constant 0 : index
    %c0_510 = arith.constant 0 : index
    %304 = vector.load %arg14[%c0_509, %c0_510] : memref<1x80xf32, #tpu.memory_space<vmem>>, vector<1x80xf32>
    %c0_511 = arith.constant 0 : index
    %c0_512 = arith.constant 0 : index
    %305 = vector.load %arg6[%c0_511, %c0_512] : memref<80x50xf32, #tpu.memory_space<vmem>>, vector<80x50xf32>
    %cst_513 = arith.constant dense<0.000000e+00> : vector<1x50xf32>
    %306 = tpu.matmul %304, %305, %cst_513 {dimension_numbers = #tpu.dot_dimension_numbers<[1], [0], [0], [1], [0, 0, 1, 1], [], []>} : vector<1x80xf32>, vector<80x50xf32>, vector<1x50xf32> -> vector<1x50xf32>
    %c0_514 = arith.constant 0 : index
    %c0_515 = arith.constant 0 : index
    %307 = vector.load %arg7[%c0_514, %c0_515] : memref<1x50xf32, #tpu.memory_space<vmem>>, vector<1x50xf32>
    %308 = arith.addf %306, %307 : vector<1x50xf32>
    %cst_516 = arith.constant 0.000000e+00 : f32
    %309 = vector.broadcast %cst_516 : f32 to vector<1x50xf32>
    %310 = arith.maximumf %308, %309 : vector<1x50xf32>
    %c0_517 = arith.constant 0 : index
    %c0_518 = arith.constant 0 : index
    %311 = vector.load %arg8[%c0_517, %c0_518] : memref<50x10xf32, #tpu.memory_space<vmem>>, vector<50x10xf32>
    %cst_519 = arith.constant dense<0.000000e+00> : vector<1x10xf32>
    %312 = tpu.matmul %310, %311, %cst_519 {dimension_numbers = #tpu.dot_dimension_numbers<[1], [0], [0], [1], [0, 0, 1, 1], [], []>} : vector<1x50xf32>, vector<50x10xf32>, vector<1x10xf32> -> vector<1x10xf32>
    %c0_520 = arith.constant 0 : index
    %c0_521 = arith.constant 0 : index
    %313 = vector.load %arg9[%c0_520, %c0_521] : memref<1x10xf32, #tpu.memory_space<vmem>>, vector<1x10xf32>
    %314 = arith.addf %312, %313 : vector<1x10xf32>
    %c0_522 = arith.constant 0 : index
    %c0_523 = arith.constant 0 : index
    %c0_524 = arith.constant 0 : index
    %315 = vector.load %arg10[%c0_522, %c0_523, %c0_524] : memref<1x1x10xf32, #tpu.memory_space<vmem>>, vector<1x1x10xf32>
    %316 = vector.shape_cast %315 : vector<1x1x10xf32> to vector<1x10xf32>
    %317 = vector.shape_cast %314 : vector<1x10xf32> to vector<1x1x10xf32>
    tpu.vector_store %arg10[%c0_522, %c0_523, %c0_524], %317 {strides = array<i32>} : memref<1x1x10xf32, #tpu.memory_space<vmem>>, vector<1x1x10xf32>,
    return
  }
  func.func @transform_0(%arg0: i32) -> (i32, i32, i32, i32, i32) {
    %c0_i32 = arith.constant 0 : i32
    %c0_i32_0 = arith.constant 0 : i32
    %c0_i32_1 = arith.constant 0 : i32
    %c0_i32_2 = arith.constant 0 : i32
    %c0_i32_3 = arith.constant 0 : i32
    return %arg0, %c0_i32, %c0_i32_0, %c0_i32_1, %c0_i32_2 : i32, i32, i32, i32, i32
  }
  func.func @transform_1(%arg0: i32) -> (i32, i32) {
    %c0_i32 = arith.constant 0 : i32
    %c0_i32_0 = arith.constant 0 : i32
    %c0_i32_1 = arith.constant 0 : i32
    return %c0_i32, %c0_i32_0 : i32, i32
  }
  func.func @transform_2(%arg0: i32) -> (i32, i32) {
    %c0_i32 = arith.constant 0 : i32
    %c0_i32_0 = arith.constant 0 : i32
    %c0_i32_1 = arith.constant 0 : i32
    return %c0_i32, %c0_i32_0 : i32, i32
  }
  func.func @transform_3(%arg0: i32) -> (i32, i32) {
    %c0_i32 = arith.constant 0 : i32
    %c0_i32_0 = arith.constant 0 : i32
    %c0_i32_1 = arith.constant 0 : i32
    return %c0_i32, %c0_i32_0 : i32, i32
  }
  func.func @transform_4(%arg0: i32) -> (i32, i32) {
    %c0_i32 = arith.constant 0 : i32
    %c0_i32_0 = arith.constant 0 : i32
    %c0_i32_1 = arith.constant 0 : i32
    return %c0_i32, %c0_i32_0 : i32, i32
  }
  func.func @transform_5(%arg0: i32) -> (i32, i32) {
    %c0_i32 = arith.constant 0 : i32
    %c0_i32_0 = arith.constant 0 : i32
    %c0_i32_1 = arith.constant 0 : i32
    return %c0_i32, %c0_i32_0 : i32, i32
  }
  func.func @transform_6(%arg0: i32) -> (i32, i32) {
    %c0_i32 = arith.constant 0 : i32
    %c0_i32_0 = arith.constant 0 : i32
    %c0_i32_1 = arith.constant 0 : i32
    return %c0_i32, %c0_i32_0 : i32, i32
  }
  func.func @transform_7(%arg0: i32) -> (i32, i32) {
    %c0_i32 = arith.constant 0 : i32
    %c0_i32_0 = arith.constant 0 : i32
    %c0_i32_1 = arith.constant 0 : i32
    return %c0_i32, %c0_i32_0 : i32, i32
  }
  func.func @transform_8(%arg0: i32) -> (i32, i32) {
    %c0_i32 = arith.constant 0 : i32
    %c0_i32_0 = arith.constant 0 : i32
    %c0_i32_1 = arith.constant 0 : i32
    return %c0_i32, %c0_i32_0 : i32, i32
  }
  func.func @transform_9(%arg0: i32) -> (i32, i32, i32) {
    %c0_i32 = arith.constant 0 : i32
    %c0_i32_0 = arith.constant 0 : i32
    %c0_i32_1 = arith.constant 0 : i32
    return %arg0, %c0_i32, %c0_i32_0 : i32, i32, i32
  }
}

</mosaic_0001>

<bundles_post_ra>
// kernel: tile.8
= control target key start
LH: loop header
LB: loop body
LE: loop exit
PB: predicated region body
PF: predicated region fallthrough
CT: control target
= control target key end

     0   :  { %s22_s0 = inlined_call_operand.vmem [shape: f32[10], index: 0, kind: input, shape index: {}]   ;;  %s23_s1 = inlined_call_operand.vmem [shape: f32[6,10], index: 1, kind: output, shape index: {}]  }
   0x1   :  { %v4_v0 = vld [vmem:[%s22_s0] ss:$0 sm:$0xff] }
   0x2   :  { %5 = vst [vmem:[%s23_s1] sm:$0xff] %v4_v0 }

// kernel: tile.9
= control target key start
LH: loop header
LB: loop body
LE: loop exit
PB: predicated region body
PF: predicated region fallthrough
CT: control target
= control target key end

     0   :  { %s51_s10 = smov 50   ;;  %s52_s11 = smov 30   ;;  %vm3_vm0 = vcmask 80896   ;;  %vm9_vm1 = vcmask 490896   ;;  %vm15_vm2 = vcmask 408896   ;;  %vm21_vm3 = vcmask 326896   ;;  %s87_s0 = inlined_call_operand.vmem [shape: f32[6,10], index: 0, kind: input, shape index: {}]   ;;  %s88_s1 = inlined_call_operand.vmem [shape: f32[1,60], index: 1, kind: output, shape index: {}]  }
   0x1   :  { %v41_v0 = vld [vmem:[%s87_s0 + $0x5] sm:$0x1]   ;;  %v43_v1 = vld [vmem:[%s87_s0 + $0x3] sm:$0x1]   ;;  %v45_v2 = vld [vmem:[%s87_s0 + $0x1] sm:$0x1]  }
   0x2   :  { %7 = vrot.lane.b32.xlu0 %v41_v0, %s51_s10  ;;  %19 = vrot.lane.b32.xlu1 %v43_v1, %s52_s11  ;;  %s53_s14 = smov 10   ;;  %v42_v3 = vld [vmem:[%s87_s0 + $0x4] sm:$0x1]   ;;  %v44_v4 = vld [vmem:[%s87_s0 + $0x2] sm:$0x1]   ;;  %s54_s19 = smov 40  }
   0x3   :  { %31 = vrot.lane.b32.xlu2 %v45_v2, %s53_s14  ;;  %s55_s20 = smov 20   ;;  %v2_v5 = vld [vmem:[%s87_s0] sm:$0x1]   ;;  %vm27_vm4 = vcmask 244896   ;;  %vm33_vm5 = vcmask 162896  }
   0x4   :  { %4 = vst.msk [vmem:[#allocation0] sm:$0x1] %vm3_vm0, %v2_v5  }
   0xa   :  { %13 = vrot.lane.b32.xlu0 %v42_v3, %s54_s19  ;;  %25 = vrot.lane.b32.xlu1 %v44_v4, %s55_s20 }
  0x5d   :  { %v32_v6 = vpop.permute.xlu2 %31  }
  0x74   :  { %v8_v7 = vpop.permute.xlu0 %7   ;;  %v20_v8 = vpop.permute.xlu1 %19  }
  0x75   :  { %10 = vst.msk [vmem:[#allocation0] sm:$0x1] %vm9_vm1, %v8_v7  }
  0x7c   :  { %v14_v9 = vpop.permute.xlu0 %13   ;;  %v26_v10 = vpop.permute.xlu1 %25  }
  0x7d   :  { %16 = vst.msk [vmem:[#allocation0] sm:$0x1] %vm15_vm2, %v14_v9  }
  0x7e   :  { %22 = vst.msk [vmem:[#allocation0] sm:$0x1] %vm21_vm3, %v20_v8  }
  0x7f   :  { %28 = vst.msk [vmem:[#allocation0] sm:$0x1] %vm27_vm4, %v26_v10  }
  0x80   :  { %34 = vst.msk [vmem:[#allocation0] sm:$0x1] %vm33_vm5, %v32_v6  }
  0x87   :  { %v37_v11 = vld [vmem:[#allocation0] sm:$0x1] }
  0x88   :  { %40 = vst [vmem:[%s88_s1] sm:$0x1] %v37_v11 }

// kernel: half_conv_net.1
= control target key start
LH: loop header
LB: loop body
LE: loop exit
PB: predicated region body
PF: predicated region fallthrough
CT: control target
= control target key end

     0   :  { %s2422_s0 = inlined_call_operand.vmem [shape: f32[2,4,2,7,7], index: 0, kind: input, shape index: {}]   ;;  %s2423_s1 = inlined_call_operand.vmem [shape: f32[96,60], index: 1, kind: input, shape index: {}]   ;;  %s2424_s2 = inlined_call_operand.vmem [shape: f32[1,60], index: 2, kind: input, shape index: {}]   ;;  %s2425_s3 = inlined_call_operand.vmem [shape: f32[256,20], index: 3, kind: input, shape index: {}]   ;;  %s2426_s4 = inlined_call_operand.vmem [shape: f32[1,20], index: 4, kind: input, shape index: {}]   ;;  %s2427_s5 = inlined_call_operand.vmem [shape: f32[80,50], index: 5, kind: input, shape index: {}]   ;;  %s2428_s6 = inlined_call_operand.vmem [shape: f32[1,50], index: 6, kind: input, shape index: {}]   ;;  %s2429_s7 = inlined_call_operand.vmem [shape: f32[50,10], index: 7, kind: input, shape index: {}]   ;;  %s2430_s8 = inlined_call_operand.vmem [shape: f32[1,10], index: 8, kind: input, shape index: {}]   ;;  %s2431_s9 = inlined_call_operand.hbm [shape: f32[2,1,10], index: 9, kind: output, shape index: {}]  }
   0x1   :  { %2479 = sst [smem:[#allocation16_spill]] %s2422_s0 }
   0x2   :  { %2480 = sst [smem:[#allocation17_spill]] %s2430_s8 }
   0x3   :  { %2481 = sst [smem:[#allocation18_spill]] %s2431_s9 }
   0x4   :  { %14 = vsyncpa [#allocation7], 0 }
   0x5   :  { %16 = vsyncpa [#allocation7 + $0x1], 0  ;;  %s1659_s30 = smov 0   ;;  %s1661_s10 = smov 0  }
   0x6   :  { %s1663_s11 = smov 0   ;;  %s1665_s12 = smov 0  }
   0x7 LB: > { %2482 = sst [smem:[#allocation9_spill]] %s1566_s30  ;;  %s1680_s13 = sadd.s32 4294967295, %s1578_s12   ;;  %s1578_s12 = sphi %s1665_s12, %s2517_s12   ;;  %s1574_s11 = sphi %s1663_s11, %s2519_s11   ;;  %s1570_s10 = sphi %s1661_s10, %s2521_s10   ;;  %s1566_s30 = sphi %s1659_s30, %s2520_s30  }
   0x8   : > { %2483 = sst [smem:[#allocation10_spill]] %s1574_s11  ;;  %s1385_s14 = sadd.s32 4294967294, %s1578_s12  }
   0x9   : > { %2484 = sst [smem:[#allocation11_spill]] %s1578_s12  ;;  %s1684_s15 = sadd.s32 1, %s1578_s12  }
   0xa   : > { %2485 = sst [smem:[#allocation12_spill]] %s1684_s15  ;;  %s223_s16 = sadd.s32 1, %s1574_s11 }
   0xb   : > { %s220_s17 = ssub.s32 %s1578_s12, %s1684_s15  ;;  %p233_p0 = scmp.ne.s32.totalorder %s1574_s11, %s1570_s10 }
   0xc   : > { %p221_p1 = scmp.eq.s32.totalorder %s220_s17, 0  ;;  %p234_p2 = scmp.eq.s32.totalorder %s1680_s13, 1 }
   0xd   : > { %p239_p3 = scmp.ne.s32.totalorder %s1570_s10, %s1566_s30  ;;  %p240_p4 = scmp.eq.s32.totalorder %s1385_s14, 1 }
   0xe   : > { %s1695_s18 = scalar_select %p221_p1, %s1574_s11, %s223_s16  }
   0xf   : > { %p1697_p5 = por %p234_p2, %p233_p0  ;;  %p1701_p6 = por %p240_p4, %p239_p3 }
  0x10   : > { %2486 = sst [smem:[#allocation13_spill]] %s1695_s18  ;;  %p1388_p7 = scmp.ge.s32.totalorder %s1578_s12, 1 }
  0x11   : > { %s2487_s19 = scalar_select %p1697_p5, 1, 0 }
  0x12   : > { %s2489_s20 = scalar_select %p1701_p6, 1, 0 }
  0x13   : > { %2488 = sst [smem:[#allocation14_spill]] %s2487_s19  ;;  %p290_p8 = scmp.lt.s32.totalorder %s1578_s12, 3 }
  0x14   : > { %2490 = sst [smem:[#allocation15_spill]] %s2489_s20 }
  0x15   : > { %p291_p9 = pnand %p1388_p7, %p290_p8 }
  0x16   : > { %p325_p10 = scmp.lt.s32.totalorder (!%p291_p9), %s1680_s13, 1  ;;  %s2491_s0 = sld [smem:[#allocation16_spill]] (!%p291_p9) }
  0x17   : > { %294 = sbr.rel (%p291_p9) target bundleno = 1285 (0x505), region = 56  ;;  %s2440_s26 = smov (!%p291_p9), 18  }
  0x18   : > { %s2452_s27 = smov (!%p291_p9), 6   ;;  %s2458_s28 = smov (!%p291_p9), 29  }
  0x19   : > { %s2438_s29 = smov (!%p291_p9), 24   ;;  %s2460_s14 = smov (!%p291_p9), 11  }
  0x1a   : > { %s2468_s16 = smov (!%p291_p9), 36   ;;  %s2464_s17 = smov (!%p291_p9), 47  }
  0x1b   : > { %s2434_s23 = smov (!%p291_p9), 60   ;;  %s2436_s24 = smov (!%p291_p9), 5  }
  0x1c   : > { %vm330_vm0 = vcmask 785408   ;;  %v1580_v0 = vmov 0.0   ;;  %s326_s21 = scalar_select %p325_p10, %s1680_s13, 1  ;;  %vm348_vm1 = vcmask 46080   ;;  %vm356_vm2 = vcmask 95280   ;;  %v907_v27 = vld [vmem:[%s2423_s1 + $0x58] sm:$0xff] }
  0x1d   : > { %333 = vst.msk [vmem:[#allocation2 + $0x10] sm:$0xff] %vm330_vm0, %v1580_v0  ;;  %v906_v28 = vld [vmem:[%s2423_s1 + $0x50] sm:$0xff]  ;;  %936 = vmatpush.msra.mxu0 %v907_v27  ;;  %1433 = vmatpush.msra.mxu3 %v907_v27  ;;  %v905_v31 = vld [vmem:[%s2423_s1 + $0x48] sm:$0xff]  ;;  %s2502_s30 = smov 78   ;;  %vm363_vm3 = vcmask 144480   ;;  %v904_v32 = vld [vmem:[%s2423_s1 + $0x40] sm:$0xff] }
  0x1e   : > { %331 = vst.msk [vmem:[#allocation2] sm:$0xff] %vm330_vm0, %v1580_v0  ;;  %s1432_s22 = sshll.u32 %s326_s21, 6  ;;  %s2432_s21 = smov 42   ;;  %vm371_vm4 = vcmask 193680   ;;  %vm379_vm5 = vcmask 242880   ;;  %vm386_vm6 = vcmask 292080  }
  0x1f   : > { %332 = vst.msk [vmem:[#allocation2 + $0x8] sm:$0xff] %vm330_vm0, %v1580_v0  ;;  %s1716_s25 = scalar_lea.vmem %s2491_s0, %s1432_s22  ;;  %s2450_s22 = smov 54   ;;  %937 = vmatpush.msra.mxu0 %v906_v28  ;;  %1434 = vmatpush.msra.mxu3 %v906_v28  ;;  %vm394_vm7 = vcmask 341280   ;;  %v903_v35 = vld [vmem:[%s2423_s1 + $0x38] sm:$0xff]  ;;  %v902_v38 = vld [vmem:[%s2423_s1 + $0x30] sm:$0xff]  ;;  %v901_v39 = vld [vmem:[%s2423_s1 + $0x28] sm:$0xff] }
  0x20   : > { %334 = vst.msk [vmem:[#allocation2 + $0x18] sm:$0xff] %vm330_vm0, %v1580_v0  ;;  %v1392_v1 = vld [vmem:[%s1716_s25 + $0x10] sm:$0x3f]  ;;  %v1391_v2 = vld [vmem:[%s1716_s25 + $0x8] sm:$0x3f]  ;;  %s2503_s15 = smov 29  }
  0x21   : > { %335 = vst.msk [vmem:[#allocation2 + $0x20] sm:$0xff] %vm330_vm0, %v1580_v0  ;;  %368 = vrot.lane.b32.xlu1 %v1392_v1, %s2440_s26  ;;  %353 = vrot.lane.b32.xlu0 %v1391_v2, %s2452_s27  ;;  %v1728_v3 = vld [vmem:[%s1716_s25 + $0x10] sm:$0x3f]  ;;  %v1393_v4 = vld [vmem:[%s1716_s25 + $0x18] sm:$0x3f]  ;;  %s2504_s18 = smov 83  }
  0x22   : > { %336 = vst.msk [vmem:[#allocation2 + $0x28] sm:$0xff] %vm330_vm0, %v1580_v0  ;;  %383 = vrot.lane.b32.xlu2 %v1728_v3, %s2458_s28  ;;  %v358_v5 = vld [vmem:[%s1716_s25] sm:$0x3f]  ;;  %v1741_v7 = vld [vmem:[%s1716_s25 + $0x28] sm:$0x3f]  ;;  %938 = vmatpush.msra.mxu0 %v905_v31  ;;  %vm402_vm8 = vcmask 390480  }
  0x23   : > { %522 = vst.msk [vmem:[#allocation2 + $0x10] sm:$0x3f] %vm348_vm1, %v1392_v1  ;;  %v1395_v6 = vld [vmem:[%s1716_s25 + $0x20] sm:$0x3f]  ;;  %v1749_v9 = vld [vmem:[%s1716_s25 + $0x38] sm:$0x3f]  ;;  %1435 = vmatpush.msra.mxu3 %v905_v31 }
  0x24   : > { %337 = vst.msk [vmem:[#allocation2 + $0x30] sm:$0xff] %vm330_vm0, %v1580_v0  ;;  %v1744_v8 = vld [vmem:[%s1716_s25 + $0x20] sm:$0x3f]  ;;  %v1755_v10 = vld [vmem:[%s1716_s25 + $0x30] sm:$0x3f]  ;;  %939 = vmatpush.msra.mxu0 %v904_v32  ;;  %vm409_vm9 = vcmask 439680  }
  0x25   : > { %338 = vst.msk [vmem:[#allocation2 + $0x38] sm:$0xff] %vm330_vm0, %v1580_v0  ;;  %v1402_v11 = vld [vmem:[%s1716_s25 + $0x8] sm:$0x3f]  ;;  %v1771_v12 = vld [vmem:[%s1716_s25 + $0x30] sm:$0x3f]  ;;  %1436 = vmatpush.msra.mxu3 %v904_v32  ;;  %v900_v40 = vld [vmem:[%s2423_s1 + $0x20] sm:$0xff] }
  0x26   : > { %339 = vst [vmem:[#allocation4] sm:$0xff] %v1580_v0  ;;  %v1777_v13 = vld [vmem:[%s1716_s25 + $0x1] sm:$0x3f]  ;;  %v1782_v14 = vld [vmem:[%s1716_s25 + $0x9] sm:$0x3f]  ;;  %940 = vmatpush.msra.mxu0 %v903_v35  ;;  %vm417_vm10 = vcmask 488880  }
  0x27   : > { %340 = vst [vmem:[#allocation4 + $0x8] sm:$0xff] %v1580_v0  ;;  %v1403_v15 = vld [vmem:[%s1716_s25 + $0x18] sm:$0x3f]  ;;  %v1791_v16 = vld [vmem:[%s1716_s25 + $0x1] sm:$0x3f]  ;;  %1437 = vmatpush.msra.mxu3 %v903_v35  ;;  %s2505_s12 = smov 36  }
  0x28   : > { %341 = vst [vmem:[#allocation4 + $0x10] sm:$0xff] %v1580_v0  ;;  %v1800_v17 = vld [vmem:[%s1716_s25 + $0x28] sm:$0x3f]  ;;  %v1812_v18 = vld [vmem:[%s1716_s25 + $0x38] sm:$0x3f]  ;;  %941 = vmatpush.msra.mxu0 %v902_v38  ;;  %v898_v45 = vld [vmem:[%s2423_s1 + $0x10] sm:$0xff] }
  0x29   : > { %342 = vst [vmem:[#allocation4 + $0x18] sm:$0xff] %v1580_v0  ;;  %376 = vrot.lane.b32.xlu1 %v1393_v4, %s2438_s29  ;;  %360 = vrot.lane.b32.xlu0 %v358_v5, %s2460_s14  ;;  %s2448_s29 = smov 23   ;;  %v1826_v19 = vld [vmem:[%s1716_s25 + $0x9] sm:$0x3f]  ;;  %v347_v20 = vld [vmem:[%s1716_s25] sm:$0x3f] }
  0x2a   : > { %343 = vst [vmem:[#allocation4 + $0x20] sm:$0xff] %v1580_v0  ;;  %391 = vrot.lane.b32.xlu2 %v1395_v6, %s2468_s16  ;;  %v1850_v23 = vld [vmem:[%s1716_s25 + $0x11] sm:$0x3f]  ;;  %v1866_v29 = vld [vmem:[%s1716_s25 + $0x19] sm:$0x3f]  ;;  %942 = vmatpush.msra.mxu0 %v901_v39  ;;  %s2506_s19 = smov 41  }
  0x2b   : > { %344 = vst [vmem:[#allocation4 + $0x28] sm:$0xff] %v1580_v0  ;;  %v1889_v36 = vld [vmem:[%s1716_s25 + $0x11] sm:$0x3f]  ;;  %1438 = vmatpush.msra.mxu3 %v902_v38  ;;  %v899_v44 = vld [vmem:[%s2423_s1 + $0x18] sm:$0xff]  ;;  %vm425_vm11 = vcmask 538080   ;;  %v897_v46 = vld [vmem:[%s2423_s1 + $0x8] sm:$0xff] }
  0x2c   : > { %345 = vst [vmem:[#allocation4 + $0x30] sm:$0xff] %v1580_v0  ;;  %943 = vmatpush.msra.mxu0 %v900_v40  ;;  %v896_v49 = vld [vmem:[%s2423_s1] sm:$0xff]  ;;  %s2507_s8 = smov 47   ;;  %vm432_vm12 = vcmask 587280   ;;  %vm439_vm13 = vcmask 636480   ;;  %vm446_vm14 = vcmask 685680  }
  0x2d   : > { %346 = vst [vmem:[#allocation4 + $0x38] sm:$0xff] %v1580_v0  ;;  %1439 = vmatpush.msra.mxu3 %v901_v39  ;;  %s2508_s9 = smov 59   ;;  %vm453_vm15 = vcmask 734880   ;;  %v1962_v59 = vld [vmem:[%s1716_s25 + $0x21] sm:$0x3f] }
  0x2e   : > { %455 = vst.msk [vmem:[#allocation2 + $0x8] sm:$0x3f] %vm348_vm1, %v1391_v2  ;;  %944 = vmatpush.msra.mxu0 %v899_v44  ;;  %v1978_v1 = vld [vmem:[%s1716_s25 + $0x29] sm:$0x3f]  ;;  %v2020_v27 = vld [vmem:[%s1716_s25 + $0x39] sm:$0x3f] }
  0x2f   : > { %585 = vst.msk [vmem:[#allocation2 + $0x18] sm:$0x3f] %vm348_vm1, %v1393_v4  ;;  %1440 = vmatpush.msra.mxu3 %v900_v40  ;;  %v2032_v31 = vld [vmem:[%s1716_s25 + $0x31] sm:$0x3f] }
  0x30   : > { %707 = vst.msk [vmem:[#allocation2 + $0x28] sm:$0x3f] %vm348_vm1, %v1741_v7  ;;  %945 = vmatpush.msra.mxu0 %v898_v45 }
  0x31   : > { %829 = vst.msk [vmem:[#allocation2 + $0x38] sm:$0x3f] %vm348_vm1, %v1749_v9  ;;  %406 = vrot.lane.b32.xlu1 %v1744_v8, %s2464_s17  ;;  %399 = vrot.lane.b32.xlu0 %v1741_v7, %s2432_s21  ;;  %s2466_s21 = smov 65  }
  0x32   : > { %644 = vst.msk [vmem:[#allocation2 + $0x20] sm:$0x3f] %vm348_vm1, %v1395_v6  ;;  %414 = vrot.lane.b32.xlu2 %v1755_v10, %s2450_s22  ;;  %1441 = vmatpush.msra.mxu3 %v899_v44 }
  0x33   : > { %766 = vst.msk [vmem:[#allocation2 + $0x30] sm:$0x3f] %vm348_vm1, %v1755_v10  ;;  %946 = vmatpush.msra.mxu0 %v897_v46 }
  0x34   : > { %349 = vst.msk [vmem:[#allocation2] sm:$0x3f] %vm348_vm1, %v347_v20  ;;  %1442 = vmatpush.msra.mxu3 %v898_v45  ;;  %vm982_vm1 = vcmask 488448  }
  0x35   : > { %947 = vmatpush.msra.mxu0 %v896_v49 }
  0x36   : > { %1443 = vmatpush.msra.mxu3 %v897_v46 }
  0x38   : > { %1444 = vmatpush.msra.mxu3 %v896_v49 }
  0x39   : > { %422 = vrot.lane.b32.xlu1 %v1749_v9, %s2434_s23  ;;  %456 = vrot.lane.b32.xlu0 %v358_v5, %s2436_s24  ;;  %s2442_s23 = smov 72   ;;  %s2444_s24 = smov 78  }
  0x3a   : > { %462 = vrot.lane.b32.xlu2 %v1402_v11, %s2460_s14  ;;  %v2002_v11 = vld [vmem:[%s1716_s25 + $0x19] sm:$0x3f] }
  0x41   : > { %466 = vrot.lane.b32.xlu1 %v1393_v4, %s2440_s26  ;;  %429 = vrot.lane.b32.xlu0 %v1771_v12, %s2466_s21  ;;  %s2462_s26 = smov 83  }
  0x42   : > { %436 = vrot.lane.b32.xlu2 %v1777_v13, %s2442_s23  ;;  %s2446_s23 = smov 41  }
  0x49   : > { %443 = vrot.lane.b32.xlu1 %v1782_v14, %s2444_s24  ;;  %470 = vrot.lane.b32.xlu0 %v1728_v3, %s2448_s29  ;;  %s2454_s24 = smov 59   ;;  %s2493_s29 = smov 18  }
  0x4a   : > { %476 = vrot.lane.b32.xlu2 %v1403_v15, %s2458_s28 }
  0x51   : > { %480 = vrot.lane.b32.xlu1 %v1741_v7, %s2468_s16  ;;  %450 = vrot.lane.b32.xlu0 %v1791_v16, %s2462_s26 }
  0x52   : > { %484 = vrot.lane.b32.xlu2 %v1744_v8, %s2446_s23  ;;  %s2492_s23 = smov 72  }
  0x59   : > { %494 = vrot.lane.b32.xlu1 %v1749_v9, %s2450_s22  ;;  %490 = vrot.lane.b32.xlu0 %v1800_v17, %s2464_s17  ;;  %s2494_s22 = smov 24  }
  0x5a   : > { %523 = vrot.lane.b32.xlu2 %v1393_v4, %s2452_s27  ;;  %s2456_s27 = smov 77  }
  0x61   : > { %527 = vrot.lane.b32.xlu1 %v1728_v3, %s2460_s14  ;;  %498 = vrot.lane.b32.xlu0 %v1771_v12, %s2454_s24  ;;  %s2495_s24 = smov 42   ;;  %s2498_s14 = smov 60  }
  0x62   : > { %504 = vrot.lane.b32.xlu2 %v1812_v18, %s2466_s21 }
  0x69   : > { %508 = vrot.lane.b32.xlu1 %v1782_v14, %s2492_s23  ;;  %531 = vrot.lane.b32.xlu0 %v1395_v6, %s2493_s29 }
  0x6a   : > { %535 = vrot.lane.b32.xlu2 %v1741_v7, %s2494_s22 }
  0x71   : > { %539 = vrot.lane.b32.xlu1 %v1744_v8, %s2458_s28  ;;  %512 = vrot.lane.b32.xlu0 %v1791_v16, %s2456_s27  ;;  %s2496_s27 = smov 5   ;;  %s2497_s28 = smov 54  }
  0x72   : > { %518 = vrot.lane.b32.xlu2 %v1826_v19, %s2462_s26  ;;  %s2499_s26 = smov 11  }
  0x79   : > { %547 = vrot.lane.b32.xlu1 %v1749_v9, %s2495_s24  ;;  %543 = vrot.lane.b32.xlu0 %v1755_v10, %s2468_s16 }
  0x7a   : > { %551 = vrot.lane.b32.xlu2 %v1771_v12, %s2464_s17  ;;  %s2500_s17 = smov 6  }
  0x7c   : > { %v384_v21 = vpop.permute.xlu2 %383 }
  0x81   : > { %586 = vrot.lane.b32.xlu1 %v1728_v3, %s2496_s27  ;;  %555 = vrot.lane.b32.xlu0 %v1777_v13, %s2497_s28 }
  0x82   : > { %559 = vrot.lane.b32.xlu2 %v1782_v14, %s2498_s14 }
  0x84   : > { %v392_v22 = vpop.permute.xlu2 %391 }
  0x89   : > { %563 = vrot.lane.b32.xlu1 %v1791_v16, %s2466_s21  ;;  %590 = vrot.lane.b32.xlu0 %v1403_v15, %s2499_s26  ;;  %s2501_s21 = smov 23  }
  0x8a   : > { %594 = vrot.lane.b32.xlu2 %v1741_v7, %s2493_s29 }
  0x8c   : > { %v415_v24 = vpop.permute.xlu2 %414 }
  0x91   : > { %569 = vrot.lane.b32.xlu1 %v1850_v23, %s2492_s23  ;;  %767 = vrot.lane.b32.xlu0 %v1749_v9, %s2500_s17 }
  0x92   : > { %598 = vrot.lane.b32.xlu2 %v1744_v8, %s2501_s21 }
  0x93   : > { %v369_v25 = vpop.permute.xlu1 %368  ;;  %v354_v26 = vpop.permute.xlu0 %353 }
  0x94   : > { %357 = vst.msk [vmem:[#allocation2] sm:$0x3f] %vm356_vm2, %v354_v26  ;;  %v1868_v30 = vpop.permute.xlu2 %462 }
  0x99   : > { %575 = vrot.lane.b32.xlu1 %v1866_v29, %s2502_s30  ;;  %771 = vrot.lane.b32.xlu0 %v1771_v12, %s2499_s26 }
  0x9a   : > { %602 = vrot.lane.b32.xlu2 %v1800_v17, %s2503_s15 }
  0x9b   : > { %v377_v33 = vpop.permute.xlu1 %376  ;;  %v361_v34 = vpop.permute.xlu0 %360 }
  0x9c   : > { %364 = vst.msk [vmem:[#allocation2] sm:$0x3f] %vm363_vm3, %v361_v34  ;;  %v437_v37 = vpop.permute.xlu2 %436 }
  0x9d   : > { %372 = vst.msk [vmem:[#allocation2] sm:$0x3f] %vm371_vm4, %v369_v25 }
  0x9e   : > { %380 = vst.msk [vmem:[#allocation2] sm:$0x3f] %vm379_vm5, %v377_v33 }
  0x9f   : > { %387 = vst.msk [vmem:[#allocation2] sm:$0x3f] %vm386_vm6, %v384_v21  ;;  %v1415_v21 = vld [vmem:[%s1716_s25 + $0x31] sm:$0x3f] }
  0xa0   : > { %395 = vst.msk [vmem:[#allocation2] sm:$0x3f] %vm394_vm7, %v392_v22 }
  0xa1   : > { %581 = vrot.lane.b32.xlu1 %v1889_v36, %s2504_s18  ;;  %775 = vrot.lane.b32.xlu0 %v1777_v13, %s2493_s29 }
  0xa2   : > { %606 = vrot.lane.b32.xlu2 %v1749_v9, %s2505_s12 }
  0xa3   : > { %v407_v41 = vpop.permute.xlu1 %406  ;;  %v400_v42 = vpop.permute.xlu0 %399 }
  0xa4   : > { %403 = vst.msk [vmem:[#allocation2] sm:$0x3f] %vm402_vm8, %v400_v42  ;;  %v477_v43 = vpop.permute.xlu2 %476 }
  0xa5   : > { %410 = vst.msk [vmem:[#allocation2] sm:$0x3f] %vm409_vm9, %v407_v41 }
  0xa6   : > { %418 = vst.msk [vmem:[#allocation2] sm:$0x3f] %vm417_vm10, %v415_v24 }
  0xa9   : > { %610 = vrot.lane.b32.xlu1 %v1771_v12, %s2506_s19  ;;  %779 = vrot.lane.b32.xlu0 %v1782_v14, %s2494_s22 }
  0xaa   : > { %783 = vrot.lane.b32.xlu2 %v1791_v16, %s2503_s15 }
  0xab   : > { %v423_v47 = vpop.permute.xlu1 %422  ;;  %v457_v48 = vpop.permute.xlu0 %456 }
  0xac   : > { %426 = vst.msk [vmem:[#allocation2] sm:$0x3f] %vm425_vm11, %v423_v47  ;;  %v485_v50 = vpop.permute.xlu2 %484 }
  0xad   : > { %459 = vst.msk [vmem:[#allocation2 + $0x8] sm:$0x3f] %vm356_vm2, %v457_v48 }
  0xae   : > { %465 = vst.msk [vmem:[#allocation2 + $0x8] sm:$0x3f] %vm363_vm3, %v1868_v30 }
  0xb1   : > { %787 = vrot.lane.b32.xlu1 %v1850_v23, %s2505_s12  ;;  %614 = vrot.lane.b32.xlu0 %v1812_v18, %s2507_s8 }
  0xb2   : > { %618 = vrot.lane.b32.xlu2 %v1782_v14, %s2497_s28 }
  0xb3   : > { %v467_v51 = vpop.permute.xlu1 %466  ;;  %v430_v52 = vpop.permute.xlu0 %429 }
  0xb4   : > { %469 = vst.msk [vmem:[#allocation2 + $0x8] sm:$0x3f] %vm371_vm4, %v467_v51  ;;  %v524_v53 = vpop.permute.xlu2 %523 }
  0xb5   : > { %433 = vst.msk [vmem:[#allocation2] sm:$0x3f] %vm432_vm12, %v430_v52  ;;  %v1418_v52 = vld [vmem:[%s1716_s25 + $0x39] sm:$0x3f] }
  0xb6   : > { %440 = vst.msk [vmem:[#allocation2] sm:$0x3f] %vm439_vm13, %v437_v37 }
  0xb7   : > { %526 = vst.msk [vmem:[#allocation2 + $0x10] sm:$0x3f] %vm356_vm2, %v524_v53 }
  0xb9   : > { %791 = vrot.lane.b32.xlu1 %v1866_v29, %s2495_s24  ;;  %645 = vrot.lane.b32.xlu0 %v1741_v7, %s2500_s17  ;;  %s2509_s17 = smov 65   ;;  %v1995_v7 = vld [vmem:[%s1716_s25 + $0x21] sm:$0x3f] }
  0xba   : > { %622 = vrot.lane.b32.xlu2 %v1791_v16, %s2508_s9 }
  0xbb   : > { %v444_v54 = vpop.permute.xlu1 %443  ;;  %v471_v55 = vpop.permute.xlu0 %470 }
  0xbc   : > { %447 = vst.msk [vmem:[#allocation2] sm:$0x3f] %vm446_vm14, %v444_v54  ;;  %v505_v56 = vpop.permute.xlu2 %504 }
  0xbd   : > { %473 = vst.msk [vmem:[#allocation2 + $0x8] sm:$0x3f] %vm379_vm5, %v471_v55 }
  0xbe   : > { %479 = vst.msk [vmem:[#allocation2 + $0x8] sm:$0x3f] %vm386_vm6, %v477_v43 }
  0xc1   : > { %795 = vrot.lane.b32.xlu1 %v1889_v36, %s2507_s8  ;;  %649 = vrot.lane.b32.xlu0 %v1744_v8, %s2499_s26 }
  0xc2   : > { %626 = vrot.lane.b32.xlu2 %v1826_v19, %s2509_s17 }
  0xc3   : > { %v481_v57 = vpop.permute.xlu1 %480  ;;  %v451_v58 = vpop.permute.xlu0 %450 }
  0xc4   : > { %483 = vst.msk [vmem:[#allocation2 + $0x8] sm:$0x3f] %vm394_vm7, %v481_v57  ;;  %v536_v60 = vpop.permute.xlu2 %535 }
  0xc5   : > { %487 = vst.msk [vmem:[#allocation2 + $0x8] sm:$0x3f] %vm402_vm8, %v485_v50 }
  0xc6   : > { %454 = vst.msk [vmem:[#allocation2] sm:$0x3f] %vm453_vm15, %v451_v58 }
  0xc9   : > { %799 = vrot.lane.b32.xlu1 %v1962_v59, %s2497_s28  ;;  %653 = vrot.lane.b32.xlu0 %v1755_v10, %s2493_s29 }
  0xca   : > { %830 = vrot.lane.b32.xlu2 %v1771_v12, %s2496_s27 }
  0xcb   : > { %v495_v61 = vpop.permute.xlu1 %494  ;;  %v491_v62 = vpop.permute.xlu0 %490 }
  0xcc   : > { %493 = vst.msk [vmem:[#allocation2 + $0x8] sm:$0x3f] %vm409_vm9, %v491_v62  ;;  %v519_v0 = vpop.permute.xlu2 %518 }
  0xcd   : > { %497 = vst.msk [vmem:[#allocation2 + $0x8] sm:$0x3f] %vm417_vm10, %v495_v61  ;;  %v888_v63 = vld [vmem:[#allocation2] sm:$0xff] }
  0xce   : > { %1419 = vmatmul.msk.f32.vlgmr.msra.gmra.mxu0 %vm330_vm0, %v888_v63 }
  0xd1   : > { %657 = vrot.lane.b32.xlu1 %v1749_v9, %s2494_s22  ;;  %630 = vrot.lane.b32.xlu0 %v1866_v29, %s2492_s23  ;;  %s2510_s22 = smov 77  }
  0xd2   : > { %803 = vrot.lane.b32.xlu2 %v1978_v1, %s2498_s14 }
  0xd3   : > { %v528_v2 = vpop.permute.xlu1 %527  ;;  %v499_v3 = vpop.permute.xlu0 %498 }
  0xd4   : > { %530 = vst.msk [vmem:[#allocation2 + $0x10] sm:$0x3f] %vm363_vm3, %v528_v2  ;;  %v552_v4 = vpop.permute.xlu2 %551 }
  0xd5   : > { %501 = vst.msk [vmem:[#allocation2 + $0x8] sm:$0x3f] %vm425_vm11, %v499_v3 }
  0xd6   : > { %507 = vst.msk [vmem:[#allocation2 + $0x8] sm:$0x3f] %vm432_vm12, %v505_v56 }
  0xd9   : > { %634 = vrot.lane.b32.xlu1 %v1889_v36, %s2510_s22  ;;  %834 = vrot.lane.b32.xlu0 %v1812_v18, %s2499_s26 }
  0xda   : > { %661 = vrot.lane.b32.xlu2 %v1771_v12, %s2503_s15 }
  0xdb   : > { %v509_v5 = vpop.permute.xlu1 %508  ;;  %v532_v6 = vpop.permute.xlu0 %531 }
  0xdc   : > { %511 = vst.msk [vmem:[#allocation2 + $0x8] sm:$0x3f] %vm439_vm13, %v509_v5  ;;  %v560_v10 = vpop.permute.xlu2 %559 }
  0xdd   : > { %534 = vst.msk [vmem:[#allocation2 + $0x10] sm:$0x3f] %vm371_vm4, %v532_v6 }
  0xde   : > { %538 = vst.msk [vmem:[#allocation2 + $0x10] sm:$0x3f] %vm379_vm5, %v536_v60 }
  0xe1   : > { %807 = vrot.lane.b32.xlu0 %v1995_v7, %s2509_s17  ;;  %838 = vrot.lane.b32.xlu1 %v1782_v14, %s2493_s29 }
  0xe2   : > { %640 = vrot.lane.b32.xlu2 %v2002_v11, %s2504_s18 }
  0xe3   : > { %v540_v15 = vpop.permute.xlu1 %539  ;;  %v513_v20 = vpop.permute.xlu0 %512 }
  0xe4   : > { %542 = vst.msk [vmem:[#allocation2 + $0x10] sm:$0x3f] %vm386_vm6, %v540_v15  ;;  %v595_v22 = vpop.permute.xlu2 %594 }
  0xe5   : > { %515 = vst.msk [vmem:[#allocation2 + $0x8] sm:$0x3f] %vm446_vm14, %v513_v20 }
  0xe6   : > { %521 = vst.msk [vmem:[#allocation2 + $0x8] sm:$0x3f] %vm453_vm15, %v519_v0 }
  0xe9   : > { %665 = vrot.lane.b32.xlu0 %v1777_v13, %s2505_s12  ;;  %813 = vrot.lane.b32.xlu1 %v1415_v21, %s2492_s23 }
  0xea   : > { %842 = vrot.lane.b32.xlu2 %v1791_v16, %s2501_s21 }
  0xeb   : > { %v548_v24 = vpop.permute.xlu1 %547  ;;  %v544_v25 = vpop.permute.xlu0 %543 }
  0xec   : > { %546 = vst.msk [vmem:[#allocation2 + $0x10] sm:$0x3f] %vm394_vm7, %v544_v25  ;;  %v599_v13 = vpop.permute.xlu2 %598 }
  0xed   : > { %550 = vst.msk [vmem:[#allocation2 + $0x10] sm:$0x3f] %vm402_vm8, %v548_v24  ;;  %v889_v26 = vld [vmem:[#allocation2 + $0x8] sm:$0xff] }
  0xee   : > { %554 = vst.msk [vmem:[#allocation2 + $0x10] sm:$0x3f] %vm409_vm9, %v552_v4  ;;  %1420 = vmatmul.msk.f32.gmra.mxu0 %vm330_vm0, %v889_v26 }
  0xf1   : > { %669 = vrot.lane.b32.xlu0 %v1782_v14, %s2495_s24  ;;  %819 = vrot.lane.b32.xlu1 %v2020_v27, %s2502_s30  ;;  %s1604_s24 = smov 22  }
  0xf2   : > { %846 = vrot.lane.b32.xlu2 %v1826_v19, %s2503_s15 }
  0xf3   : > { %v587_v28 = vpop.permute.xlu1 %586  ;;  %v556_v30 = vpop.permute.xlu0 %555 }
  0xf4   : > { %589 = vst.msk [vmem:[#allocation2 + $0x18] sm:$0x3f] %vm356_vm2, %v587_v28  ;;  %v603_v32 = vpop.permute.xlu2 %602 }
  0xf5   : > { %558 = vst.msk [vmem:[#allocation2 + $0x10] sm:$0x3f] %vm417_vm10, %v556_v30 }
  0xf6   : > { %562 = vst.msk [vmem:[#allocation2 + $0x10] sm:$0x3f] %vm425_vm11, %v560_v10 }
  0xf9   : > { %673 = vrot.lane.b32.xlu0 %v1791_v16, %s2507_s8  ;;  %825 = vrot.lane.b32.xlu1 %v2032_v31, %s2504_s18 }
  0xfa   : > { %850 = vrot.lane.b32.xlu2 %v1866_v29, %s2505_s12 }
  0xfb   : > { %v564_v33 = vpop.permute.xlu1 %563  ;;  %v591_v34 = vpop.permute.xlu0 %590 }
  0xfc   : > { %566 = vst.msk [vmem:[#allocation2 + $0x10] sm:$0x3f] %vm432_vm12, %v564_v33  ;;  %v607_v35 = vpop.permute.xlu2 %606 }
  0xfd   : > { %593 = vst.msk [vmem:[#allocation2 + $0x18] sm:$0x3f] %vm363_vm3, %v591_v34 }
  0xfe   : > { %597 = vst.msk [vmem:[#allocation2 + $0x18] sm:$0x3f] %vm371_vm4, %v595_v22 }
  0xff   : > { %601 = vst.msk [vmem:[#allocation2 + $0x18] sm:$0x3f] %vm379_vm5, %v599_v13 }
 0x100   : > { %605 = vst.msk [vmem:[#allocation2 + $0x18] sm:$0x3f] %vm386_vm6, %v603_v32 }
 0x101   : > { %677 = vrot.lane.b32.xlu0 %v1850_v23, %s2497_s28  ;;  %708 = vrot.lane.b32.xlu1 %v1744_v8, %s2496_s27  ;;  %609 = vst.msk [vmem:[#allocation2 + $0x18] sm:$0x3f] %vm394_vm7, %v607_v35  ;;  %s1602_s27 = smov 62  }
 0x102   : > { %854 = vrot.lane.b32.xlu2 %v1889_v36, %s2506_s19 }
 0x103   : > { %v570_v37 = vpop.permute.xlu1 %569  ;;  %v768_v38 = vpop.permute.xlu0 %767 }
 0x104   : > { %572 = vst.msk [vmem:[#allocation2 + $0x10] sm:$0x3f] %vm439_vm13, %v570_v37  ;;  %v784_v39 = vpop.permute.xlu2 %783 }
 0x105   : > { %770 = vst.msk [vmem:[#allocation2 + $0x30] sm:$0x3f] %vm356_vm2, %v768_v38 }
 0x109   : > { %681 = vrot.lane.b32.xlu0 %v1866_v29, %s2498_s14  ;;  %712 = vrot.lane.b32.xlu1 %v1800_v17, %s2499_s26  ;;  %s1601_s26 = smov 100  }
 0x10a   : > { %858 = vrot.lane.b32.xlu2 %v2002_v11, %s2507_s8 }
 0x10b   : > { %v576_v23 = vpop.permute.xlu1 %575  ;;  %v772_v8 = vpop.permute.xlu0 %771 }
 0x10c   : > { %578 = vst.msk [vmem:[#allocation2 + $0x10] sm:$0x3f] %vm446_vm14, %v576_v23  ;;  %v619_v40 = vpop.permute.xlu2 %618 }
 0x10d   : > { %774 = vst.msk [vmem:[#allocation2 + $0x30] sm:$0x3f] %vm363_vm3, %v772_v8 }
 0x111   : > { %685 = vrot.lane.b32.xlu0 %v1889_v36, %s2509_s17  ;;  %716 = vrot.lane.b32.xlu1 %v1749_v9, %s2493_s29 }
 0x112   : > { %862 = vrot.lane.b32.xlu2 %v1978_v1, %s2497_s28 }
 0x113   : > { %v582_v41 = vpop.permute.xlu1 %581  ;;  %v776_v42 = vpop.permute.xlu0 %775 }
 0x114   : > { %584 = vst.msk [vmem:[#allocation2 + $0x10] sm:$0x3f] %vm453_vm15, %v582_v41  ;;  %v623_v17 = vpop.permute.xlu2 %622 }
 0x115   : > { %778 = vst.msk [vmem:[#allocation2 + $0x30] sm:$0x3f] %vm371_vm4, %v776_v42 }
 0x119   : > { %691 = vrot.lane.b32.xlu0 %v1962_v59, %s2492_s23  ;;  %720 = vrot.lane.b32.xlu1 %v1771_v12, %s2501_s21  ;;  %v1414_v12 = vld [vmem:[%s1716_s25 + $0x29] sm:$0x3f]  ;;  %s1600_s25 = smov 90   ;;  %s1603_s21 = smov 12  }
 0x11a   : > { %866 = vrot.lane.b32.xlu2 %v1995_v7, %s2508_s9 }
 0x11b   : > { %v611_v43 = vpop.permute.xlu1 %610  ;;  %v780_v44 = vpop.permute.xlu0 %779  ;;  %v890_v9 = vld [vmem:[#allocation2 + $0x10] sm:$0xff] }
 0x11c   : > { %613 = vst.msk [vmem:[#allocation2 + $0x18] sm:$0x3f] %vm402_vm8, %v611_v43  ;;  %1421 = vmatmul.msk.f32.gmra.mxu0 %vm330_vm0, %v890_v9  ;;  %v627_v45 = vpop.permute.xlu2 %626 }
 0x11d   : > { %782 = vst.msk [vmem:[#allocation2 + $0x30] sm:$0x3f] %vm379_vm5, %v780_v44 }
 0x11e   : > { %786 = vst.msk [vmem:[#allocation2 + $0x30] sm:$0x3f] %vm386_vm6, %v784_v39 }
 0x121   : > { %697 = vrot.lane.b32.xlu0 %v1978_v1, %s2502_s30  ;;  %724 = vrot.lane.b32.xlu1 %v1812_v18, %s2503_s15  ;;  %s1605_s15 = smov 50  }
 0x122   : > { %870 = vrot.lane.b32.xlu2 %v1414_v12, %s2509_s17 }
 0x123   : > { %v788_v46 = vpop.permute.xlu1 %787  ;;  %v615_v47 = vpop.permute.xlu0 %614 }
 0x124   : > { %790 = vst.msk [vmem:[#allocation2 + $0x30] sm:$0x3f] %vm394_vm7, %v788_v46  ;;  %v831_v48 = vpop.permute.xlu2 %830 }
 0x125   : > { %617 = vst.msk [vmem:[#allocation2 + $0x18] sm:$0x3f] %vm409_vm9, %v615_v47 }
 0x126   : > { %621 = vst.msk [vmem:[#allocation2 + $0x18] sm:$0x3f] %vm417_vm10, %v619_v40 }
 0x127   : > { %625 = vst.msk [vmem:[#allocation2 + $0x18] sm:$0x3f] %vm425_vm11, %v623_v17 }
 0x128   : > { %629 = vst.msk [vmem:[#allocation2 + $0x18] sm:$0x3f] %vm432_vm12, %v627_v45 }
 0x129   : > { %703 = vrot.lane.b32.xlu0 %v1995_v7, %s2504_s18  ;;  %728 = vrot.lane.b32.xlu1 %v1782_v14, %s2505_s12  ;;  %833 = vst.msk [vmem:[#allocation2 + $0x38] sm:$0x3f] %vm356_vm2, %v831_v48 }
 0x12a   : > { %874 = vrot.lane.b32.xlu2 %v2020_v27, %s2492_s23 }
 0x12b   : > { %v792_v18 = vpop.permute.xlu1 %791  ;;  %v646_v49 = vpop.permute.xlu0 %645 }
 0x12c   : > { %794 = vst.msk [vmem:[#allocation2 + $0x30] sm:$0x3f] %vm402_vm8, %v792_v18  ;;  %v804_v50 = vpop.permute.xlu2 %803  ;;  %v1513_v18 = vld [vmem:[%s2424_s2] ss:$0 sm:$0xff] }
 0x12d   : > { %648 = vst.msk [vmem:[#allocation2 + $0x20] sm:$0x3f] %vm356_vm2, %v646_v49 }
 0x131   : > { %732 = vrot.lane.b32.xlu0 %v1791_v16, %s2506_s19  ;;  %878 = vrot.lane.b32.xlu1 %v2032_v31, %s2510_s22 }
 0x132   : > { %736 = vrot.lane.b32.xlu2 %v1826_v19, %s2507_s8  ;;  %s323_s8 = sand.u32 1, %s1570_s10  }
 0x133   : > { %v796_v51 = vpop.permute.xlu1 %795  ;;  %v650_v14 = vpop.permute.xlu0 %649 }
 0x134   : > { %798 = vst.msk [vmem:[#allocation2 + $0x30] sm:$0x3f] %vm409_vm9, %v796_v51  ;;  %v662_v53 = vpop.permute.xlu2 %661 }
 0x135   : > { %652 = vst.msk [vmem:[#allocation2 + $0x20] sm:$0x3f] %vm363_vm3, %v650_v14 }
 0x139   : > { %884 = vrot.lane.b32.xlu0 %v1418_v52, %s2504_s18  ;;  %740 = vrot.lane.b32.xlu1 %v1866_v29, %s2497_s28 }
 0x13a   : > { %744 = vrot.lane.b32.xlu2 %v1889_v36, %s2508_s9 }
 0x13b   : > { %v800_v16 = vpop.permute.xlu1 %799  ;;  %v654_v54 = vpop.permute.xlu0 %653 }
 0x13c   : > { %802 = vst.msk [vmem:[#allocation2 + $0x30] sm:$0x3f] %vm417_vm10, %v800_v16  ;;  %v641_v19 = vpop.permute.xlu2 %640 }
 0x13d   : > { %656 = vst.msk [vmem:[#allocation2 + $0x20] sm:$0x3f] %vm371_vm4, %v654_v54 }
 0x13e   : > { %806 = vst.msk [vmem:[#allocation2 + $0x30] sm:$0x3f] %vm425_vm11, %v804_v50 }
 0x141   : > { %748 = vrot.lane.b32.xlu0 %v2002_v11, %s2509_s17  ;;  %752 = vrot.lane.b32.xlu1 %v1978_v1, %s2492_s23  ;;  %s1606_s17 = smov 40  }
 0x142   : > { %756 = vrot.lane.b32.xlu2 %v1995_v7, %s2510_s22  ;;  %s1607_s22 = smov 118  }
 0x143   : > { %v658_v55 = vpop.permute.xlu1 %657  ;;  %v631_v29 = vpop.permute.xlu0 %630 }
 0x144   : > { %660 = vst.msk [vmem:[#allocation2 + $0x20] sm:$0x3f] %vm379_vm5, %v658_v55  ;;  %v843_v36 = vpop.permute.xlu2 %842 }
 0x145   : > { %633 = vst.msk [vmem:[#allocation2 + $0x18] sm:$0x3f] %vm439_vm13, %v631_v29 }
 0x146   : > { %664 = vst.msk [vmem:[#allocation2 + $0x20] sm:$0x3f] %vm386_vm6, %v662_v53 }
 0x149   : > { %762 = vrot.lane.b32.xlu0 %v1414_v12, %s2504_s18 }
 0x14b   : > { %v635_v56 = vpop.permute.xlu1 %634  ;;  %v835_v57 = vpop.permute.xlu0 %834 }
 0x14c   : > { %637 = vst.msk [vmem:[#allocation2 + $0x18] sm:$0x3f] %vm446_vm14, %v635_v56  ;;  %v847_v58 = vpop.permute.xlu2 %846  ;;  %v949_v43 = vpop.f32.mrf.mxu0 }
 0x14d   : > { %837 = vst.msk [vmem:[#allocation2 + $0x38] sm:$0x3f] %vm363_vm3, %v835_v57 }
 0x14e   : > { %643 = vst.msk [vmem:[#allocation2 + $0x18] sm:$0x3f] %vm453_vm15, %v641_v19 }
 0x153   : > { %v839_v59 = vpop.permute.xlu1 %838  ;;  %v808_v60 = vpop.permute.xlu0 %807 }
 0x154   : > { %841 = vst.msk [vmem:[#allocation2 + $0x38] sm:$0x3f] %vm371_vm4, %v839_v59  ;;  %v851_v62 = vpop.permute.xlu2 %850  ;;  %v1514_v59 = vld [vmem:[%s2424_s2] ss:$0 sm:$0xff] }
 0x155   : > { %810 = vst.msk [vmem:[#allocation2 + $0x30] sm:$0x3f] %vm432_vm12, %v808_v60  ;;  %v891_v61 = vld [vmem:[#allocation2 + $0x18] sm:$0xff] }
 0x156   : > { %1422 = vmatmul.msk.f32.gmra.mxu0 %vm330_vm0, %v891_v61  ;;  %845 = vst.msk [vmem:[#allocation2 + $0x38] sm:$0x3f] %vm379_vm5, %v843_v36 }
 0x157   : > { %849 = vst.msk [vmem:[#allocation2 + $0x38] sm:$0x3f] %vm386_vm6, %v847_v58 }
 0x158   : > { %853 = vst.msk [vmem:[#allocation2 + $0x38] sm:$0x3f] %vm394_vm7, %v851_v62 }
 0x15b   : > { %v814_v63 = vpop.permute.xlu1 %813  ;;  %v666_v0 = vpop.permute.xlu0 %665 }
 0x15c   : > { %816 = vst.msk [vmem:[#allocation2 + $0x30] sm:$0x3f] %vm439_vm13, %v814_v63  ;;  %v855_v1 = vpop.permute.xlu2 %854 }
 0x15d   : > { %668 = vst.msk [vmem:[#allocation2 + $0x20] sm:$0x3f] %vm394_vm7, %v666_v0 }
 0x15e   : > { %857 = vst.msk [vmem:[#allocation2 + $0x38] sm:$0x3f] %vm402_vm8, %v855_v1 }
 0x163   : > { %v820_v2 = vpop.permute.xlu1 %819  ;;  %v670_v3 = vpop.permute.xlu0 %669 }
 0x164   : > { %822 = vst.msk [vmem:[#allocation2 + $0x30] sm:$0x3f] %vm446_vm14, %v820_v2  ;;  %v859_v4 = vpop.permute.xlu2 %858  ;;  %v1156_v2 = vld [vmem:[%s2425_s3 + $0xf8] sm:$0xff] }
 0x165   : > { %672 = vst.msk [vmem:[#allocation2 + $0x20] sm:$0x3f] %vm402_vm8, %v670_v3  ;;  %v1155_v3 = vld [vmem:[%s2425_s3 + $0xf0] sm:$0xff]  ;;  %1186 = vmatpush.msra.mxu2 %v1156_v2 }
 0x166   : > { %861 = vst.msk [vmem:[#allocation2 + $0x38] sm:$0x3f] %vm409_vm9, %v859_v4 }
 0x167   : > { %1187 = vmatpush.msra.mxu2 %v1155_v3 }
 0x16b   : > { %v826_v5 = vpop.permute.xlu1 %825  ;;  %v674_v6 = vpop.permute.xlu0 %673 }
 0x16c   : > { %828 = vst.msk [vmem:[#allocation2 + $0x30] sm:$0x3f] %vm453_vm15, %v826_v5  ;;  %v863_v7 = vpop.permute.xlu2 %862  ;;  %v952_v9 = vpop.f32.mrf.mxu0  ;;  %v1154_v5 = vld [vmem:[%s2425_s3 + $0xe8] sm:$0xff] }
 0x16d   : > { %676 = vst.msk [vmem:[#allocation2 + $0x20] sm:$0x3f] %vm409_vm9, %v674_v6  ;;  %v973_v47 = vmax.f32 %v949_v43, %v952_v9  ;;  %1188 = vmatpush.msra.mxu2 %v1154_v5  ;;  %v1136_v43 = vld [vmem:[%s2425_s3 + $0x58] sm:$0xff]  ;;  %v1134_v9 = vld [vmem:[%s2425_s3 + $0x48] sm:$0xff] }
 0x16e   : > { %865 = vst.msk [vmem:[#allocation2 + $0x38] sm:$0x3f] %vm417_vm10, %v863_v7  ;;  %v1153_v7 = vld [vmem:[%s2425_s3 + $0xe0] sm:$0xff] }
 0x16f   : > { %1189 = vmatpush.msra.mxu2 %v1153_v7 }
 0x173   : > { %v709_v10 = vpop.permute.xlu1 %708  ;;  %v894_v11 = vld [vmem:[#allocation2 + $0x30] sm:$0xff]  ;;  %v678_v15 = vpop.permute.xlu0 %677 }
 0x174   : > { %711 = vst.msk [vmem:[#allocation2 + $0x28] sm:$0x3f] %vm356_vm2, %v709_v10  ;;  %1425 = vmatmul.msk.f32.vlgmr.msra.gmra.mxu3 %vm330_vm0, %v894_v11  ;;  %v867_v20 = vpop.permute.xlu2 %866  ;;  %vm1012_vm2 = vcmask 175104  }
 0x175   : > { %680 = vst.msk [vmem:[#allocation2 + $0x20] sm:$0x3f] %vm417_vm10, %v678_v15 }
 0x176   : > { %869 = vst.msk [vmem:[#allocation2 + $0x38] sm:$0x3f] %vm425_vm11, %v867_v20  ;;  %v1152_v20 = vld [vmem:[%s2425_s3 + $0xd8] sm:$0xff] }
 0x177   : > { %1190 = vmatpush.msra.mxu2 %v1152_v20 }
 0x17b   : > { %v713_v21 = vpop.permute.xlu1 %712  ;;  %v682_v22 = vpop.permute.xlu0 %681 }
 0x17c   : > { %715 = vst.msk [vmem:[#allocation2 + $0x28] sm:$0x3f] %vm363_vm3, %v713_v21  ;;  %v871_v24 = vpop.permute.xlu2 %870  ;;  %v1151_v21 = vld [vmem:[%s2425_s3 + $0xd0] sm:$0xff]  ;;  %vm1019_vm3 = vcmask 584880  }
 0x17d   : > { %684 = vst.msk [vmem:[#allocation2 + $0x20] sm:$0x3f] %vm425_vm11, %v682_v22  ;;  %v1150_v22 = vld [vmem:[%s2425_s3 + $0xc8] sm:$0xff]  ;;  %1191 = vmatpush.msra.mxu2 %v1151_v21 }
 0x17e   : > { %873 = vst.msk [vmem:[#allocation2 + $0x38] sm:$0x3f] %vm432_vm12, %v871_v24  ;;  %v1149_v24 = vld [vmem:[%s2425_s3 + $0xc0] sm:$0xff] }
 0x17f   : > { %1192 = vmatpush.msra.mxu2 %v1150_v22 }
 0x181   : > { %1193 = vmatpush.msra.mxu2 %v1149_v24 }
 0x183   : > { %v717_v25 = vpop.permute.xlu1 %716  ;;  %v686_v26 = vpop.permute.xlu0 %685 }
 0x184   : > { %719 = vst.msk [vmem:[#allocation2 + $0x28] sm:$0x3f] %vm371_vm4, %v717_v25  ;;  %v875_v27 = vpop.permute.xlu2 %874  ;;  %vm1026_vm4 = vcmask 994880  }
 0x185   : > { %688 = vst.msk [vmem:[#allocation2 + $0x20] sm:$0x3f] %vm432_vm12, %v686_v26 }
 0x186   : > { %877 = vst.msk [vmem:[#allocation2 + $0x38] sm:$0x3f] %vm439_vm13, %v875_v27 }
 0x18b   : > { %v721_v13 = vpop.permute.xlu1 %720  ;;  %v692_v28 = vpop.permute.xlu0 %691 }
 0x18c   : > { %723 = vst.msk [vmem:[#allocation2 + $0x28] sm:$0x3f] %vm379_vm5, %v721_v13  ;;  %v737_v34 = vpop.permute.xlu2 %736  ;;  %v1148_v13 = vld [vmem:[%s2425_s3 + $0xb8] sm:$0xff]  ;;  %vm1003_vm5 = vcmask 814480  }
 0x18d   : > { %694 = vst.msk [vmem:[#allocation2 + $0x20] sm:$0x3f] %vm439_vm13, %v692_v28  ;;  %v1147_v28 = vld [vmem:[%s2425_s3 + $0xb0] sm:$0xff]  ;;  %1194 = vmatpush.msra.mxu2 %v1148_v13 }
 0x18f   : > { %1195 = vmatpush.msra.mxu2 %v1147_v28 }
 0x193   : > { %v725_v30 = vpop.permute.xlu1 %724  ;;  %v698_v31 = vpop.permute.xlu0 %697 }
 0x194   : > { %727 = vst.msk [vmem:[#allocation2 + $0x28] sm:$0x3f] %vm386_vm6, %v725_v30  ;;  %v745_v39 = vpop.permute.xlu2 %744  ;;  %v1146_v30 = vld [vmem:[%s2425_s3 + $0xa8] sm:$0xff]  ;;  %vm1010_vm6 = vcmask 1044256  }
 0x195   : > { %700 = vst.msk [vmem:[#allocation2 + $0x20] sm:$0x3f] %vm446_vm14, %v698_v31  ;;  %1196 = vmatpush.msra.mxu2 %v1146_v30 }
 0x199   : > { %v955_v12 = vpop.f32.mrf.mxu0 }
 0x19b   : > { %v729_v32 = vpop.permute.xlu1 %728  ;;  %v704_v33 = vpop.permute.xlu0 %703 }
 0x19c   : > { %731 = vst.msk [vmem:[#allocation2 + $0x28] sm:$0x3f] %vm394_vm7, %v729_v32  ;;  %v757_v17 = vpop.permute.xlu2 %756  ;;  %vm1224_vm7 = vcmask 155648  }
 0x19d   : > { %706 = vst.msk [vmem:[#allocation2 + $0x20] sm:$0x3f] %vm453_vm15, %v704_v33 }
 0x1a3   : > { %v879_v35 = vpop.permute.xlu1 %878  ;;  %v733_v37 = vpop.permute.xlu0 %732 }
 0x1a4   : > { %v892_v38 = vld [vmem:[#allocation2 + $0x20] sm:$0xff]  ;;  %881 = vst.msk [vmem:[#allocation2 + $0x38] sm:$0x3f] %vm446_vm14, %v879_v35 }
 0x1a5   : > { %735 = vst.msk [vmem:[#allocation2 + $0x28] sm:$0x3f] %vm402_vm8, %v733_v37  ;;  %1423 = vmatmul.msk.f32.gmra.mxu0 %vm330_vm0, %v892_v38  ;;  %v1145_v37 = vld [vmem:[%s2425_s3 + $0xa0] sm:$0xff]  ;;  %v1140_v38 = vld [vmem:[%s2425_s3 + $0x78] sm:$0xff]  ;;  %vm1291_vm8 = vcmask 1041408  }
 0x1a6   : > { %739 = vst.msk [vmem:[#allocation2 + $0x28] sm:$0x3f] %vm409_vm9, %v737_v34  ;;  %1197 = vmatpush.msra.mxu2 %v1145_v37  ;;  %1157 = vmatpush.msra.mxu1 %v1140_v38  ;;  %v1251_v37 = vld [vmem:[%s2427_s5 + $0x40] sm:$0xff]  ;;  %v1250_v38 = vld [vmem:[%s2427_s5 + $0x38] sm:$0xff]  ;;  %vm1230_vm9 = vcmask 320673  }
 0x1ab   : > { %v741_v23 = vpop.permute.xlu1 %740  ;;  %v885_v8 = vpop.permute.xlu0 %884 }
 0x1ac   : > { %743 = vst.msk [vmem:[#allocation2 + $0x28] sm:$0x3f] %vm417_vm10, %v741_v23  ;;  %v1139_v23 = vld [vmem:[%s2425_s3 + $0x70] sm:$0xff]  ;;  %vm1235_vm10 = vcmask 485698  }
 0x1ad   : > { %887 = vst.msk [vmem:[#allocation2 + $0x38] sm:$0x3f] %vm453_vm15, %v885_v8  ;;  %v1143_v8 = vld [vmem:[%s2425_s3 + $0x90] sm:$0xff]  ;;  %1158 = vmatpush.msra.mxu1 %v1139_v23  ;;  %v1248_v23 = vld [vmem:[%s2427_s5 + $0x28] sm:$0xff] }
 0x1ae   : > { %747 = vst.msk [vmem:[#allocation2 + $0x28] sm:$0x3f] %vm425_vm11, %v745_v39  ;;  %v1144_v39 = vld [vmem:[%s2425_s3 + $0x98] sm:$0xff]  ;;  %vm1240_vm11 = vcmask 650723  }
 0x1af   : > { %1198 = vmatpush.msra.mxu2 %v1144_v39  ;;  %v1249_v39 = vld [vmem:[%s2427_s5 + $0x30] sm:$0xff] }
 0x1b1   : > { %1199 = vmatpush.msra.mxu2 %v1143_v8  ;;  %v1247_v8 = vld [vmem:[%s2427_s5 + $0x20] sm:$0xff] }
 0x1b3   : > { %v753_v40 = vpop.permute.xlu1 %752  ;;  %v749_v41 = vpop.permute.xlu0 %748 }
 0x1b4   : > { %v895_v42 = vld [vmem:[#allocation2 + $0x38] sm:$0xff]  ;;  %751 = vst.msk [vmem:[#allocation2 + $0x28] sm:$0x3f] %vm432_vm12, %v749_v41  ;;  %v1142_v41 = vld [vmem:[%s2425_s3 + $0x88] sm:$0xff]  ;;  %vm1254_vm12 = vcmask 654336  }
 0x1b5   : > { %1426 = vmatmul.msk.f32.gmra.mxu3 %vm330_vm0, %v895_v42  ;;  %755 = vst.msk [vmem:[#allocation2 + $0x28] sm:$0x3f] %vm439_vm13, %v753_v40  ;;  %v1138_v40 = vld [vmem:[%s2425_s3 + $0x68] sm:$0xff]  ;;  %1200 = vmatpush.msra.mxu2 %v1142_v41  ;;  %v1137_v42 = vld [vmem:[%s2425_s3 + $0x60] sm:$0xff]  ;;  %v1245_v41 = vld [vmem:[%s2427_s5 + $0x10] sm:$0xff]  ;;  %vm1287_vm13 = vcmask 408576  }
 0x1b6   : > { %759 = vst.msk [vmem:[#allocation2 + $0x28] sm:$0x3f] %vm446_vm14, %v757_v17  ;;  %1159 = vmatpush.msra.mxu1 %v1138_v40  ;;  %v1141_v17 = vld [vmem:[%s2425_s3 + $0x80] sm:$0xff]  ;;  %v1246_v40 = vld [vmem:[%s2427_s5 + $0x18] sm:$0xff]  ;;  %vm1315_vm14 = vcmask 73728  }
 0x1b7   : > { %1201 = vmatpush.msra.mxu2 %v1141_v17  ;;  %v1243_v17 = vld [vmem:[%s2427_s5] sm:$0xff] }
 0x1b8   : > { %1160 = vmatpush.msra.mxu1 %v1137_v42  ;;  %v1244_v42 = vld [vmem:[%s2427_s5 + $0x8] sm:$0xff] }
 0x1ba   : > { %1161 = vmatpush.msra.mxu1 %v1136_v43  ;;  %v1285_v43 = vld [vmem:[%s2429_s7 + $0x30] sm:$0x3] }
 0x1bb   : > { %v763_v44 = vpop.permute.xlu0 %762 }
 0x1bc   : > { %765 = vst.msk [vmem:[#allocation2 + $0x28] sm:$0x3f] %vm453_vm15, %v763_v44  ;;  %v1135_v44 = vld [vmem:[%s2425_s3 + $0x50] sm:$0xff] }
 0x1bd   : > { %1162 = vmatpush.msra.mxu1 %v1135_v44  ;;  %v1284_v44 = vld [vmem:[%s2429_s7 + $0x28] sm:$0xff] }
 0x1bf   : > { %1163 = vmatpush.msra.mxu1 %v1134_v9  ;;  %v1283_v9 = vld [vmem:[%s2429_s7 + $0x20] sm:$0xff] }
 0x1c3   : > { %v893_v45 = vld [vmem:[#allocation2 + $0x28] sm:$0xff] }
 0x1c4   : > { %1424 = vmatmul.msk.f32.gmra.mxu0 %vm330_vm0, %v893_v45  ;;  %vm996_vm0 = vcmask 404480   ;;  %v1133_v45 = vld [vmem:[%s2425_s3 + $0x40] sm:$0xff] }
 0x1c5   : > { %1164 = vmatpush.msra.mxu1 %v1133_v45  ;;  %v1282_v45 = vld [vmem:[%s2429_s7 + $0x18] sm:$0xff] }
 0x1d3   : > { %v958_v46 = vpop.f32.mrf.mxu0 }
 0x1d4   : > { %v974_v48 = vmax.f32 %v955_v12, %v958_v46  ;;  %v1132_v12 = vld [vmem:[%s2425_s3 + $0x38] sm:$0xff]  ;;  %v1131_v46 = vld [vmem:[%s2425_s3 + $0x30] sm:$0xff] }
 0x1d5   : > { %1165 = vmatpush.msra.mxu1 %v1132_v12 }
 0x1d6   : > { %v975_v49 = vmax.f32 %v973_v47, %v974_v48  ;;  %v1130_v47 = vld [vmem:[%s2425_s3 + $0x28] sm:$0xff]  ;;  %v1129_v48 = vld [vmem:[%s2425_s3 + $0x20] sm:$0xff] }
 0x1d7   : > { %1166 = vmatpush.msra.mxu1 %v1131_v46 }
 0x1d8   : > { %v980_v50 = vadd.f32 %v1513_v18, %v975_v49  ;;  %v1128_v18 = vld [vmem:[%s2425_s3 + $0x18] sm:$0xff]  ;;  %v1127_v49 = vld [vmem:[%s2425_s3 + $0x10] sm:$0xff] }
 0x1d9   : > { %1167 = vmatpush.msra.mxu1 %v1130_v47 }
 0x1da   : > { %v981_v51 = vmax.f32 %v980_v50, 0.0  ;;  %v1126_v50 = vld [vmem:[%s2425_s3 + $0x8] sm:$0xff] }
 0x1db   : > { %1168 = vmatpush.msra.mxu1 %v1129_v48 }
 0x1dc   : > { %983 = vst.msk [vmem:[#allocation3] sm:$0x3f] %vm982_vm1, %v981_v51 }
 0x1dd   : > { %1169 = vmatpush.msra.mxu1 %v1128_v18  ;;  %v1281_v18 = vld [vmem:[%s2429_s7 + $0x10] sm:$0xff] }
 0x1df   : > { %1170 = vmatpush.msra.mxu1 %v1127_v49  ;;  %v1280_v49 = vld [vmem:[%s2429_s7 + $0x8] sm:$0xff] }
 0x1e1   : > { %1171 = vmatpush.msra.mxu1 %v1126_v50  ;;  %v1279_v50 = vld [vmem:[%s2429_s7] sm:$0xff] }
 0x1e3   : > { %v1040_v14 = vld [vmem:[#allocation3 + $0x1] sm:$0xf] }
 0x1e4   : > { %v1021_v52 = vld [vmem:[#allocation3 + $0x2] sm:$0xf]  ;;  %1042 = vrot.lane.b32.xlu2 %v1040_v14, %s1600_s25 }
 0x1e5   : > { %v1005_v53 = vld [vmem:[#allocation3 + $0x1] sm:$0xf]  ;;  %1023 = vrot.lane.b32.xlu0 %v1021_v52, %s2492_s23 }
 0x1e6   : > { %1007 = vrot.lane.b32.xlu1 %v1005_v53, %s1601_s26  ;;  %v995_v16 = vld [vmem:[#allocation3] sm:$0xf] }
 0x1e7   : > { %997 = vst.msk [vmem:[#allocation4] sm:$0xf] %vm996_vm0, %v995_v16  ;;  %v1053_v54 = vld [vmem:[#allocation3 + $0x2] sm:$0xf] }
 0x1e8   : > { %v1028_v11 = vld [vmem:[#allocation3] sm:$0xf] }
 0x1e9   : > { %v1074_v26 = vld [vmem:[#allocation3 + $0x2] sm:$0xf] }
 0x1ea   : > { %v1061_v27 = vld [vmem:[#allocation3 + $0x1] sm:$0xf] }
 0x1eb   : > { %v1105_v31 = vld [vmem:[#allocation3 + $0x2] sm:$0xf] }
 0x1ec   : > { %v1092_v34 = vld [vmem:[#allocation3 + $0x1] sm:$0xf] }
 0x1ed   : > { %v1125_v52 = vld [vmem:[%s2425_s3] sm:$0xff] }
 0x1ee   : > { %1055 = vrot.lane.b32.xlu1 %v1053_v54, %s1602_s27  ;;  %1172 = vmatpush.msra.mxu1 %v1125_v52 }
 0x1f7   : > { %v967_v19 = vpop.f32.mrf.mxu3 }
 0x222   : > { %v961_v55 = vpop.f32.mrf.mxu0 }
 0x238   : > { %v970_v36 = vpop.f32.mrf.mxu3 }
 0x239   : > { %v985_v57 = vmax.f32 %v967_v19, %v970_v36 }
 0x23e   : > { %v2183_v29 = vpop.permute.xlu2 %1042 }
 0x23f   : > { %1046 = vst.msk [vmem:[#allocation4 + $0x18] sm:$0xf] %vm1012_vm2, %v2183_v29 }
 0x241   : > { %v964_v56 = vpop.f32.mrf.mxu0 }
 0x242   : > { %v984_v58 = vmax.f32 %v961_v55, %v964_v56 }
 0x244   : > { %v986_v60 = vmax.f32 %v984_v58, %v985_v57 }
 0x246   : > { %v991_v61 = vadd.f32 %v1514_v59, %v986_v60 }
 0x248   : > { %v992_v62 = vmax.f32 %v991_v61, 0.0 }
 0x24a   : > { %994 = vst.msk [vmem:[#allocation3 + $0x8] sm:$0x3f] %vm982_vm1, %v992_v62 }
 0x251   : > { %v1047_v63 = vld [vmem:[#allocation3 + $0x9] sm:$0xf] }
 0x252   : > { %v1014_v0 = vld [vmem:[#allocation3 + $0x9] sm:$0xf]  ;;  %1049 = vrot.lane.b32.xlu0 %v1047_v63, %s1603_s21 }
 0x253   : > { %v998_v1 = vld [vmem:[#allocation3 + $0x8] sm:$0xf]  ;;  %1016 = vrot.lane.b32.xlu2 %v1014_v0, %s1604_s24 }
 0x254   : > { %1000 = vrot.lane.b32.xlu1 %v998_v1, %s1605_s15  ;;  %v1059_v6 = vld [vmem:[#allocation3 + $0x8] sm:$0xf] }
 0x255   : > { %1060 = vst.msk [vmem:[#allocation4 + $0x20] sm:$0xf] %vm996_vm0, %v1059_v6  ;;  %v1034_v10 = vld [vmem:[#allocation3 + $0x8] sm:$0xf] }
 0x256   : > { %v1067_v15 = vld [vmem:[#allocation3 + $0x9] sm:$0xf] }
 0x257   : > { %v1080_v25 = vld [vmem:[#allocation3 + $0xa] sm:$0xf]  ;;  %v1024_v14 = vpop.permute.xlu0 %1023 }
 0x258   : > { %v2200_v4 = vpop.permute.xlu1 %1007  ;;  %v1098_v32 = vld [vmem:[#allocation3 + $0x9] sm:$0xf] }
 0x259   : > { %1013 = vst.msk [vmem:[#allocation4 + $0x8] sm:$0xf] %vm1012_vm2, %v2200_v4  ;;  %v1111_v33 = vld [vmem:[#allocation3 + $0xa] sm:$0xf] }
 0x25a   : > { %1036 = vrot.lane.b32.xlu0 %v1034_v10, %s1606_s17  ;;  %v1086_v35 = vld [vmem:[#allocation3 + $0x8] sm:$0xf] }
 0x25b   : > { %1030 = vrot.lane.b32.xlu2 %v1028_v11, %s1607_s22 }
 0x25c   : > { %1069 = vrot.lane.b32.xlu1 %v1067_v15, %s1601_s26 }
 0x260   : > { %v1056_v19 = vpop.permute.xlu1 %1055 }
 0x262   : > { %1082 = vrot.lane.b32.xlu0 %v1080_v25, %s2492_s23  ;;  %s2511_s23 = sld [smem:[#allocation18_spill]] }
 0x263   : > { %1076 = vrot.lane.b32.xlu2 %v1074_v26, %s1604_s24 }
 0x264   : > { %1063 = vrot.lane.b32.xlu1 %v1061_v27, %s1605_s15 }
 0x268   : > { %s1326_s24 = scalar_lea.hbm %s2511_s23, %s1680_s13 }
 0x269   : > { %s1330_s29 = sshll.u32 %s1326_s24, 4  ;;  %s1331_s29 = int_to_ptr.hbm [resolvable:$true] %s1330_s29 }
 0x26a   : > { %1107 = vrot.lane.b32.xlu0 %v1105_v31, %s1603_s21  ;;  %v1515_v31 = vld [vmem:[%s2426_s4] ss:$0 sm:$0xff]  ;;  %s1608_s21 = smov 20   ;;  %s1530_s18 = sshra.s32 %s1331_s29, 4  ;;  %s1531_s18 = int_to_ptr.hbm [resolvable:$true] %s1530_s18 }
 0x26b   : > { %1100 = vrot.lane.b32.xlu2 %v1098_v32, %s1600_s25  ;;  %s324_s25 = scalar_lea.vmem [#allocation6], %s323_s8  ;;  %p1537_p0 = scmp.lt.s32.totalorder %s1531_s18, %s2511_s23 }
 0x26c   : > { %1113 = vrot.lane.b32.xlu1 %v1111_v33, %s1602_s27  ;;  %s1328_s27 = sshll.u32 %s324_s25, 4  ;;  %s1329_s27 = int_to_ptr.vmem [resolvable:$true] %s1328_s27 }
 0x272   : > { %1094 = vrot.lane.b32.xlu0 %v1092_v34, %s1606_s17 }
 0x273   : > { %1088 = vrot.lane.b32.xlu2 %v1086_v35, %s1607_s22  ;;  %v1252_v35 = vld [vmem:[%s2427_s5 + $0x48] sm:$0xff]  ;;  %s1318_s22 = scalar_lea.sflag [#allocation7], %s323_s8 }
 0x274   : > { %1264 = vmatpush.msrb.mxu3 %v1252_v35 }
 0x276   : > { %1265 = vmatpush.msrb.mxu3 %v1251_v37 }
 0x278   : > { %1266 = vmatpush.msrb.mxu3 %v1250_v38 }
 0x27a   : > { %1267 = vmatpush.msrb.mxu3 %v1249_v39 }
 0x27c   : > { %1268 = vmatpush.msrb.mxu3 %v1248_v23 }
 0x27e   : > { %1269 = vmatpush.msrb.mxu3 %v1247_v8 }
 0x280   : > { %1270 = vmatpush.msrb.mxu3 %v1246_v40 }
 0x282   : > { %1271 = vmatpush.msrb.mxu3 %v1245_v41 }
 0x284   : > { %1272 = vmatpush.msrb.mxu3 %v1244_v42 }
 0x286   : > { %1273 = vmatpush.msrb.mxu3 %v1243_v17 }
 0x288   : > { %1428 = vmatpush.msk.msra.mxu3 %vm1291_vm8, %v1285_v43 }
 0x28a   : > { %1305 = vmatpush.msra.mxu3 %v1284_v44 }
 0x28c   : > { %1306 = vmatpush.msra.mxu3 %v1283_v9 }
 0x28e   : > { %1307 = vmatpush.msra.mxu3 %v1282_v45 }
 0x290   : > { %1308 = vmatpush.msra.mxu3 %v1281_v18 }
 0x292   : > { %1309 = vmatpush.msra.mxu3 %v1280_v49 }
 0x294   : > { %1310 = vmatpush.msra.mxu3 %v1279_v50 }
 0x2ad   : > { %v1017_v51 = vpop.permute.xlu2 %1016 }
 0x2ae   : > { %1020 = vst.msk [vmem:[#allocation4 + $0x8] sm:$0xf] %vm1019_vm3, %v1017_v51  ;;  %v1253_v51 = vld [vmem:[%s2428_s6] sm:$0x1] }
 0x2af   : > { %1027 = vst.msk [vmem:[#allocation4 + $0x8] sm:$0xf] %vm1026_vm4, %v1024_v14 }
 0x2b5   : > { %v1031_v53 = vpop.permute.xlu2 %1030 }
 0x2b6   : > { %1033 = vst.msk [vmem:[#allocation4 + $0x10] sm:$0xf] %vm996_vm0, %v1031_v53  ;;  %v1118_v16 = vld [vmem:[#allocation4 + $0x8] sm:$0xff] }
 0x2b7   : > { %1202 = vmatmul.f32.vlgmr.msra.gmra.mxu2 %v1118_v16 }
 0x2bd   : > { %v1077_v54 = vpop.permute.xlu2 %1076 }
 0x2c4   : > { %v1050_v55 = vpop.permute.xlu0 %1049 }
 0x2c5   : > { %v1101_v36 = vpop.permute.xlu2 %1100  ;;  %1052 = vst.msk [vmem:[#allocation4 + $0x18] sm:$0xf] %vm1019_vm3, %v1050_v55 }
 0x2c6   : > { %v1001_v56 = vpop.permute.xlu1 %1000  ;;  %1058 = vst.msk [vmem:[#allocation4 + $0x18] sm:$0xf] %vm1026_vm4, %v1056_v19 }
 0x2c7   : > { %1104 = vst.msk [vmem:[#allocation4 + $0x38] sm:$0xf] %vm1012_vm2, %v1101_v36 }
 0x2c8   : > { %1004 = vst.msk [vmem:[#allocation4] sm:$0xf] %vm1003_vm5, %v1001_v56 }
 0x2c9   : > { %1011 = vst.msk [vmem:[#allocation4] sm:$0xf] %vm1010_vm6, %v2200_v4 }
 0x2cc   : > { %v1037_v57 = vpop.permute.xlu0 %1036 }
 0x2cd   : > { %v1089_v58 = vpop.permute.xlu2 %1088  ;;  %1039 = vst.msk [vmem:[#allocation4 + $0x10] sm:$0xf] %vm1003_vm5, %v1037_v57  ;;  %v1120_v60 = vld [vmem:[#allocation4 + $0x18] sm:$0xff] }
 0x2ce   : > { %v1070_v59 = vpop.permute.xlu1 %1069  ;;  %1045 = vst.msk [vmem:[#allocation4 + $0x10] sm:$0xf] %vm1010_vm6, %v2183_v29  ;;  %1205 = vmatmul.f32.gmra.mxu2 %v1120_v60 }
 0x2cf   : > { %1091 = vst.msk [vmem:[#allocation4 + $0x30] sm:$0xf] %vm996_vm0, %v1089_v58 }
 0x2d0   : > { %1073 = vst.msk [vmem:[#allocation4 + $0x28] sm:$0xf] %vm1012_vm2, %v1070_v59  ;;  %v1117_v61 = vld [vmem:[#allocation4] sm:$0xff] }
 0x2d1   : > { %1079 = vst.msk [vmem:[#allocation4 + $0x28] sm:$0xf] %vm1019_vm3, %v1077_v54  ;;  %1173 = vmatmul.f32.vlgmr.msra.gmra.mxu1 %v1117_v61 }
 0x2d4   : > { %v1083_v62 = vpop.permute.xlu0 %1082 }
 0x2d5   : > { %1085 = vst.msk [vmem:[#allocation4 + $0x28] sm:$0xf] %vm1026_vm4, %v1083_v62  ;;  %v1119_v0 = vld [vmem:[#allocation4 + $0x10] sm:$0xff] }
 0x2d6   : > { %v1064_v63 = vpop.permute.xlu1 %1063 }
 0x2d7   : > { %1066 = vst.msk [vmem:[#allocation4 + $0x20] sm:$0xf] %vm1003_vm5, %v1064_v63 }
 0x2d8   : > { %1072 = vst.msk [vmem:[#allocation4 + $0x20] sm:$0xf] %vm1010_vm6, %v1070_v59 }
 0x2d9   : > { %1176 = vmatmul.f32.gmra.mxu1 %v1119_v0 }
 0x2dc   : > { %v1108_v29 = vpop.permute.xlu0 %1107  ;;  %v1122_v1 = vld [vmem:[#allocation4 + $0x28] sm:$0xff] }
 0x2dd   : > { %1110 = vst.msk [vmem:[#allocation4 + $0x38] sm:$0xf] %vm1019_vm3, %v1108_v29  ;;  %1208 = vmatmul.f32.gmra.mxu2 %v1122_v1 }
 0x2de   : > { %v1114_v2 = vpop.permute.xlu1 %1113 }
 0x2df   : > { %1116 = vst.msk [vmem:[#allocation4 + $0x38] sm:$0xf] %vm1026_vm4, %v1114_v2  ;;  %v1121_v3 = vld [vmem:[#allocation4 + $0x20] sm:$0xff] }
 0x2e1   : > { %1179 = vmatmul.f32.gmra.mxu1 %v1121_v3 }
 0x2e4   : > { %v1095_v4 = vpop.permute.xlu0 %1094 }
 0x2e5   : > { %1097 = vst.msk [vmem:[#allocation4 + $0x30] sm:$0xf] %vm1003_vm5, %v1095_v4 }
 0x2e6   : > { %v1124_v5 = vld [vmem:[#allocation4 + $0x38] sm:$0xff]  ;;  %1103 = vst.msk [vmem:[#allocation4 + $0x30] sm:$0xf] %vm1010_vm6, %v1101_v36 }
 0x2e7   : > { %1211 = vmatmul.f32.gmra.mxu2 %v1124_v5 }
 0x2ed   : > { %v1123_v6 = vld [vmem:[#allocation4 + $0x30] sm:$0xff] }
 0x2ee   : > { %1182 = vmatmul.f32.gmra.mxu1 %v1123_v6 }
 0x33a   : > { %v1203_v10 = vpop.f32.mrf.mxu2 }
 0x34e   : > { %v1174_v7 = vpop.f32.mrf.mxu1 }
 0x34f   : > { %v1204_v26 = vadd.f32 %v1203_v10, %v1174_v7 }
 0x351   : > { %v1206_v11 = vpop.f32.mrf.mxu2 }
 0x356   : > { %v1177_v15 = vpop.f32.mrf.mxu1 }
 0x357   : > { %v1207_v22 = vadd.f32 %v1206_v11, %v1177_v15 }
 0x359   : > { %v1215_v28 = vmax.f32 %v1204_v26, %v1207_v22 }
 0x35e   : > { %v1180_v21 = vpop.f32.mrf.mxu1 }
 0x360   : > { %v1209_v20 = vpop.f32.mrf.mxu2 }
 0x361   : > { %v1210_v27 = vadd.f32 %v1209_v20, %v1180_v21 }
 0x36a   : > { %v1212_v24 = vpop.f32.mrf.mxu2 }
 0x36b   : > { %v1183_v25 = vpop.f32.mrf.mxu1 }
 0x36c   : > { %v1213_v13 = vadd.f32 %v1212_v24, %v1183_v25 }
 0x36e   : > { %v1216_v30 = vmax.f32 %v1210_v27, %v1213_v13 }
 0x370   : > { %v1217_v32 = vmax.f32 %v1215_v28, %v1216_v30 }
 0x372   : > { %v1222_v33 = vadd.f32 %v1515_v31, %v1217_v32 }
 0x374   : > { %v1223_v34 = vmax.f32 %v1222_v33, 0.0 }
 0x376   : > { %1237 = vrot.lane.b32.xlu0 %v1223_v34, %s2498_s14  ;;  %1232 = vrot.lane.b32.xlu2 %v1223_v34, %s1606_s17  ;;  %1225 = vst.msk [vmem:[#allocation5] sm:$0x1] %vm1224_vm7, %v1223_v34  ;;  %s1532_s14 = scalar_lea.hbm %s1531_s18, 1  ;;  %s1536_s17 = scalar_lea.hbm %s2511_s23, 2 }
 0x377   : > { %1227 = vrot.lane.b32.xlu1 %v1223_v34, %s1608_s21  ;;  %s2512_s21 = sld [smem:[#allocation17_spill]]  ;;  %p1533_p11 = scmp.ne.s32.totalorder %s1531_s18, %s1532_s14 }
 0x378   : > { %p1538_p1 = scmp.lt.s32.totalorder %s1536_s17, %s1532_s14 }
 0x379   : > { %p1534_p12 = pnand %p1533_p11, %p1697_p5 }
 0x37a   : > { %p1539_p2 = por %p1538_p1, %p1537_p0 }
 0x37b   : > { %p1535_p13 = pneg %p1534_p12 }
 0x37d   : > { %v1286_v16 = vld [vmem:[%s2512_s21] sm:$0x1]  ;;  %p1540_p3 = pnand %p1539_p2, %p1535_p13 }
 0x3d0   : > { %v1233_v46 = vpop.permute.xlu2 %1232 }
 0x3e8   : > { %v1238_v47 = vpop.permute.xlu0 %1237 }
 0x3e9   : > { %v1228_v12 = vpop.permute.xlu1 %1227 }
 0x3ea   : > { %1231 = vst.msk [vmem:[#allocation5 - $0x1] sm:$0x2] %vm1230_vm9, %v1228_v12 }
 0x3eb   : > { %1236 = vst.msk [vmem:[#allocation5 - $0x2] sm:$0x4] %vm1235_vm10, %v1233_v46 }
 0x3ec   : > { %1241 = vst.msk [vmem:[#allocation5 - $0x3] sm:$0x8] %vm1240_vm11, %v1238_v47 }
 0x3f3   : > { %v1242_v48 = vld [vmem:[#allocation5] sm:$0x1] }
 0x3f4   : > { %1427 = vmatmul.msk.f32.vlgmr.msrb.gmra.mxu3 %vm1254_vm12, %v1242_v48 }
 0x477   : > { %v1275_v14 = vpop.f32.mrf.mxu3 }
 0x478   : > { %v1276_v52 = vadd.f32 %v1275_v14, %v1253_v51 }
 0x47a   : > { %v1278_v53 = vmax.f32 %v1276_v52, 0.0 }
 0x47c   : > { %1429 = vmatmul.msk.f32.vlgmr.msra.gmra.mxu3 %vm1287_vm13, %v1278_v53 }
 0x4ff   : > { %v1312_v54 = vpop.f32.mrf.mxu3 }
 0x500   : > { %v1313_v19 = vadd.f32 %v1312_v54, %v1286_v16 }
 0x502   : > { %1316 = vst.msk [vmem:[%s324_s25] sm:$0x1] %vm1315_vm14, %v1313_v19 }
 0x503   : > { %1543 = shalt.err (!%p1540_p3)
}
 0x504   : > { %1445 = dma.vmem_to_hbm [thread:$0]  (%p1697_p5), %s1329_s27, 16, %s1331_s29, %s1318_s22  }
 0x505 PF: > { %s2514_s26 = sld [smem:[#allocation11_spill]] }
 0x506   : > { %s2515_s0 = sld [smem:[#allocation9_spill]] }
 0x50b   : > { %p1451_p4 = scmp.ge.s32.totalorder %s2514_s26, 2 }
 0x50c   : > { %s1342_s8 = sand.u32 1, %s2515_s0  }
 0x50d   : > { %p1448_p7 = pnand %p1451_p4, %p1701_p6  ;;  %s1343_s9 = scalar_lea.sflag [#allocation7], %s1342_s8 }
 0x50f   : > { %p1449_p8 = pneg %p1448_p7 }
 0x511   : > { %1561 = dma.done.wait (%p1449_p8), %s1343_s9, 16  }
 0x512   : > { %1563 = vsyncadd (%p1449_p8), %s1343_s9, 4294967280  ;;  %s2517_s12 = sld [smem:[#allocation12_spill]]  ;;  %s2520_s30 = smov %s1570_s10 }
 0x513   : > { %s2518_s24 = sld [smem:[#allocation10_spill]] }
 0x514   : > { %s2519_s11 = sld [smem:[#allocation13_spill]] }
 0x518   : > { %p19_p9 = scmp.ge.s32.totalorder %s2517_s12, 4  }
 0x519   : > { %s2521_s10 = smov %s2518_s24 }
 0x51a   :  { %21 = sbr.rel (!%p19_p9) target bundleno = 7 (0x7), region = 99 }
 0x51f   :  { %1348 = vsyncpa [#allocation7], 1 }
 0x520   :  { %1350 = vsyncpa [#allocation7 + $0x1], 1 }

</bundles_post_ra>
